<compile_context>
chip_gen: v7x
topology: tpu7x:2x2x1
jax: 0.10.0
libtpu: 0.0.40
codegen_flags: <defaults>
</compile_context>

<pallas_src>
import math
import numpy as np
import jax
import jax.numpy as jnp
from jax import lax
from jax.experimental import pallas as pl
from jax.experimental.pallas import tpu as pltpu

CFG = dict(
    C=3, H=16, W=16, patch=8, T=2,          # image / frame-sequence geometry
    D=256, heads=2, mlp=512,                # hidden (lane-dense), heads (Dh=128), MLP
    vit_layers=2, dec_layers=2,             # encoder / decoder depth
    vocab=128, max_pos=32,                  # synthetic vocab (lane-dense) / positions
    beam=4, per_node_beam=2, max_steps=6,   # GeneratorWithBeamSearchV2 config
    sos=2, eos=3, pad=0, length_penalty=0.6,
)


# ----------------------------------------------------------------------------
# Small helpers
# ----------------------------------------------------------------------------
def _pin(shape):
    """BlockSpec for a full-array block pinned at the origin (rank-1 grid)."""
    zeros = (0,) * len(shape)
    return pl.BlockSpec(shape, lambda i: zeros)


def _gelu(v):
    # TODO(synk): torch nn.GELU default is the erf form; tanh approximation kept
    # (≈1e-3 activation-level difference, irrelevant for this synthetic model).
    return 0.5 * v * (1.0 + jnp.tanh(0.7978845608028654 * (v + 0.044715 * v * v * v)))


def _layer_norm(v, g, b, eps=1e-5):
    mu = jnp.mean(v, axis=-1, keepdims=True)
    var = jnp.mean((v - mu) ** 2, axis=-1, keepdims=True)
    return (v - mu) * lax.rsqrt(var + eps) * g + b


# ----------------------------------------------------------------------------
# Pallas kernels
# ----------------------------------------------------------------------------
def pallas_linear(x, w, b):
    """y = x @ w + b.  Weights bf16 (MXU), accumulate/bias in f32."""
    M, K = x.shape
    N = w.shape[1]

    def kernel(x_ref, w_ref, b_ref, o_ref):
        o_ref[...] = jnp.dot(x_ref[...].astype(jnp.bfloat16), w_ref[...],
                             preferred_element_type=jnp.float32) + b_ref[...]

    return pl.pallas_call(
        kernel, grid=(1,),
        in_specs=[_pin((M, K)), _pin((K, N)), _pin((1, N))],
        out_specs=_pin((M, N)),
        out_shape=jax.ShapeDtypeStruct((M, N), jnp.float32),
    )(x, w, b)


def pallas_layer_norm(x, gamma, beta, eps=1e-5):
    M, D = x.shape

    def kernel(x_ref, g_ref, b_ref, o_ref):
        o_ref[...] = _layer_norm(x_ref[...], g_ref[...], b_ref[...], eps)

    return pl.pallas_call(
        kernel, grid=(1,),
        in_specs=[_pin((M, D)), _pin((1, D)), _pin((1, D))],
        out_specs=_pin((M, D)),
        out_shape=jax.ShapeDtypeStruct((M, D), jnp.float32),
    )(x, gamma, beta)


def pallas_visual_project(x, lnf_g, lnf_b, temporal_bc, w, b, g1, b1):
    """Fused ViT-final-LN + temporal embedding add + 'linearLn' visual projection.
       Returns (visual_features, projected_features), both [Lv, D]."""
    Lv, D = x.shape

    def kernel(x_ref, g0_ref, b0_ref, t_ref, w_ref, b_ref, g1_ref, b1_ref,
               vis_ref, proj_ref):
        h = _layer_norm(x_ref[...], g0_ref[...], b0_ref[...]) + t_ref[...]
        vis_ref[...] = h
        y = jnp.dot(h.astype(jnp.bfloat16), w_ref[...],
                    preferred_element_type=jnp.float32) + b_ref[...]
        proj_ref[...] = _layer_norm(y, g1_ref[...], b1_ref[...])

    return pl.pallas_call(
        kernel, grid=(1,),
        in_specs=[_pin((Lv, D)), _pin((1, D)), _pin((1, D)), _pin((Lv, D)),
                  _pin((D, D)), _pin((1, D)), _pin((1, D)), _pin((1, D))],
        out_specs=(_pin((Lv, D)), _pin((Lv, D))),
        out_shape=(jax.ShapeDtypeStruct((Lv, D), jnp.float32),
                   jax.ShapeDtypeStruct((Lv, D), jnp.float32)),
    )(x, lnf_g, lnf_b, temporal_bc, w, b, g1, b1)


def _make_block_kernel(S, D, heads, pre_ln):
    """Whole transformer block in one kernel (per batch/beam grid step)."""
    assert D % heads == 0
    Dh = D // heads
    scale = 1.0 / math.sqrt(Dh)
    bf16 = jnp.bfloat16

    def kernel(x_ref, m_ref, wqkv_ref, bqkv_ref, wo_ref, bo_ref,
               ln1g_ref, ln1b_ref, ln2g_ref, ln2b_ref,
               w1_ref, b1_ref, w2_ref, b2_ref, o_ref):
        xf = x_ref[...].reshape(S, D)          # f32
        mask = m_ref[...]                      # [S, S] f32 additive mask
        wo = wo_ref[...]                       # bf16 [D, D]

        def attend(h):                         # h: [S, D] f32
            qkv = jnp.dot(h.astype(bf16), wqkv_ref[...],
                          preferred_element_type=jnp.float32) + bqkv_ref[...]
            acc = jnp.zeros((S, D), jnp.float32)
            for hh in range(heads):            # static unroll; 128-aligned slices
                q = qkv[:, hh * Dh:(hh + 1) * Dh]
                k = qkv[:, D + hh * Dh:D + (hh + 1) * Dh]
                v = qkv[:, 2 * D + hh * Dh:2 * D + (hh + 1) * Dh]
                s = lax.dot_general(
                    q.astype(bf16), k.astype(bf16),
                    (((1,), (1,)), ((), ())),
                    preferred_element_type=jnp.float32) * scale + mask
                s = s - jnp.max(s, axis=-1, keepdims=True)
                p = jnp.exp(s)
                p = p * pl.reciprocal(jnp.sum(p, axis=-1, keepdims=True), approx=True)
                o_h = jnp.dot(p.astype(bf16), v.astype(bf16),
                              preferred_element_type=jnp.float32)      # [S, Dh]
                # fused output projection: accumulate against Wo row-slab
                acc = acc + jnp.dot(o_h.astype(bf16), wo[hh * Dh:(hh + 1) * Dh, :],
                                    preferred_element_type=jnp.float32)
            return acc + bo_ref[...]

        def mlp(h):                            # h: [S, D] f32
            u = jnp.dot(h.astype(bf16), w1_ref[...],
                        preferred_element_type=jnp.float32) + b1_ref[...]
            u = _gelu(u)
            return jnp.dot(u.astype(bf16), w2_ref[...],
                           preferred_element_type=jnp.float32) + b2_ref[...]

        if pre_ln:                             # CLIP-ViT style
            h = _layer_norm(xf, ln1g_ref[...], ln1b_ref[...])
            xf = xf + attend(h)
            h = _layer_norm(xf, ln2g_ref[...], ln2b_ref[...])
            xf = xf + mlp(h)
        else:                                  # BERT-decoder style (post-LN)
            xf = _layer_norm(xf + attend(xf), ln1g_ref[...], ln1b_ref[...])
            xf = _layer_norm(xf + mlp(xf), ln2g_ref[...], ln2b_ref[...])

        o_ref[...] = xf.reshape(1, S, D)

    return kernel


def fused_block(x, mask, p, pre_ln):
    """Run one fused transformer block over x: [B, S, D] (grid over B)."""
    B, S, D = x.shape
    heads, mlp_dim = CFG['heads'], CFG['mlp']
    kernel = _make_block_kernel(S, D, heads, pre_ln)
    return pl.pallas_call(
        kernel,
        grid=(B,),
        in_specs=[
            pl.BlockSpec((1, S, D), lambda b: (b, 0, 0)),
            _pin((S, S)),
            _pin((D, 3 * D)), _pin((1, 3 * D)),
            _pin((D, D)), _pin((1, D)),
            _pin((1, D)), _pin((1, D)), _pin((1, D)), _pin((1, D)),
            _pin((D, mlp_dim)), _pin((1, mlp_dim)),
            _pin((mlp_dim, D)), _pin((1, D)),
        ],
        out_specs=pl.BlockSpec((1, S, D), lambda b: (b, 0, 0)),
        out_shape=jax.ShapeDtypeStruct((B, S, D), jnp.float32),
        compiler_params=pltpu.CompilerParams(dimension_semantics=("parallel",)),
    )(x, mask, p['wqkv'], p['bqkv'], p['wo'], p['bo'],
      p['ln1_g'], p['ln1_b'], p['ln2_g'], p['ln2_b'],
      p['w1'], p['b1'], p['w2'], p['b2'])


def pallas_vocab_head(h, w, b, beam_scores):
    """Fused vocab head: logits, and log_softmax(logits)+beam_scores in one call."""
    M, D = h.shape
    V = w.shape[1]

    def kernel(h_ref, w_ref, b_ref, s_ref, logit_ref, scored_ref):
        logits = jnp.dot(h_ref[...].astype(jnp.bfloat16), w_ref[...],
                         preferred_element_type=jnp.float32) + b_ref[...]
        z = logits - jnp.max(logits, axis=-1, keepdims=True)
        logprobs = z - jnp.log(jnp.sum(jnp.exp(z), axis=-1, keepdims=True))
        logit_ref[...] = logits
        scored_ref[...] = logprobs + s_ref[...]

    return pl.pallas_call(
        kernel, grid=(1,),
        in_specs=[_pin((M, D)), _pin((D, V)), _pin((1, V)), _pin((M, 1))],
        out_specs=(_pin((M, V)), _pin((M, V))),
        out_shape=(jax.ShapeDtypeStruct((M, V), jnp.float32),
                   jax.ShapeDtypeStruct((M, V), jnp.float32)),
    )(h, w, b, beam_scores)


@jax.jit
def select_best_beam(beam_logits, tokens):
    """GenerativeImageTextTeacher.forward gather/argmax/gather epilogue:
       per step, pick the beam whose logit at the predicted token is largest;
       output that beam's logit row. Static padded shapes -> compiled once.
       beam_logits: [NMAX, nb, V], tokens: [NMAX, 1] int32  ->  [NMAX, V]."""
    n, nb, V = beam_logits.shape

    def kernel(l_ref, t_ref, o_ref):
        l = l_ref[...]
        tok = t_ref[...]                                             # [n, 1]
        vocab_ids = lax.broadcasted_iota(jnp.int32, (n, V), 1)
        tok_oh = (vocab_ids == tok).astype(jnp.float32)              # [n, V]
        picked = jnp.sum(l * tok_oh[:, None, :], axis=-1)            # [n, nb]
        maxv = jnp.max(picked, axis=-1, keepdims=True)
        beam_ids = lax.broadcasted_iota(jnp.int32, (n, nb), 1).astype(jnp.float32)
        best = jnp.min(jnp.where(picked >= maxv, beam_ids, float(nb)),
                       axis=-1, keepdims=True)                       # [n, 1]
        beam_oh = (beam_ids == best).astype(jnp.float32)             # [n, nb]
        o_ref[...] = jnp.sum(l * beam_oh[:, :, None], axis=1)

    return pl.pallas_call(
        kernel, grid=(1,),
        in_specs=[_pin((n, nb, V)), _pin((n, 1))],
        out_specs=_pin((n, V)),
        out_shape=jax.ShapeDtypeStruct((n, V), jnp.float32),
    )(beam_logits, tokens)


# ----------------------------------------------------------------------------
# Model glue (jitted once each; all heavy math in the Pallas kernels above)
# ----------------------------------------------------------------------------
def extract_patches(frames, patch):
    T, C, H, W = frames.shape
    x = frames.reshape(T, C, H // patch, patch, W // patch, patch)
    x = x.transpose(0, 2, 4, 1, 3, 5)            # [T, Hp, Wp, C, ph, pw]
    return x.reshape(T, (H // patch) * (W // patch), C * patch * patch)


@jax.jit
def encode_sample(params, frames):
    """Image encoder + temporal embedding + visual projection; beam-broadcast."""
    T, D, patch = CFG['T'], CFG['D'], CFG['patch']
    P = (CFG['H'] // patch) * (CFG['W'] // patch)
    patches = extract_patches(frames, patch)                     # [T, P, C*p*p]
    x = pallas_linear(patches.reshape(T * P, -1),
                      params['patch_w'], params['patch_b'])
    x = x.reshape(T, P, D) + params['vit_pos'][None]
    zero_mask = jnp.zeros((P, P), jnp.float32)
    for lp in params['vit_blocks']:
        x = fused_block(x, zero_mask, lp, pre_ln=True)
    Lv = T * P
    temporal_bc = jnp.broadcast_to(params['temporal'], (T, P, D)).reshape(Lv, D)
    visual, vis = pallas_visual_project(
        x.reshape(Lv, D), params['vit_lnf_g'], params['vit_lnf_b'], temporal_bc,
        params['vproj_w'], params['vproj_b'], params['vln_g'], params['vln_b'])
    visual = visual.reshape(1, Lv, D)                            # cat(features, dim=1)
    vis_beams = jnp.broadcast_to(vis[None], (CFG['beam'], Lv, D))
    return visual, vis_beams


@jax.jit
def decode_step(params, vis_beams, input_ids, beam_scores, cur_len):
    """One static-shape beam-search step: decoder fwd over padded sequence,
       vocab head + log_softmax + score add (Pallas) + on-device top_k."""
    nb, Lv, D = vis_beams.shape
    Lt = input_ids.shape[1]
    tok = params['tok_emb'][input_ids] + params['pos_emb'][:Lt][None]
    tok = pallas_layer_norm(tok.reshape(nb * Lt, D),
                            params['eln_g'], params['eln_b']).reshape(nb, Lt, D)
    x = jnp.concatenate([vis_beams, tok], axis=1)                # [nb, Lv+Lt, D]
    L = Lv + Lt
    i = jnp.arange(L)[:, None]
    j = jnp.arange(L)[None, :]
    allowed = (j < Lv) | ((i >= Lv) & (j <= i))                  # full vis + causal text
    mask = jnp.where(allowed, 0.0, -1e9).astype(jnp.float32)
    for lp in params['dec_blocks']:
        x = fused_block(x, mask, lp, pre_ln=False)
    h_last = lax.dynamic_slice_in_dim(x, Lv + cur_len - 1, 1, axis=1).reshape(nb, D)
    logits, scored = pallas_vocab_head(h_last, params['out_w'], params['out_b'],
                                       beam_scores.reshape(nb, 1))
    vals, idx = lax.top_k(scored.reshape(-1), CFG['per_node_beam'] * CFG['beam'])
    return logits, vals, idx


# ----------------------------------------------------------------------------
# GeneratorWithBeamSearchV2.search (batch=1; host-side bookkeeping mirrors the
# original's Python loops; one device->host sync per step)
# ----------------------------------------------------------------------------
def beam_search(params, vis_beams, cfg):
    nb, V = cfg['beam'], cfg['vocab']
    max_length, lp_pow = cfg['max_steps'], cfg['length_penalty']

    input_ids = np.full((nb, max_length), cfg['pad'], dtype=np.int32)
    input_ids[:, 0] = cfg['sos']
    beam_scores = np.zeros((nb,), dtype=np.float32)
    beam_scores[1:] = -1e9
    hyps, saved_logits = [], []
    cur_len = 1
    # TODO(synk): BeamHypotheses / repetition-penalty / sampling branches of the
    # original search use data-dependent Python control flow (.item(), sets,
    # multinomial); greedy beam expansion is kept, as in the reference use.
    while cur_len < max_length:
        logits, vals, idx = decode_step(params, vis_beams,
                                        jnp.asarray(input_ids),
                                        jnp.asarray(beam_scores),
                                        jnp.int32(cur_len))
        logits_np, vals_np, idx_np = jax.device_get((logits, vals, idx))
        saved_logits.append(logits_np)                       # raw logits, like the original
        next_sent_beam = []
        for score, ix in zip(vals_np, idx_np):
            beam_id, word_id = int(ix) // V, int(ix) % V
            score = float(score)
            if word_id == cfg['eos'] or cur_len + 1 == max_length:
                hyps.append((score / (cur_len ** lp_pow),
                             input_ids[beam_id, :cur_len].copy()))
            else:
                next_sent_beam.append((score, word_id, beam_id))
            if len(next_sent_beam) == nb:
                break
        if cur_len + 1 == max_length or len(next_sent_beam) == 0:
            break
        while len(next_sent_beam) < nb:
            next_sent_beam.append((-1e9, cfg['pad'], 0))
        beam_scores = np.array([b[0] for b in next_sent_beam], dtype=np.float32)
        beam_words = np.array([b[1] for b in next_sent_beam], dtype=np.int32)
        beam_idx = np.array([b[2] for b in next_sent_beam], dtype=np.int32)
        input_ids = input_ids[beam_idx].copy()
        input_ids[:, cur_len] = beam_words
        cur_len += 1

    if not hyps:
        hyps.append((float(beam_scores[0]) / (cur_len ** lp_pow),
                     input_ids[0, :cur_len].copy()))
    best_score, best = max(hyps, key=lambda h: h[0])
    decoded = np.full((1, max_length), cfg['pad'], dtype=np.int32)
    L = min(len(best), max_length - 1)
    decoded[0, :L] = best[:L]
    decoded[0, L] = cfg['eos']
    logprobs = np.full((1, 1), best_score, dtype=np.float32)
    return decoded, logprobs, saved_logits


def teacher_forward(x, params, cfg):
    """GenerativeImageTextTeacher.forward analog."""
    nb, V = cfg['beam'], cfg['vocab']
    NMAX = cfg['max_steps'] - 1
    out = []
    for b in range(x.shape[0]):
        frames = x[b]                                        # [T, C, H, W]
        visual, vis_beams = encode_sample(params, frames)
        decoded, logprobs, saved_logits = beam_search(params, vis_beams, cfg)
        result = {'predictions': decoded, 'logprobs': logprobs,
                  'logits_dict': saved_logits, 'visual_features': visual}
        pred = decoded[0]
        # TODO(synk): BertTokenizer.decode has no Pallas/JAX equivalent; synthetic
        # id->word map (skipping special tokens) is used to count caption words.
        words = [f"tok{int(t)}" for t in pred.tolist()
                 if int(t) not in (cfg['pad'], cfg['sos'], cfg['eos'])]
        cap = " ".join(words)
        n = min(len(words), len(saved_logits), NMAX)
        if n > 0:
            pad_logits = np.zeros((NMAX, nb, V), np.float32)
            pad_logits[:n] = np.stack(saved_logits[:n])      # [n, nb, V]
            pad_tokens = np.zeros((NMAX, 1), np.int32)
            pad_tokens[:n, 0] = pred[1:n + 1].astype(np.int32)
            res_full = select_best_beam(jnp.asarray(pad_logits),
                                        jnp.asarray(pad_tokens))
            res = res_full[:n][None, ...]                    # [1, n, V]
        else:
            res = jnp.zeros((1, 0, V), jnp.float32)
        result['output'] = res
        result['cap'] = cap
        out.append(result)
    return out


# ----------------------------------------------------------------------------
# Deterministic parameter init (synthetic — no checkpoint / yaml loading)
# ----------------------------------------------------------------------------
def init_params(key, cfg):
    D, V, mlp = cfg['D'], cfg['vocab'], cfg['mlp']
    P = (cfg['H'] // cfg['patch']) * (cfg['W'] // cfg['patch'])
    cnt = [0]

    def nxt():
        cnt[0] += 1
        return jax.random.fold_in(key, cnt[0])

    def w(shape, scale=0.02, dtype=jnp.bfloat16):       # matmul weights -> bf16 (MXU)
        return (scale * jax.random.normal(nxt(), shape)).astype(dtype)

    def wf(shape, scale=0.02):                          # embeddings stay f32
        return (scale * jax.random.normal(nxt(), shape)).astype(jnp.float32)

    zeros = lambda s: jnp.zeros(s, jnp.float32)
    ones = lambda s: jnp.ones(s, jnp.float32)

    def block():
        return dict(
            wqkv=w((D, 3 * D)), bqkv=zeros((1, 3 * D)),
            wo=w((D, D)), bo=zeros((1, D)),
            ln1_g=ones((1, D)), ln1_b=zeros((1, D)),
            ln2_g=ones((1, D)), ln2_b=zeros((1, D)),
            w1=w((D, mlp)), b1=zeros((1, mlp)),
            w2=w((mlp, D)), b2=zeros((1, D)),
        )

    return dict(
        patch_w=w((cfg['C'] * cfg['patch'] ** 2, D)), patch_b=zeros((1, D)),
        vit_pos=wf((P, D)),
        temporal=wf((cfg['T'], 1, D)),
        vit_blocks=[block() for _ in range(cfg['vit_layers'])],
        vit_lnf_g=ones((1, D)), vit_lnf_b=zeros((1, D)),
        vproj_w=w((D, D)), vproj_b=zeros((1, D)),
        vln_g=ones((1, D)), vln_b=zeros((1, D)),
        tok_emb=wf((V, D)),
        pos_emb=wf((cfg['max_pos'], D)),
        eln_g=ones((1, D)), eln_b=zeros((1, D)),
        dec_blocks=[block() for _ in range(cfg['dec_layers'])],
        out_w=w((D, V)), out_b=zeros((1, V)),
    )


if __name__ == "__main__":
    key = jax.random.PRNGKey(0)
    params = init_params(jax.random.fold_in(key, 1), CFG)
    x = jax.random.normal(jax.random.fold_in(key, 2),
                          (2, CFG['T'], CFG['C'], CFG['H'], CFG['W']),
                          dtype=jnp.float32)
    outs = teacher_forward(x, params, CFG)
    for r in outs:
        jax.block_until_ready(r['output'])
        jax.block_until_ready(r['visual_features'])
    print("KERNEL_OK")
</pallas_src>

<mosaic_0001>
module attributes {stable_mosaic.version = 11 : i64} {
  func.func @kernel(%arg0: i32, %arg1: memref<8x192xf32, #tpu.memory_space<vmem>>, %arg2: memref<192x256xbf16, #tpu.memory_space<vmem>>, %arg3: memref<1x256xf32, #tpu.memory_space<vmem>>, %arg4: memref<8x256xf32, #tpu.memory_space<vmem>>) attributes {dimension_semantics = [#tpu.dimension_semantics<arbitrary>], iteration_bounds = array<i64: 1>, scalar_prefetch = 0 : i64, scratch_operands = 0 : i64, tpu.core_type = #tpu.core_type<tc>, window_params = [{pipeline_mode = #tpu.pipeline_mode<synchronous>, transform_indices = @transform_0, window_bounds = array<i64: 8, 192>}, {pipeline_mode = #tpu.pipeline_mode<synchronous>, transform_indices = @transform_1, window_bounds = array<i64: 192, 256>}, {pipeline_mode = #tpu.pipeline_mode<synchronous>, transform_indices = @transform_2, window_bounds = array<i64: 1, 256>}, {pipeline_mode = #tpu.pipeline_mode<synchronous>, transform_indices = @transform_3, window_bounds = array<i64: 8, 256>}]} {
    %c0 = arith.constant 0 : index
    %c0_0 = arith.constant 0 : index
    %0 = vector.load %arg1[%c0, %c0_0] : memref<8x192xf32, #tpu.memory_space<vmem>>, vector<8x192xf32>
    %1 = arith.truncf %0 : vector<8x192xf32> to vector<8x192xbf16>
    %c0_1 = arith.constant 0 : index
    %c0_2 = arith.constant 0 : index
    %2 = vector.load %arg2[%c0_1, %c0_2] : memref<192x256xbf16, #tpu.memory_space<vmem>>, vector<192x256xbf16>
    %cst = arith.constant dense<0.000000e+00> : vector<8x256xf32>
    %3 = tpu.matmul %1, %2, %cst {dimension_numbers = #tpu.dot_dimension_numbers<[1], [0], [0], [1], [0, 0, 1, 1], [], []>} : vector<8x192xbf16>, vector<192x256xbf16>, vector<8x256xf32> -> vector<8x256xf32>
    %c0_3 = arith.constant 0 : index
    %c0_4 = arith.constant 0 : index
    %4 = vector.load %arg3[%c0_3, %c0_4] : memref<1x256xf32, #tpu.memory_space<vmem>>, vector<1x256xf32>
    %5 = vector.broadcast %4 : vector<1x256xf32> to vector<8x256xf32>
    %6 = arith.addf %3, %5 : vector<8x256xf32>
    %c0_5 = arith.constant 0 : index
    %c0_6 = arith.constant 0 : index
    %7 = vector.load %arg4[%c0_5, %c0_6] : memref<8x256xf32, #tpu.memory_space<vmem>>, vector<8x256xf32>
    tpu.vector_store %arg4[%c0_5, %c0_6], %6 {strides = array<i32>} : memref<8x256xf32, #tpu.memory_space<vmem>>, vector<8x256xf32>,
    return
  }
  func.func @transform_0(%arg0: i32) -> (i32, i32) {
    %c0_i32 = arith.constant 0 : i32
    %c0_i32_0 = arith.constant 0 : i32
    %c0_i32_1 = arith.constant 0 : i32
    return %c0_i32, %c0_i32_0 : i32, i32
  }
  func.func @transform_1(%arg0: i32) -> (i32, i32) {
    %c0_i32 = arith.constant 0 : i32
    %c0_i32_0 = arith.constant 0 : i32
    %c0_i32_1 = arith.constant 0 : i32
    return %c0_i32, %c0_i32_0 : i32, i32
  }
  func.func @transform_2(%arg0: i32) -> (i32, i32) {
    %c0_i32 = arith.constant 0 : i32
    %c0_i32_0 = arith.constant 0 : i32
    %c0_i32_1 = arith.constant 0 : i32
    return %c0_i32, %c0_i32_0 : i32, i32
  }
  func.func @transform_3(%arg0: i32) -> (i32, i32) {
    %c0_i32 = arith.constant 0 : i32
    %c0_i32_0 = arith.constant 0 : i32
    %c0_i32_1 = arith.constant 0 : i32
    return %c0_i32, %c0_i32_0 : i32, i32
  }
}

module attributes {stable_mosaic.version = 11 : i64} {
  func.func @kernel(%arg0: i32, %arg1: memref<1x4x256xf32, #tpu.memory_space<vmem>>, %arg2: memref<4x4xf32, #tpu.memory_space<vmem>>, %arg3: memref<256x768xbf16, #tpu.memory_space<vmem>>, %arg4: memref<1x768xf32, #tpu.memory_space<vmem>>, %arg5: memref<256x256xbf16, #tpu.memory_space<vmem>>, %arg6: memref<1x256xf32, #tpu.memory_space<vmem>>, %arg7: memref<1x256xf32, #tpu.memory_space<vmem>>, %arg8: memref<1x256xf32, #tpu.memory_space<vmem>>, %arg9: memref<1x256xf32, #tpu.memory_space<vmem>>, %arg10: memref<1x256xf32, #tpu.memory_space<vmem>>, %arg11: memref<256x512xbf16, #tpu.memory_space<vmem>>, %arg12: memref<1x512xf32, #tpu.memory_space<vmem>>, %arg13: memref<512x256xbf16, #tpu.memory_space<vmem>>, %arg14: memref<1x256xf32, #tpu.memory_space<vmem>>, %arg15: memref<1x4x256xf32, #tpu.memory_space<vmem>>) attributes {dimension_semantics = [#tpu.dimension_semantics<parallel>], iteration_bounds = array<i64: 2>, scalar_prefetch = 0 : i64, scratch_operands = 0 : i64, tpu.core_type = #tpu.core_type<tc>, window_params = [{transform_indices = @transform_0, window_bounds = array<i64: 1, 4, 256>}, {pipeline_mode = #tpu.pipeline_mode<synchronous>, transform_indices = @transform_1, window_bounds = array<i64: 4, 4>}, {pipeline_mode = #tpu.pipeline_mode<synchronous>, transform_indices = @transform_2, window_bounds = array<i64: 256, 768>}, {pipeline_mode = #tpu.pipeline_mode<synchronous>, transform_indices = @transform_3, window_bounds = array<i64: 1, 768>}, {pipeline_mode = #tpu.pipeline_mode<synchronous>, transform_indices = @transform_4, window_bounds = array<i64: 256, 256>}, {pipeline_mode = #tpu.pipeline_mode<synchronous>, transform_indices = @transform_5, window_bounds = array<i64: 1, 256>}, {pipeline_mode = #tpu.pipeline_mode<synchronous>, transform_indices = @transform_6, window_bounds = array<i64: 1, 256>}, {pipeline_mode = #tpu.pipeline_mode<synchronous>, transform_indices = @transform_7, window_bounds = array<i64: 1, 256>}, {pipeline_mode = #tpu.pipeline_mode<synchronous>, transform_indices = @transform_8, window_bounds = array<i64: 1, 256>}, {pipeline_mode = #tpu.pipeline_mode<synchronous>, transform_indices = @transform_9, window_bounds = array<i64: 1, 256>}, {pipeline_mode = #tpu.pipeline_mode<synchronous>, transform_indices = @transform_10, window_bounds = array<i64: 256, 512>}, {pipeline_mode = #tpu.pipeline_mode<synchronous>, transform_indices = @transform_11, window_bounds = array<i64: 1, 512>}, {pipeline_mode = #tpu.pipeline_mode<synchronous>, transform_indices = @transform_12, window_bounds = array<i64: 512, 256>}, {pipeline_mode = #tpu.pipeline_mode<synchronous>, transform_indices = @transform_13, window_bounds = array<i64: 1, 256>}, {transform_indices = @transform_14, window_bounds = array<i64: 1, 4, 256>}]} {
    %c0 = arith.constant 0 : index
    %c0_0 = arith.constant 0 : index
    %c0_1 = arith.constant 0 : index
    %0 = vector.load %arg1[%c0, %c0_0, %c0_1] : memref<1x4x256xf32, #tpu.memory_space<vmem>>, vector<1x4x256xf32>
    %1 = vector.shape_cast %0 : vector<1x4x256xf32> to vector<4x256xf32>
    %c0_2 = arith.constant 0 : index
    %c0_3 = arith.constant 0 : index
    %2 = vector.load %arg2[%c0_2, %c0_3] : memref<4x4xf32, #tpu.memory_space<vmem>>, vector<4x4xf32>
    %c0_4 = arith.constant 0 : index
    %c0_5 = arith.constant 0 : index
    %3 = vector.load %arg5[%c0_4, %c0_5] : memref<256x256xbf16, #tpu.memory_space<vmem>>, vector<256x256xbf16>
    %c0_6 = arith.constant 0 : index
    %c0_7 = arith.constant 0 : index
    %4 = vector.load %arg7[%c0_6, %c0_7] : memref<1x256xf32, #tpu.memory_space<vmem>>, vector<1x256xf32>
    %c0_8 = arith.constant 0 : index
    %c0_9 = arith.constant 0 : index
    %5 = vector.load %arg8[%c0_8, %c0_9] : memref<1x256xf32, #tpu.memory_space<vmem>>, vector<1x256xf32>
    %cst = arith.constant dense<0.000000e+00> : vector<4xf32>
    %6 = vector.multi_reduction <add>, %1, %cst [1] : vector<4x256xf32> to vector<4xf32>
    %7 = vector.shape_cast %6 : vector<4xf32> to vector<4x1xf32>
    %cst_10 = arith.constant 2.560000e+02 : f32
    %8 = vector.broadcast %cst_10 : f32 to vector<4x1xf32>
    %9 = arith.divf %7, %8 : vector<4x1xf32>
    %10 = vector.broadcast %9 : vector<4x1xf32> to vector<4x256xf32>
    %11 = arith.subf %1, %10 : vector<4x256xf32>
    %12 = arith.mulf %11, %11 : vector<4x256xf32>
    %cst_11 = arith.constant dense<0.000000e+00> : vector<4xf32>
    %13 = vector.multi_reduction <add>, %12, %cst_11 [1] : vector<4x256xf32> to vector<4xf32>
    %14 = vector.shape_cast %13 : vector<4xf32> to vector<4x1xf32>
    %cst_12 = arith.constant 2.560000e+02 : f32
    %15 = vector.broadcast %cst_12 : f32 to vector<4x1xf32>
    %16 = arith.divf %14, %15 : vector<4x1xf32>
    %17 = vector.broadcast %9 : vector<4x1xf32> to vector<4x256xf32>
    %18 = arith.subf %1, %17 : vector<4x256xf32>
    %cst_13 = arith.constant 9.99999974E-6 : f32
    %19 = vector.broadcast %cst_13 : f32 to vector<4x1xf32>
    %20 = arith.addf %16, %19 : vector<4x1xf32>
    %21 = math.rsqrt %20 : vector<4x1xf32>
    %22 = vector.broadcast %21 : vector<4x1xf32> to vector<4x256xf32>
    %23 = arith.mulf %18, %22 : vector<4x256xf32>
    %24 = vector.broadcast %4 : vector<1x256xf32> to vector<4x256xf32>
    %25 = arith.mulf %23, %24 : vector<4x256xf32>
    %26 = vector.broadcast %5 : vector<1x256xf32> to vector<4x256xf32>
    %27 = arith.addf %25, %26 : vector<4x256xf32>
    %28 = arith.truncf %27 : vector<4x256xf32> to vector<4x256xbf16>
    %c0_14 = arith.constant 0 : index
    %c0_15 = arith.constant 0 : index
    %29 = vector.load %arg3[%c0_14, %c0_15] : memref<256x768xbf16, #tpu.memory_space<vmem>>, vector<256x768xbf16>
    %cst_16 = arith.constant dense<0.000000e+00> : vector<4x768xf32>
    %30 = tpu.matmul %28, %29, %cst_16 {dimension_numbers = #tpu.dot_dimension_numbers<[1], [0], [0], [1], [0, 0, 1, 1], [], []>} : vector<4x256xbf16>, vector<256x768xbf16>, vector<4x768xf32> -> vector<4x768xf32>
    %c0_17 = arith.constant 0 : index
    %c0_18 = arith.constant 0 : index
    %31 = vector.load %arg4[%c0_17, %c0_18] : memref<1x768xf32, #tpu.memory_space<vmem>>, vector<1x768xf32>
    %32 = vector.broadcast %31 : vector<1x768xf32> to vector<4x768xf32>
    %33 = arith.addf %30, %32 : vector<4x768xf32>
    %cst_19 = arith.constant 0.000000e+00 : f32
    %34 = vector.broadcast %cst_19 : f32 to vector<4x256xf32>
    %35 = vector.extract_strided_slice %33 {offsets = [0, 0], sizes = [4, 128], strides = [1, 1]} : vector<4x768xf32> to vector<4x128xf32>
    %36 = vector.extract_strided_slice %33 {offsets = [0, 256], sizes = [4, 128], strides = [1, 1]} : vector<4x768xf32> to vector<4x128xf32>
    %37 = vector.extract_strided_slice %33 {offsets = [0, 512], sizes = [4, 128], strides = [1, 1]} : vector<4x768xf32> to vector<4x128xf32>
    %38 = arith.truncf %35 : vector<4x128xf32> to vector<4x128xbf16>
    %39 = arith.truncf %36 : vector<4x128xf32> to vector<4x128xbf16>
    %cst_20 = arith.constant dense<0.000000e+00> : vector<4x4xf32>
    %40 = tpu.matmul %38, %39, %cst_20 {dimension_numbers = #tpu.dot_dimension_numbers<[1], [1], [0], [0], [0, 0, 1, 0], [], []>} : vector<4x128xbf16>, vector<4x128xbf16>, vector<4x4xf32> -> vector<4x4xf32>
    %cst_21 = arith.constant 0.0883883461 : f32
    %41 = vector.broadcast %cst_21 : f32 to vector<4x4xf32>
    %42 = arith.mulf %40, %41 : vector<4x4xf32>
    %43 = arith.addf %42, %2 : vector<4x4xf32>
    %cst_22 = arith.constant dense<0xFF800000> : vector<4xf32>
    %44 = vector.multi_reduction <maximumf>, %43, %cst_22 [1] : vector<4x4xf32> to vector<4xf32>
    %45 = vector.shape_cast %44 : vector<4xf32> to vector<4x1xf32>
    %46 = vector.broadcast %45 : vector<4x1xf32> to vector<4x4xf32>
    %47 = arith.subf %43, %46 : vector<4x4xf32>
    %48 = math.exp %47 : vector<4x4xf32>
    %cst_23 = arith.constant dense<0.000000e+00> : vector<4xf32>
    %49 = vector.multi_reduction <add>, %48, %cst_23 [1] : vector<4x4xf32> to vector<4xf32>
    %50 = vector.shape_cast %49 : vector<4xf32> to vector<4x1xf32>
    %51 = tpu.reciprocal %50 {approx = true} : vector<4x1xf32> -> vector<4x1xf32>
    %52 = vector.broadcast %51 : vector<4x1xf32> to vector<4x4xf32>
    %53 = arith.mulf %48, %52 : vector<4x4xf32>
    %54 = arith.truncf %53 : vector<4x4xf32> to vector<4x4xbf16>
    %55 = arith.truncf %37 : vector<4x128xf32> to vector<4x128xbf16>
    %cst_24 = arith.constant dense<0.000000e+00> : vector<4x128xf32>
    %56 = tpu.matmul %54, %55, %cst_24 {dimension_numbers = #tpu.dot_dimension_numbers<[1], [0], [0], [1], [0, 0, 1, 1], [], []>} : vector<4x4xbf16>, vector<4x128xbf16>, vector<4x128xf32> -> vector<4x128xf32>
    %57 = arith.truncf %56 : vector<4x128xf32> to vector<4x128xbf16>
    %58 = vector.extract_strided_slice %3 {offsets = [0, 0], sizes = [128, 256], strides = [1, 1]} : vector<256x256xbf16> to vector<128x256xbf16>
    %cst_25 = arith.constant dense<0.000000e+00> : vector<4x256xf32>
    %59 = tpu.matmul %57, %58, %cst_25 {dimension_numbers = #tpu.dot_dimension_numbers<[1], [0], [0], [1], [0, 0, 1, 1], [], []>} : vector<4x128xbf16>, vector<128x256xbf16>, vector<4x256xf32> -> vector<4x256xf32>
    %60 = arith.addf %34, %59 : vector<4x256xf32>
    %61 = vector.extract_strided_slice %33 {offsets = [0, 128], sizes = [4, 128], strides = [1, 1]} : vector<4x768xf32> to vector<4x128xf32>
    %62 = vector.extract_strided_slice %33 {offsets = [0, 384], sizes = [4, 128], strides = [1, 1]} : vector<4x768xf32> to vector<4x128xf32>
    %63 = vector.extract_strided_slice %33 {offsets = [0, 640], sizes = [4, 128], strides = [1, 1]} : vector<4x768xf32> to vector<4x128xf32>
    %64 = arith.truncf %61 : vector<4x128xf32> to vector<4x128xbf16>
    %65 = arith.truncf %62 : vector<4x128xf32> to vector<4x128xbf16>
    %cst_26 = arith.constant dense<0.000000e+00> : vector<4x4xf32>
    %66 = tpu.matmul %64, %65, %cst_26 {dimension_numbers = #tpu.dot_dimension_numbers<[1], [1], [0], [0], [0, 0, 1, 0], [], []>} : vector<4x128xbf16>, vector<4x128xbf16>, vector<4x4xf32> -> vector<4x4xf32>
    %cst_27 = arith.constant 0.0883883461 : f32
    %67 = vector.broadcast %cst_27 : f32 to vector<4x4xf32>
    %68 = arith.mulf %66, %67 : vector<4x4xf32>
    %69 = arith.addf %68, %2 : vector<4x4xf32>
    %cst_28 = arith.constant dense<0xFF800000> : vector<4xf32>
    %70 = vector.multi_reduction <maximumf>, %69, %cst_28 [1] : vector<4x4xf32> to vector<4xf32>
    %71 = vector.shape_cast %70 : vector<4xf32> to vector<4x1xf32>
    %72 = vector.broadcast %71 : vector<4x1xf32> to vector<4x4xf32>
    %73 = arith.subf %69, %72 : vector<4x4xf32>
    %74 = math.exp %73 : vector<4x4xf32>
    %cst_29 = arith.constant dense<0.000000e+00> : vector<4xf32>
    %75 = vector.multi_reduction <add>, %74, %cst_29 [1] : vector<4x4xf32> to vector<4xf32>
    %76 = vector.shape_cast %75 : vector<4xf32> to vector<4x1xf32>
    %77 = tpu.reciprocal %76 {approx = true} : vector<4x1xf32> -> vector<4x1xf32>
    %78 = vector.broadcast %77 : vector<4x1xf32> to vector<4x4xf32>
    %79 = arith.mulf %74, %78 : vector<4x4xf32>
    %80 = arith.truncf %79 : vector<4x4xf32> to vector<4x4xbf16>
    %81 = arith.truncf %63 : vector<4x128xf32> to vector<4x128xbf16>
    %cst_30 = arith.constant dense<0.000000e+00> : vector<4x128xf32>
    %82 = tpu.matmul %80, %81, %cst_30 {dimension_numbers = #tpu.dot_dimension_numbers<[1], [0], [0], [1], [0, 0, 1, 1], [], []>} : vector<4x4xbf16>, vector<4x128xbf16>, vector<4x128xf32> -> vector<4x128xf32>
    %83 = arith.truncf %82 : vector<4x128xf32> to vector<4x128xbf16>
    %84 = vector.extract_strided_slice %3 {offsets = [128, 0], sizes = [128, 256], strides = [1, 1]} : vector<256x256xbf16> to vector<128x256xbf16>
    %cst_31 = arith.constant dense<0.000000e+00> : vector<4x256xf32>
    %85 = tpu.matmul %83, %84, %cst_31 {dimension_numbers = #tpu.dot_dimension_numbers<[1], [0], [0], [1], [0, 0, 1, 1], [], []>} : vector<4x128xbf16>, vector<128x256xbf16>, vector<4x256xf32> -> vector<4x256xf32>
    %86 = arith.addf %60, %85 : vector<4x256xf32>
    %c0_32 = arith.constant 0 : index
    %c0_33 = arith.constant 0 : index
    %87 = vector.load %arg6[%c0_32, %c0_33] : memref<1x256xf32, #tpu.memory_space<vmem>>, vector<1x256xf32>
    %88 = vector.broadcast %87 : vector<1x256xf32> to vector<4x256xf32>
    %89 = arith.addf %86, %88 : vector<4x256xf32>
    %90 = arith.addf %1, %89 : vector<4x256xf32>
    %c0_34 = arith.constant 0 : index
    %c0_35 = arith.constant 0 : index
    %91 = vector.load %arg9[%c0_34, %c0_35] : memref<1x256xf32, #tpu.memory_space<vmem>>, vector<1x256xf32>
    %c0_36 = arith.constant 0 : index
    %c0_37 = arith.constant 0 : index
    %92 = vector.load %arg10[%c0_36, %c0_37] : memref<1x256xf32, #tpu.memory_space<vmem>>, vector<1x256xf32>
    %cst_38 = arith.constant dense<0.000000e+00> : vector<4xf32>
    %93 = vector.multi_reduction <add>, %90, %cst_38 [1] : vector<4x256xf32> to vector<4xf32>
    %94 = vector.shape_cast %93 : vector<4xf32> to vector<4x1xf32>
    %cst_39 = arith.constant 2.560000e+02 : f32
    %95 = vector.broadcast %cst_39 : f32 to vector<4x1xf32>
    %96 = arith.divf %94, %95 : vector<4x1xf32>
    %97 = vector.broadcast %96 : vector<4x1xf32> to vector<4x256xf32>
    %98 = arith.subf %90, %97 : vector<4x256xf32>
    %99 = arith.mulf %98, %98 : vector<4x256xf32>
    %cst_40 = arith.constant dense<0.000000e+00> : vector<4xf32>
    %100 = vector.multi_reduction <add>, %99, %cst_40 [1] : vector<4x256xf32> to vector<4xf32>
    %101 = vector.shape_cast %100 : vector<4xf32> to vector<4x1xf32>
    %cst_41 = arith.constant 2.560000e+02 : f32
    %102 = vector.broadcast %cst_41 : f32 to vector<4x1xf32>
    %103 = arith.divf %101, %102 : vector<4x1xf32>
    %104 = vector.broadcast %96 : vector<4x1xf32> to vector<4x256xf32>
    %105 = arith.subf %90, %104 : vector<4x256xf32>
    %cst_42 = arith.constant 9.99999974E-6 : f32
    %106 = vector.broadcast %cst_42 : f32 to vector<4x1xf32>
    %107 = arith.addf %103, %106 : vector<4x1xf32>
    %108 = math.rsqrt %107 : vector<4x1xf32>
    %109 = vector.broadcast %108 : vector<4x1xf32> to vector<4x256xf32>
    %110 = arith.mulf %105, %109 : vector<4x256xf32>
    %111 = vector.broadcast %91 : vector<1x256xf32> to vector<4x256xf32>
    %112 = arith.mulf %110, %111 : vector<4x256xf32>
    %113 = vector.broadcast %92 : vector<1x256xf32> to vector<4x256xf32>
    %114 = arith.addf %112, %113 : vector<4x256xf32>
    %115 = arith.truncf %114 : vector<4x256xf32> to vector<4x256xbf16>
    %c0_43 = arith.constant 0 : index
    %c0_44 = arith.constant 0 : index
    %116 = vector.load %arg11[%c0_43, %c0_44] : memref<256x512xbf16, #tpu.memory_space<vmem>>, vector<256x512xbf16>
    %cst_45 = arith.constant dense<0.000000e+00> : vector<4x512xf32>
    %117 = tpu.matmul %115, %116, %cst_45 {dimension_numbers = #tpu.dot_dimension_numbers<[1], [0], [0], [1], [0, 0, 1, 1], [], []>} : vector<4x256xbf16>, vector<256x512xbf16>, vector<4x512xf32> -> vector<4x512xf32>
    %c0_46 = arith.constant 0 : index
    %c0_47 = arith.constant 0 : index
    %118 = vector.load %arg12[%c0_46, %c0_47] : memref<1x512xf32, #tpu.memory_space<vmem>>, vector<1x512xf32>
    %119 = vector.broadcast %118 : vector<1x512xf32> to vector<4x512xf32>
    %120 = arith.addf %117, %119 : vector<4x512xf32>
    %cst_48 = arith.constant 5.000000e-01 : f32
    %121 = vector.broadcast %cst_48 : f32 to vector<4x512xf32>
    %122 = arith.mulf %121, %120 : vector<4x512xf32>
    %cst_49 = arith.constant 4.471500e-02 : f32
    %123 = vector.broadcast %cst_49 : f32 to vector<4x512xf32>
    %124 = arith.mulf %123, %120 : vector<4x512xf32>
    %125 = arith.mulf %124, %120 : vector<4x512xf32>
    %126 = arith.mulf %125, %120 : vector<4x512xf32>
    %127 = arith.addf %120, %126 : vector<4x512xf32>
    %cst_50 = arith.constant 0.797884583 : f32
    %128 = vector.broadcast %cst_50 : f32 to vector<4x512xf32>
    %129 = arith.mulf %128, %127 : vector<4x512xf32>
    %130 = math.tanh %129 : vector<4x512xf32>
    %cst_51 = arith.constant 1.000000e+00 : f32
    %131 = vector.broadcast %cst_51 : f32 to vector<4x512xf32>
    %132 = arith.addf %131, %130 : vector<4x512xf32>
    %133 = arith.mulf %122, %132 : vector<4x512xf32>
    %134 = arith.truncf %133 : vector<4x512xf32> to vector<4x512xbf16>
    %c0_52 = arith.constant 0 : index
    %c0_53 = arith.constant 0 : index
    %135 = vector.load %arg13[%c0_52, %c0_53] : memref<512x256xbf16, #tpu.memory_space<vmem>>, vector<512x256xbf16>
    %cst_54 = arith.constant dense<0.000000e+00> : vector<4x256xf32>
    %136 = tpu.matmul %134, %135, %cst_54 {dimension_numbers = #tpu.dot_dimension_numbers<[1], [0], [0], [1], [0, 0, 1, 1], [], []>} : vector<4x512xbf16>, vector<512x256xbf16>, vector<4x256xf32> -> vector<4x256xf32>
    %c0_55 = arith.constant 0 : index
    %c0_56 = arith.constant 0 : index
    %137 = vector.load %arg14[%c0_55, %c0_56] : memref<1x256xf32, #tpu.memory_space<vmem>>, vector<1x256xf32>
    %138 = vector.broadcast %137 : vector<1x256xf32> to vector<4x256xf32>
    %139 = arith.addf %136, %138 : vector<4x256xf32>
    %140 = arith.addf %90, %139 : vector<4x256xf32>
    %141 = vector.shape_cast %140 : vector<4x256xf32> to vector<1x4x256xf32>
    %c0_57 = arith.constant 0 : index
    %c0_58 = arith.constant 0 : index
    %c0_59 = arith.constant 0 : index
    %142 = vector.load %arg15[%c0_57, %c0_58, %c0_59] : memref<1x4x256xf32, #tpu.memory_space<vmem>>, vector<1x4x256xf32>
    tpu.vector_store %arg15[%c0_57, %c0_58, %c0_59], %141 {strides = array<i32>} : memref<1x4x256xf32, #tpu.memory_space<vmem>>, vector<1x4x256xf32>,
    return
  }
  func.func @transform_0(%arg0: i32) -> (i32, i32, i32) {
    %c0_i32 = arith.constant 0 : i32
    %c0_i32_0 = arith.constant 0 : i32
    %c0_i32_1 = arith.constant 0 : i32
    return %arg0, %c0_i32, %c0_i32_0 : i32, i32, i32
  }
  func.func @transform_1(%arg0: i32) -> (i32, i32) {
    %c0_i32 = arith.constant 0 : i32
    %c0_i32_0 = arith.constant 0 : i32
    %c0_i32_1 = arith.constant 0 : i32
    return %c0_i32, %c0_i32_0 : i32, i32
  }
  func.func @transform_2(%arg0: i32) -> (i32, i32) {
    %c0_i32 = arith.constant 0 : i32
    %c0_i32_0 = arith.constant 0 : i32
    %c0_i32_1 = arith.constant 0 : i32
    return %c0_i32, %c0_i32_0 : i32, i32
  }
  func.func @transform_3(%arg0: i32) -> (i32, i32) {
    %c0_i32 = arith.constant 0 : i32
    %c0_i32_0 = arith.constant 0 : i32
    %c0_i32_1 = arith.constant 0 : i32
    return %c0_i32, %c0_i32_0 : i32, i32
  }
  func.func @transform_4(%arg0: i32) -> (i32, i32) {
    %c0_i32 = arith.constant 0 : i32
    %c0_i32_0 = arith.constant 0 : i32
    %c0_i32_1 = arith.constant 0 : i32
    return %c0_i32, %c0_i32_0 : i32, i32
  }
  func.func @transform_5(%arg0: i32) -> (i32, i32) {
    %c0_i32 = arith.constant 0 : i32
    %c0_i32_0 = arith.constant 0 : i32
    %c0_i32_1 = arith.constant 0 : i32
    return %c0_i32, %c0_i32_0 : i32, i32
  }
  func.func @transform_6(%arg0: i32) -> (i32, i32) {
    %c0_i32 = arith.constant 0 : i32
    %c0_i32_0 = arith.constant 0 : i32
    %c0_i32_1 = arith.constant 0 : i32
    return %c0_i32, %c0_i32_0 : i32, i32
  }
  func.func @transform_7(%arg0: i32) -> (i32, i32) {
    %c0_i32 = arith.constant 0 : i32
    %c0_i32_0 = arith.constant 0 : i32
    %c0_i32_1 = arith.constant 0 : i32
    return %c0_i32, %c0_i32_0 : i32, i32
  }
  func.func @transform_8(%arg0: i32) -> (i32, i32) {
    %c0_i32 = arith.constant 0 : i32
    %c0_i32_0 = arith.constant 0 : i32
    %c0_i32_1 = arith.constant 0 : i32
    return %c0_i32, %c0_i32_0 : i32, i32
  }
  func.func @transform_9(%arg0: i32) -> (i32, i32) {
    %c0_i32 = arith.constant 0 : i32
    %c0_i32_0 = arith.constant 0 : i32
    %c0_i32_1 = arith.constant 0 : i32
    return %c0_i32, %c0_i32_0 : i32, i32
  }
  func.func @transform_10(%arg0: i32) -> (i32, i32) {
    %c0_i32 = arith.constant 0 : i32
    %c0_i32_0 = arith.constant 0 : i32
    %c0_i32_1 = arith.constant 0 : i32
    return %c0_i32, %c0_i32_0 : i32, i32
  }
  func.func @transform_11(%arg0: i32) -> (i32, i32) {
    %c0_i32 = arith.constant 0 : i32
    %c0_i32_0 = arith.constant 0 : i32
    %c0_i32_1 = arith.constant 0 : i32
    return %c0_i32, %c0_i32_0 : i32, i32
  }
  func.func @transform_12(%arg0: i32) -> (i32, i32) {
    %c0_i32 = arith.constant 0 : i32
    %c0_i32_0 = arith.constant 0 : i32
    %c0_i32_1 = arith.constant 0 : i32
    return %c0_i32, %c0_i32_0 : i32, i32
  }
  func.func @transform_13(%arg0: i32) -> (i32, i32) {
    %c0_i32 = arith.constant 0 : i32
    %c0_i32_0 = arith.constant 0 : i32
    %c0_i32_1 = arith.constant 0 : i32
    return %c0_i32, %c0_i32_0 : i32, i32
  }
  func.func @transform_14(%arg0: i32) -> (i32, i32, i32) {
    %c0_i32 = arith.constant 0 : i32
    %c0_i32_0 = arith.constant 0 : i32
    %c0_i32_1 = arith.constant 0 : i32
    return %arg0, %c0_i32, %c0_i32_0 : i32, i32, i32
  }
}

module attributes {stable_mosaic.version = 11 : i64} {
  func.func @kernel(%arg0: i32, %arg1: memref<8x256xf32, #tpu.memory_space<vmem>>, %arg2: memref<1x256xf32, #tpu.memory_space<vmem>>, %arg3: memref<1x256xf32, #tpu.memory_space<vmem>>, %arg4: memref<8x256xf32, #tpu.memory_space<vmem>>, %arg5: memref<256x256xbf16, #tpu.memory_space<vmem>>, %arg6: memref<1x256xf32, #tpu.memory_space<vmem>>, %arg7: memref<1x256xf32, #tpu.memory_space<vmem>>, %arg8: memref<1x256xf32, #tpu.memory_space<vmem>>, %arg9: memref<8x256xf32, #tpu.memory_space<vmem>>, %arg10: memref<8x256xf32, #tpu.memory_space<vmem>>) attributes {dimension_semantics = [#tpu.dimension_semantics<arbitrary>], iteration_bounds = array<i64: 1>, scalar_prefetch = 0 : i64, scratch_operands = 0 : i64, tpu.core_type = #tpu.core_type<tc>, window_params = [{pipeline_mode = #tpu.pipeline_mode<synchronous>, transform_indices = @transform_0, window_bounds = array<i64: 8, 256>}, {pipeline_mode = #tpu.pipeline_mode<synchronous>, transform_indices = @transform_1, window_bounds = array<i64: 1, 256>}, {pipeline_mode = #tpu.pipeline_mode<synchronous>, transform_indices = @transform_2, window_bounds = array<i64: 1, 256>}, {pipeline_mode = #tpu.pipeline_mode<synchronous>, transform_indices = @transform_3, window_bounds = array<i64: 8, 256>}, {pipeline_mode = #tpu.pipeline_mode<synchronous>, transform_indices = @transform_4, window_bounds = array<i64: 256, 256>}, {pipeline_mode = #tpu.pipeline_mode<synchronous>, transform_indices = @transform_5, window_bounds = array<i64: 1, 256>}, {pipeline_mode = #tpu.pipeline_mode<synchronous>, transform_indices = @transform_6, window_bounds = array<i64: 1, 256>}, {pipeline_mode = #tpu.pipeline_mode<synchronous>, transform_indices = @transform_7, window_bounds = array<i64: 1, 256>}, {pipeline_mode = #tpu.pipeline_mode<synchronous>, transform_indices = @transform_8, window_bounds = array<i64: 8, 256>}, {pipeline_mode = #tpu.pipeline_mode<synchronous>, transform_indices = @transform_9, window_bounds = array<i64: 8, 256>}]} {
    %c0 = arith.constant 0 : index
    %c0_0 = arith.constant 0 : index
    %0 = vector.load %arg1[%c0, %c0_0] : memref<8x256xf32, #tpu.memory_space<vmem>>, vector<8x256xf32>
    %c0_1 = arith.constant 0 : index
    %c0_2 = arith.constant 0 : index
    %1 = vector.load %arg2[%c0_1, %c0_2] : memref<1x256xf32, #tpu.memory_space<vmem>>, vector<1x256xf32>
    %c0_3 = arith.constant 0 : index
    %c0_4 = arith.constant 0 : index
    %2 = vector.load %arg3[%c0_3, %c0_4] : memref<1x256xf32, #tpu.memory_space<vmem>>, vector<1x256xf32>
    %cst = arith.constant dense<0.000000e+00> : vector<8xf32>
    %3 = vector.multi_reduction <add>, %0, %cst [1] : vector<8x256xf32> to vector<8xf32>
    %4 = vector.shape_cast %3 : vector<8xf32> to vector<8x1xf32>
    %cst_5 = arith.constant 2.560000e+02 : f32
    %5 = vector.broadcast %cst_5 : f32 to vector<8x1xf32>
    %6 = arith.divf %4, %5 : vector<8x1xf32>
    %7 = vector.broadcast %6 : vector<8x1xf32> to vector<8x256xf32>
    %8 = arith.subf %0, %7 : vector<8x256xf32>
    %9 = arith.mulf %8, %8 : vector<8x256xf32>
    %cst_6 = arith.constant dense<0.000000e+00> : vector<8xf32>
    %10 = vector.multi_reduction <add>, %9, %cst_6 [1] : vector<8x256xf32> to vector<8xf32>
    %11 = vector.shape_cast %10 : vector<8xf32> to vector<8x1xf32>
    %cst_7 = arith.constant 2.560000e+02 : f32
    %12 = vector.broadcast %cst_7 : f32 to vector<8x1xf32>
    %13 = arith.divf %11, %12 : vector<8x1xf32>
    %14 = vector.broadcast %6 : vector<8x1xf32> to vector<8x256xf32>
    %15 = arith.subf %0, %14 : vector<8x256xf32>
    %cst_8 = arith.constant 9.99999974E-6 : f32
    %16 = vector.broadcast %cst_8 : f32 to vector<8x1xf32>
    %17 = arith.addf %13, %16 : vector<8x1xf32>
    %18 = math.rsqrt %17 : vector<8x1xf32>
    %19 = vector.broadcast %18 : vector<8x1xf32> to vector<8x256xf32>
    %20 = arith.mulf %15, %19 : vector<8x256xf32>
    %21 = vector.broadcast %1 : vector<1x256xf32> to vector<8x256xf32>
    %22 = arith.mulf %20, %21 : vector<8x256xf32>
    %23 = vector.broadcast %2 : vector<1x256xf32> to vector<8x256xf32>
    %24 = arith.addf %22, %23 : vector<8x256xf32>
    %c0_9 = arith.constant 0 : index
    %c0_10 = arith.constant 0 : index
    %25 = vector.load %arg4[%c0_9, %c0_10] : memref<8x256xf32, #tpu.memory_space<vmem>>, vector<8x256xf32>
    %26 = arith.addf %24, %25 : vector<8x256xf32>
    %c0_11 = arith.constant 0 : index
    %c0_12 = arith.constant 0 : index
    %27 = vector.load %arg9[%c0_11, %c0_12] : memref<8x256xf32, #tpu.memory_space<vmem>>, vector<8x256xf32>
    tpu.vector_store %arg9[%c0_11, %c0_12], %26 {strides = array<i32>} : memref<8x256xf32, #tpu.memory_space<vmem>>, vector<8x256xf32>,
    %28 = arith.truncf %26 : vector<8x256xf32> to vector<8x256xbf16>
    %c0_13 = arith.constant 0 : index
    %c0_14 = arith.constant 0 : index
    %29 = vector.load %arg5[%c0_13, %c0_14] : memref<256x256xbf16, #tpu.memory_space<vmem>>, vector<256x256xbf16>
    %cst_15 = arith.constant dense<0.000000e+00> : vector<8x256xf32>
    %30 = tpu.matmul %28, %29, %cst_15 {dimension_numbers = #tpu.dot_dimension_numbers<[1], [0], [0], [1], [0, 0, 1, 1], [], []>} : vector<8x256xbf16>, vector<256x256xbf16>, vector<8x256xf32> -> vector<8x256xf32>
    %c0_16 = arith.constant 0 : index
    %c0_17 = arith.constant 0 : index
    %31 = vector.load %arg6[%c0_16, %c0_17] : memref<1x256xf32, #tpu.memory_space<vmem>>, vector<1x256xf32>
    %32 = vector.broadcast %31 : vector<1x256xf32> to vector<8x256xf32>
    %33 = arith.addf %30, %32 : vector<8x256xf32>
    %c0_18 = arith.constant 0 : index
    %c0_19 = arith.constant 0 : index
    %34 = vector.load %arg7[%c0_18, %c0_19] : memref<1x256xf32, #tpu.memory_space<vmem>>, vector<1x256xf32>
    %c0_20 = arith.constant 0 : index
    %c0_21 = arith.constant 0 : index
    %35 = vector.load %arg8[%c0_20, %c0_21] : memref<1x256xf32, #tpu.memory_space<vmem>>, vector<1x256xf32>
    %cst_22 = arith.constant dense<0.000000e+00> : vector<8xf32>
    %36 = vector.multi_reduction <add>, %33, %cst_22 [1] : vector<8x256xf32> to vector<8xf32>
    %37 = vector.shape_cast %36 : vector<8xf32> to vector<8x1xf32>
    %cst_23 = arith.constant 2.560000e+02 : f32
    %38 = vector.broadcast %cst_23 : f32 to vector<8x1xf32>
    %39 = arith.divf %37, %38 : vector<8x1xf32>
    %40 = vector.broadcast %39 : vector<8x1xf32> to vector<8x256xf32>
    %41 = arith.subf %33, %40 : vector<8x256xf32>
    %42 = arith.mulf %41, %41 : vector<8x256xf32>
    %cst_24 = arith.constant dense<0.000000e+00> : vector<8xf32>
    %43 = vector.multi_reduction <add>, %42, %cst_24 [1] : vector<8x256xf32> to vector<8xf32>
    %44 = vector.shape_cast %43 : vector<8xf32> to vector<8x1xf32>
    %cst_25 = arith.constant 2.560000e+02 : f32
    %45 = vector.broadcast %cst_25 : f32 to vector<8x1xf32>
    %46 = arith.divf %44, %45 : vector<8x1xf32>
    %47 = vector.broadcast %39 : vector<8x1xf32> to vector<8x256xf32>
    %48 = arith.subf %33, %47 : vector<8x256xf32>
    %cst_26 = arith.constant 9.99999974E-6 : f32
    %49 = vector.broadcast %cst_26 : f32 to vector<8x1xf32>
    %50 = arith.addf %46, %49 : vector<8x1xf32>
    %51 = math.rsqrt %50 : vector<8x1xf32>
    %52 = vector.broadcast %51 : vector<8x1xf32> to vector<8x256xf32>
    %53 = arith.mulf %48, %52 : vector<8x256xf32>
    %54 = vector.broadcast %34 : vector<1x256xf32> to vector<8x256xf32>
    %55 = arith.mulf %53, %54 : vector<8x256xf32>
    %56 = vector.broadcast %35 : vector<1x256xf32> to vector<8x256xf32>
    %57 = arith.addf %55, %56 : vector<8x256xf32>
    %c0_27 = arith.constant 0 : index
    %c0_28 = arith.constant 0 : index
    %58 = vector.load %arg10[%c0_27, %c0_28] : memref<8x256xf32, #tpu.memory_space<vmem>>, vector<8x256xf32>
    tpu.vector_store %arg10[%c0_27, %c0_28], %57 {strides = array<i32>} : memref<8x256xf32, #tpu.memory_space<vmem>>, vector<8x256xf32>,
    return
  }
  func.func @transform_0(%arg0: i32) -> (i32, i32) {
    %c0_i32 = arith.constant 0 : i32
    %c0_i32_0 = arith.constant 0 : i32
    %c0_i32_1 = arith.constant 0 : i32
    return %c0_i32, %c0_i32_0 : i32, i32
  }
  func.func @transform_1(%arg0: i32) -> (i32, i32) {
    %c0_i32 = arith.constant 0 : i32
    %c0_i32_0 = arith.constant 0 : i32
    %c0_i32_1 = arith.constant 0 : i32
    return %c0_i32, %c0_i32_0 : i32, i32
  }
  func.func @transform_2(%arg0: i32) -> (i32, i32) {
    %c0_i32 = arith.constant 0 : i32
    %c0_i32_0 = arith.constant 0 : i32
    %c0_i32_1 = arith.constant 0 : i32
    return %c0_i32, %c0_i32_0 : i32, i32
  }
  func.func @transform_3(%arg0: i32) -> (i32, i32) {
    %c0_i32 = arith.constant 0 : i32
    %c0_i32_0 = arith.constant 0 : i32
    %c0_i32_1 = arith.constant 0 : i32
    return %c0_i32, %c0_i32_0 : i32, i32
  }
  func.func @transform_4(%arg0: i32) -> (i32, i32) {
    %c0_i32 = arith.constant 0 : i32
    %c0_i32_0 = arith.constant 0 : i32
    %c0_i32_1 = arith.constant 0 : i32
    return %c0_i32, %c0_i32_0 : i32, i32
  }
  func.func @transform_5(%arg0: i32) -> (i32, i32) {
    %c0_i32 = arith.constant 0 : i32
    %c0_i32_0 = arith.constant 0 : i32
    %c0_i32_1 = arith.constant 0 : i32
    return %c0_i32, %c0_i32_0 : i32, i32
  }
  func.func @transform_6(%arg0: i32) -> (i32, i32) {
    %c0_i32 = arith.constant 0 : i32
    %c0_i32_0 = arith.constant 0 : i32
    %c0_i32_1 = arith.constant 0 : i32
    return %c0_i32, %c0_i32_0 : i32, i32
  }
  func.func @transform_7(%arg0: i32) -> (i32, i32) {
    %c0_i32 = arith.constant 0 : i32
    %c0_i32_0 = arith.constant 0 : i32
    %c0_i32_1 = arith.constant 0 : i32
    return %c0_i32, %c0_i32_0 : i32, i32
  }
  func.func @transform_8(%arg0: i32) -> (i32, i32) {
    %c0_i32 = arith.constant 0 : i32
    %c0_i32_0 = arith.constant 0 : i32
    %c0_i32_1 = arith.constant 0 : i32
    return %c0_i32, %c0_i32_0 : i32, i32
  }
  func.func @transform_9(%arg0: i32) -> (i32, i32) {
    %c0_i32 = arith.constant 0 : i32
    %c0_i32_0 = arith.constant 0 : i32
    %c0_i32_1 = arith.constant 0 : i32
    return %c0_i32, %c0_i32_0 : i32, i32
  }
}

module attributes {stable_mosaic.version = 11 : i64} {
  func.func @kernel(%arg0: i32, %arg1: memref<1x4x256xf32, #tpu.memory_space<vmem>>, %arg2: memref<4x4xf32, #tpu.memory_space<vmem>>, %arg3: memref<256x768xbf16, #tpu.memory_space<vmem>>, %arg4: memref<1x768xf32, #tpu.memory_space<vmem>>, %arg5: memref<256x256xbf16, #tpu.memory_space<vmem>>, %arg6: memref<1x256xf32, #tpu.memory_space<vmem>>, %arg7: memref<1x256xf32, #tpu.memory_space<vmem>>, %arg8: memref<1x256xf32, #tpu.memory_space<vmem>>, %arg9: memref<1x256xf32, #tpu.memory_space<vmem>>, %arg10: memref<1x256xf32, #tpu.memory_space<vmem>>, %arg11: memref<256x512xbf16, #tpu.memory_space<vmem>>, %arg12: memref<1x512xf32, #tpu.memory_space<vmem>>, %arg13: memref<512x256xbf16, #tpu.memory_space<vmem>>, %arg14: memref<1x256xf32, #tpu.memory_space<vmem>>, %arg15: memref<1x4x256xf32, #tpu.memory_space<vmem>>) attributes {dimension_semantics = [#tpu.dimension_semantics<parallel>], iteration_bounds = array<i64: 2>, scalar_prefetch = 0 : i64, scratch_operands = 0 : i64, tpu.core_type = #tpu.core_type<tc>, window_params = [{transform_indices = @transform_0, window_bounds = array<i64: 1, 4, 256>}, {pipeline_mode = #tpu.pipeline_mode<synchronous>, transform_indices = @transform_1, window_bounds = array<i64: 4, 4>}, {pipeline_mode = #tpu.pipeline_mode<synchronous>, transform_indices = @transform_2, window_bounds = array<i64: 256, 768>}, {pipeline_mode = #tpu.pipeline_mode<synchronous>, transform_indices = @transform_3, window_bounds = array<i64: 1, 768>}, {pipeline_mode = #tpu.pipeline_mode<synchronous>, transform_indices = @transform_4, window_bounds = array<i64: 256, 256>}, {pipeline_mode = #tpu.pipeline_mode<synchronous>, transform_indices = @transform_5, window_bounds = array<i64: 1, 256>}, {pipeline_mode = #tpu.pipeline_mode<synchronous>, transform_indices = @transform_6, window_bounds = array<i64: 1, 256>}, {pipeline_mode = #tpu.pipeline_mode<synchronous>, transform_indices = @transform_7, window_bounds = array<i64: 1, 256>}, {pipeline_mode = #tpu.pipeline_mode<synchronous>, transform_indices = @transform_8, window_bounds = array<i64: 1, 256>}, {pipeline_mode = #tpu.pipeline_mode<synchronous>, transform_indices = @transform_9, window_bounds = array<i64: 1, 256>}, {pipeline_mode = #tpu.pipeline_mode<synchronous>, transform_indices = @transform_10, window_bounds = array<i64: 256, 512>}, {pipeline_mode = #tpu.pipeline_mode<synchronous>, transform_indices = @transform_11, window_bounds = array<i64: 1, 512>}, {pipeline_mode = #tpu.pipeline_mode<synchronous>, transform_indices = @transform_12, window_bounds = array<i64: 512, 256>}, {pipeline_mode = #tpu.pipeline_mode<synchronous>, transform_indices = @transform_13, window_bounds = array<i64: 1, 256>}, {transform_indices = @transform_14, window_bounds = array<i64: 1, 4, 256>}]} {
    %c0 = arith.constant 0 : index
    %c0_0 = arith.constant 0 : index
    %c0_1 = arith.constant 0 : index
    %0 = vector.load %arg1[%c0, %c0_0, %c0_1] : memref<1x4x256xf32, #tpu.memory_space<vmem>>, vector<1x4x256xf32>
    %1 = vector.shape_cast %0 : vector<1x4x256xf32> to vector<4x256xf32>
    %c0_2 = arith.constant 0 : index
    %c0_3 = arith.constant 0 : index
    %2 = vector.load %arg2[%c0_2, %c0_3] : memref<4x4xf32, #tpu.memory_space<vmem>>, vector<4x4xf32>
    %c0_4 = arith.constant 0 : index
    %c0_5 = arith.constant 0 : index
    %3 = vector.load %arg5[%c0_4, %c0_5] : memref<256x256xbf16, #tpu.memory_space<vmem>>, vector<256x256xbf16>
    %c0_6 = arith.constant 0 : index
    %c0_7 = arith.constant 0 : index
    %4 = vector.load %arg7[%c0_6, %c0_7] : memref<1x256xf32, #tpu.memory_space<vmem>>, vector<1x256xf32>
    %c0_8 = arith.constant 0 : index
    %c0_9 = arith.constant 0 : index
    %5 = vector.load %arg8[%c0_8, %c0_9] : memref<1x256xf32, #tpu.memory_space<vmem>>, vector<1x256xf32>
    %cst = arith.constant dense<0.000000e+00> : vector<4xf32>
    %6 = vector.multi_reduction <add>, %1, %cst [1] : vector<4x256xf32> to vector<4xf32>
    %7 = vector.shape_cast %6 : vector<4xf32> to vector<4x1xf32>
    %cst_10 = arith.constant 2.560000e+02 : f32
    %8 = vector.broadcast %cst_10 : f32 to vector<4x1xf32>
    %9 = arith.divf %7, %8 : vector<4x1xf32>
    %10 = vector.broadcast %9 : vector<4x1xf32> to vector<4x256xf32>
    %11 = arith.subf %1, %10 : vector<4x256xf32>
    %12 = arith.mulf %11, %11 : vector<4x256xf32>
    %cst_11 = arith.constant dense<0.000000e+00> : vector<4xf32>
    %13 = vector.multi_reduction <add>, %12, %cst_11 [1] : vector<4x256xf32> to vector<4xf32>
    %14 = vector.shape_cast %13 : vector<4xf32> to vector<4x1xf32>
    %cst_12 = arith.constant 2.560000e+02 : f32
    %15 = vector.broadcast %cst_12 : f32 to vector<4x1xf32>
    %16 = arith.divf %14, %15 : vector<4x1xf32>
    %17 = vector.broadcast %9 : vector<4x1xf32> to vector<4x256xf32>
    %18 = arith.subf %1, %17 : vector<4x256xf32>
    %cst_13 = arith.constant 9.99999974E-6 : f32
    %19 = vector.broadcast %cst_13 : f32 to vector<4x1xf32>
    %20 = arith.addf %16, %19 : vector<4x1xf32>
    %21 = math.rsqrt %20 : vector<4x1xf32>
    %22 = vector.broadcast %21 : vector<4x1xf32> to vector<4x256xf32>
    %23 = arith.mulf %18, %22 : vector<4x256xf32>
    %24 = vector.broadcast %4 : vector<1x256xf32> to vector<4x256xf32>
    %25 = arith.mulf %23, %24 : vector<4x256xf32>
    %26 = vector.broadcast %5 : vector<1x256xf32> to vector<4x256xf32>
    %27 = arith.addf %25, %26 : vector<4x256xf32>
    %28 = arith.truncf %27 : vector<4x256xf32> to vector<4x256xbf16>
    %c0_14 = arith.constant 0 : index
    %c0_15 = arith.constant 0 : index
    %29 = vector.load %arg3[%c0_14, %c0_15] : memref<256x768xbf16, #tpu.memory_space<vmem>>, vector<256x768xbf16>
    %cst_16 = arith.constant dense<0.000000e+00> : vector<4x768xf32>
    %30 = tpu.matmul %28, %29, %cst_16 {dimension_numbers = #tpu.dot_dimension_numbers<[1], [0], [0], [1], [0, 0, 1, 1], [], []>} : vector<4x256xbf16>, vector<256x768xbf16>, vector<4x768xf32> -> vector<4x768xf32>
    %c0_17 = arith.constant 0 : index
    %c0_18 = arith.constant 0 : index
    %31 = vector.load %arg4[%c0_17, %c0_18] : memref<1x768xf32, #tpu.memory_space<vmem>>, vector<1x768xf32>
    %32 = vector.broadcast %31 : vector<1x768xf32> to vector<4x768xf32>
    %33 = arith.addf %30, %32 : vector<4x768xf32>
    %cst_19 = arith.constant 0.000000e+00 : f32
    %34 = vector.broadcast %cst_19 : f32 to vector<4x256xf32>
    %35 = vector.extract_strided_slice %33 {offsets = [0, 0], sizes = [4, 128], strides = [1, 1]} : vector<4x768xf32> to vector<4x128xf32>
    %36 = vector.extract_strided_slice %33 {offsets = [0, 256], sizes = [4, 128], strides = [1, 1]} : vector<4x768xf32> to vector<4x128xf32>
    %37 = vector.extract_strided_slice %33 {offsets = [0, 512], sizes = [4, 128], strides = [1, 1]} : vector<4x768xf32> to vector<4x128xf32>
    %38 = arith.truncf %35 : vector<4x128xf32> to vector<4x128xbf16>
    %39 = arith.truncf %36 : vector<4x128xf32> to vector<4x128xbf16>
    %cst_20 = arith.constant dense<0.000000e+00> : vector<4x4xf32>
    %40 = tpu.matmul %38, %39, %cst_20 {dimension_numbers = #tpu.dot_dimension_numbers<[1], [1], [0], [0], [0, 0, 1, 0], [], []>} : vector<4x128xbf16>, vector<4x128xbf16>, vector<4x4xf32> -> vector<4x4xf32>
    %cst_21 = arith.constant 0.0883883461 : f32
    %41 = vector.broadcast %cst_21 : f32 to vector<4x4xf32>
    %42 = arith.mulf %40, %41 : vector<4x4xf32>
    %43 = arith.addf %42, %2 : vector<4x4xf32>
    %cst_22 = arith.constant dense<0xFF800000> : vector<4xf32>
    %44 = vector.multi_reduction <maximumf>, %43, %cst_22 [1] : vector<4x4xf32> to vector<4xf32>
    %45 = vector.shape_cast %44 : vector<4xf32> to vector<4x1xf32>
    %46 = vector.broadcast %45 : vector<4x1xf32> to vector<4x4xf32>
    %47 = arith.subf %43, %46 : vector<4x4xf32>
    %48 = math.exp %47 : vector<4x4xf32>
    %cst_23 = arith.constant dense<0.000000e+00> : vector<4xf32>
    %49 = vector.multi_reduction <add>, %48, %cst_23 [1] : vector<4x4xf32> to vector<4xf32>
    %50 = vector.shape_cast %49 : vector<4xf32> to vector<4x1xf32>
    %51 = tpu.reciprocal %50 {approx = true} : vector<4x1xf32> -> vector<4x1xf32>
    %52 = vector.broadcast %51 : vector<4x1xf32> to vector<4x4xf32>
    %53 = arith.mulf %48, %52 : vector<4x4xf32>
    %54 = arith.truncf %53 : vector<4x4xf32> to vector<4x4xbf16>
    %55 = arith.truncf %37 : vector<4x128xf32> to vector<4x128xbf16>
    %cst_24 = arith.constant dense<0.000000e+00> : vector<4x128xf32>
    %56 = tpu.matmul %54, %55, %cst_24 {dimension_numbers = #tpu.dot_dimension_numbers<[1], [0], [0], [1], [0, 0, 1, 1], [], []>} : vector<4x4xbf16>, vector<4x128xbf16>, vector<4x128xf32> -> vector<4x128xf32>
    %57 = arith.truncf %56 : vector<4x128xf32> to vector<4x128xbf16>
    %58 = vector.extract_strided_slice %3 {offsets = [0, 0], sizes = [128, 256], strides = [1, 1]} : vector<256x256xbf16> to vector<128x256xbf16>
    %cst_25 = arith.constant dense<0.000000e+00> : vector<4x256xf32>
    %59 = tpu.matmul %57, %58, %cst_25 {dimension_numbers = #tpu.dot_dimension_numbers<[1], [0], [0], [1], [0, 0, 1, 1], [], []>} : vector<4x128xbf16>, vector<128x256xbf16>, vector<4x256xf32> -> vector<4x256xf32>
    %60 = arith.addf %34, %59 : vector<4x256xf32>
    %61 = vector.extract_strided_slice %33 {offsets = [0, 128], sizes = [4, 128], strides = [1, 1]} : vector<4x768xf32> to vector<4x128xf32>
    %62 = vector.extract_strided_slice %33 {offsets = [0, 384], sizes = [4, 128], strides = [1, 1]} : vector<4x768xf32> to vector<4x128xf32>
    %63 = vector.extract_strided_slice %33 {offsets = [0, 640], sizes = [4, 128], strides = [1, 1]} : vector<4x768xf32> to vector<4x128xf32>
    %64 = arith.truncf %61 : vector<4x128xf32> to vector<4x128xbf16>
    %65 = arith.truncf %62 : vector<4x128xf32> to vector<4x128xbf16>
    %cst_26 = arith.constant dense<0.000000e+00> : vector<4x4xf32>
    %66 = tpu.matmul %64, %65, %cst_26 {dimension_numbers = #tpu.dot_dimension_numbers<[1], [1], [0], [0], [0, 0, 1, 0], [], []>} : vector<4x128xbf16>, vector<4x128xbf16>, vector<4x4xf32> -> vector<4x4xf32>
    %cst_27 = arith.constant 0.0883883461 : f32
    %67 = vector.broadcast %cst_27 : f32 to vector<4x4xf32>
    %68 = arith.mulf %66, %67 : vector<4x4xf32>
    %69 = arith.addf %68, %2 : vector<4x4xf32>
    %cst_28 = arith.constant dense<0xFF800000> : vector<4xf32>
    %70 = vector.multi_reduction <maximumf>, %69, %cst_28 [1] : vector<4x4xf32> to vector<4xf32>
    %71 = vector.shape_cast %70 : vector<4xf32> to vector<4x1xf32>
    %72 = vector.broadcast %71 : vector<4x1xf32> to vector<4x4xf32>
    %73 = arith.subf %69, %72 : vector<4x4xf32>
    %74 = math.exp %73 : vector<4x4xf32>
    %cst_29 = arith.constant dense<0.000000e+00> : vector<4xf32>
    %75 = vector.multi_reduction <add>, %74, %cst_29 [1] : vector<4x4xf32> to vector<4xf32>
    %76 = vector.shape_cast %75 : vector<4xf32> to vector<4x1xf32>
    %77 = tpu.reciprocal %76 {approx = true} : vector<4x1xf32> -> vector<4x1xf32>
    %78 = vector.broadcast %77 : vector<4x1xf32> to vector<4x4xf32>
    %79 = arith.mulf %74, %78 : vector<4x4xf32>
    %80 = arith.truncf %79 : vector<4x4xf32> to vector<4x4xbf16>
    %81 = arith.truncf %63 : vector<4x128xf32> to vector<4x128xbf16>
    %cst_30 = arith.constant dense<0.000000e+00> : vector<4x128xf32>
    %82 = tpu.matmul %80, %81, %cst_30 {dimension_numbers = #tpu.dot_dimension_numbers<[1], [0], [0], [1], [0, 0, 1, 1], [], []>} : vector<4x4xbf16>, vector<4x128xbf16>, vector<4x128xf32> -> vector<4x128xf32>
    %83 = arith.truncf %82 : vector<4x128xf32> to vector<4x128xbf16>
    %84 = vector.extract_strided_slice %3 {offsets = [128, 0], sizes = [128, 256], strides = [1, 1]} : vector<256x256xbf16> to vector<128x256xbf16>
    %cst_31 = arith.constant dense<0.000000e+00> : vector<4x256xf32>
    %85 = tpu.matmul %83, %84, %cst_31 {dimension_numbers = #tpu.dot_dimension_numbers<[1], [0], [0], [1], [0, 0, 1, 1], [], []>} : vector<4x128xbf16>, vector<128x256xbf16>, vector<4x256xf32> -> vector<4x256xf32>
    %86 = arith.addf %60, %85 : vector<4x256xf32>
    %c0_32 = arith.constant 0 : index
    %c0_33 = arith.constant 0 : index
    %87 = vector.load %arg6[%c0_32, %c0_33] : memref<1x256xf32, #tpu.memory_space<vmem>>, vector<1x256xf32>
    %88 = vector.broadcast %87 : vector<1x256xf32> to vector<4x256xf32>
    %89 = arith.addf %86, %88 : vector<4x256xf32>
    %90 = arith.addf %1, %89 : vector<4x256xf32>
    %c0_34 = arith.constant 0 : index
    %c0_35 = arith.constant 0 : index
    %91 = vector.load %arg9[%c0_34, %c0_35] : memref<1x256xf32, #tpu.memory_space<vmem>>, vector<1x256xf32>
    %c0_36 = arith.constant 0 : index
    %c0_37 = arith.constant 0 : index
    %92 = vector.load %arg10[%c0_36, %c0_37] : memref<1x256xf32, #tpu.memory_space<vmem>>, vector<1x256xf32>
    %cst_38 = arith.constant dense<0.000000e+00> : vector<4xf32>
    %93 = vector.multi_reduction <add>, %90, %cst_38 [1] : vector<4x256xf32> to vector<4xf32>
    %94 = vector.shape_cast %93 : vector<4xf32> to vector<4x1xf32>
    %cst_39 = arith.constant 2.560000e+02 : f32
    %95 = vector.broadcast %cst_39 : f32 to vector<4x1xf32>
    %96 = arith.divf %94, %95 : vector<4x1xf32>
    %97 = vector.broadcast %96 : vector<4x1xf32> to vector<4x256xf32>
    %98 = arith.subf %90, %97 : vector<4x256xf32>
    %99 = arith.mulf %98, %98 : vector<4x256xf32>
    %cst_40 = arith.constant dense<0.000000e+00> : vector<4xf32>
    %100 = vector.multi_reduction <add>, %99, %cst_40 [1] : vector<4x256xf32> to vector<4xf32>
    %101 = vector.shape_cast %100 : vector<4xf32> to vector<4x1xf32>
    %cst_41 = arith.constant 2.560000e+02 : f32
    %102 = vector.broadcast %cst_41 : f32 to vector<4x1xf32>
    %103 = arith.divf %101, %102 : vector<4x1xf32>
    %104 = vector.broadcast %96 : vector<4x1xf32> to vector<4x256xf32>
    %105 = arith.subf %90, %104 : vector<4x256xf32>
    %cst_42 = arith.constant 9.99999974E-6 : f32
    %106 = vector.broadcast %cst_42 : f32 to vector<4x1xf32>
    %107 = arith.addf %103, %106 : vector<4x1xf32>
    %108 = math.rsqrt %107 : vector<4x1xf32>
    %109 = vector.broadcast %108 : vector<4x1xf32> to vector<4x256xf32>
    %110 = arith.mulf %105, %109 : vector<4x256xf32>
    %111 = vector.broadcast %91 : vector<1x256xf32> to vector<4x256xf32>
    %112 = arith.mulf %110, %111 : vector<4x256xf32>
    %113 = vector.broadcast %92 : vector<1x256xf32> to vector<4x256xf32>
    %114 = arith.addf %112, %113 : vector<4x256xf32>
    %115 = arith.truncf %114 : vector<4x256xf32> to vector<4x256xbf16>
    %c0_43 = arith.constant 0 : index
    %c0_44 = arith.constant 0 : index
    %116 = vector.load %arg11[%c0_43, %c0_44] : memref<256x512xbf16, #tpu.memory_space<vmem>>, vector<256x512xbf16>
    %cst_45 = arith.constant dense<0.000000e+00> : vector<4x512xf32>
    %117 = tpu.matmul %115, %116, %cst_45 {dimension_numbers = #tpu.dot_dimension_numbers<[1], [0], [0], [1], [0, 0, 1, 1], [], []>} : vector<4x256xbf16>, vector<256x512xbf16>, vector<4x512xf32> -> vector<4x512xf32>
    %c0_46 = arith.constant 0 : index
    %c0_47 = arith.constant 0 : index
    %118 = vector.load %arg12[%c0_46, %c0_47] : memref<1x512xf32, #tpu.memory_space<vmem>>, vector<1x512xf32>
    %119 = vector.broadcast %118 : vector<1x512xf32> to vector<4x512xf32>
    %120 = arith.addf %117, %119 : vector<4x512xf32>
    %cst_48 = arith.constant 5.000000e-01 : f32
    %121 = vector.broadcast %cst_48 : f32 to vector<4x512xf32>
    %122 = arith.mulf %121, %120 : vector<4x512xf32>
    %cst_49 = arith.constant 4.471500e-02 : f32
    %123 = vector.broadcast %cst_49 : f32 to vector<4x512xf32>
    %124 = arith.mulf %123, %120 : vector<4x512xf32>
    %125 = arith.mulf %124, %120 : vector<4x512xf32>
    %126 = arith.mulf %125, %120 : vector<4x512xf32>
    %127 = arith.addf %120, %126 : vector<4x512xf32>
    %cst_50 = arith.constant 0.797884583 : f32
    %128 = vector.broadcast %cst_50 : f32 to vector<4x512xf32>
    %129 = arith.mulf %128, %127 : vector<4x512xf32>
    %130 = math.tanh %129 : vector<4x512xf32>
    %cst_51 = arith.constant 1.000000e+00 : f32
    %131 = vector.broadcast %cst_51 : f32 to vector<4x512xf32>
    %132 = arith.addf %131, %130 : vector<4x512xf32>
    %133 = arith.mulf %122, %132 : vector<4x512xf32>
    %134 = arith.truncf %133 : vector<4x512xf32> to vector<4x512xbf16>
    %c0_52 = arith.constant 0 : index
    %c0_53 = arith.constant 0 : index
    %135 = vector.load %arg13[%c0_52, %c0_53] : memref<512x256xbf16, #tpu.memory_space<vmem>>, vector<512x256xbf16>
    %cst_54 = arith.constant dense<0.000000e+00> : vector<4x256xf32>
    %136 = tpu.matmul %134, %135, %cst_54 {dimension_numbers = #tpu.dot_dimension_numbers<[1], [0], [0], [1], [0, 0, 1, 1], [], []>} : vector<4x512xbf16>, vector<512x256xbf16>, vector<4x256xf32> -> vector<4x256xf32>
    %c0_55 = arith.constant 0 : index
    %c0_56 = arith.constant 0 : index
    %137 = vector.load %arg14[%c0_55, %c0_56] : memref<1x256xf32, #tpu.memory_space<vmem>>, vector<1x256xf32>
    %138 = vector.broadcast %137 : vector<1x256xf32> to vector<4x256xf32>
    %139 = arith.addf %136, %138 : vector<4x256xf32>
    %140 = arith.addf %90, %139 : vector<4x256xf32>
    %141 = vector.shape_cast %140 : vector<4x256xf32> to vector<1x4x256xf32>
    %c0_57 = arith.constant 0 : index
    %c0_58 = arith.constant 0 : index
    %c0_59 = arith.constant 0 : index
    %142 = vector.load %arg15[%c0_57, %c0_58, %c0_59] : memref<1x4x256xf32, #tpu.memory_space<vmem>>, vector<1x4x256xf32>
    tpu.vector_store %arg15[%c0_57, %c0_58, %c0_59], %141 {strides = array<i32>} : memref<1x4x256xf32, #tpu.memory_space<vmem>>, vector<1x4x256xf32>,
    return
  }
  func.func @transform_0(%arg0: i32) -> (i32, i32, i32) {
    %c0_i32 = arith.constant 0 : i32
    %c0_i32_0 = arith.constant 0 : i32
    %c0_i32_1 = arith.constant 0 : i32
    return %arg0, %c0_i32, %c0_i32_0 : i32, i32, i32
  }
  func.func @transform_1(%arg0: i32) -> (i32, i32) {
    %c0_i32 = arith.constant 0 : i32
    %c0_i32_0 = arith.constant 0 : i32
    %c0_i32_1 = arith.constant 0 : i32
    return %c0_i32, %c0_i32_0 : i32, i32
  }
  func.func @transform_2(%arg0: i32) -> (i32, i32) {
    %c0_i32 = arith.constant 0 : i32
    %c0_i32_0 = arith.constant 0 : i32
    %c0_i32_1 = arith.constant 0 : i32
    return %c0_i32, %c0_i32_0 : i32, i32
  }
  func.func @transform_3(%arg0: i32) -> (i32, i32) {
    %c0_i32 = arith.constant 0 : i32
    %c0_i32_0 = arith.constant 0 : i32
    %c0_i32_1 = arith.constant 0 : i32
    return %c0_i32, %c0_i32_0 : i32, i32
  }
  func.func @transform_4(%arg0: i32) -> (i32, i32) {
    %c0_i32 = arith.constant 0 : i32
    %c0_i32_0 = arith.constant 0 : i32
    %c0_i32_1 = arith.constant 0 : i32
    return %c0_i32, %c0_i32_0 : i32, i32
  }
  func.func @transform_5(%arg0: i32) -> (i32, i32) {
    %c0_i32 = arith.constant 0 : i32
    %c0_i32_0 = arith.constant 0 : i32
    %c0_i32_1 = arith.constant 0 : i32
    return %c0_i32, %c0_i32_0 : i32, i32
  }
  func.func @transform_6(%arg0: i32) -> (i32, i32) {
    %c0_i32 = arith.constant 0 : i32
    %c0_i32_0 = arith.constant 0 : i32
    %c0_i32_1 = arith.constant 0 : i32
    return %c0_i32, %c0_i32_0 : i32, i32
  }
  func.func @transform_7(%arg0: i32) -> (i32, i32) {
    %c0_i32 = arith.constant 0 : i32
    %c0_i32_0 = arith.constant 0 : i32
    %c0_i32_1 = arith.constant 0 : i32
    return %c0_i32, %c0_i32_0 : i32, i32
  }
  func.func @transform_8(%arg0: i32) -> (i32, i32) {
    %c0_i32 = arith.constant 0 : i32
    %c0_i32_0 = arith.constant 0 : i32
    %c0_i32_1 = arith.constant 0 : i32
    return %c0_i32, %c0_i32_0 : i32, i32
  }
  func.func @transform_9(%arg0: i32) -> (i32, i32) {
    %c0_i32 = arith.constant 0 : i32
    %c0_i32_0 = arith.constant 0 : i32
    %c0_i32_1 = arith.constant 0 : i32
    return %c0_i32, %c0_i32_0 : i32, i32
  }
  func.func @transform_10(%arg0: i32) -> (i32, i32) {
    %c0_i32 = arith.constant 0 : i32
    %c0_i32_0 = arith.constant 0 : i32
    %c0_i32_1 = arith.constant 0 : i32
    return %c0_i32, %c0_i32_0 : i32, i32
  }
  func.func @transform_11(%arg0: i32) -> (i32, i32) {
    %c0_i32 = arith.constant 0 : i32
    %c0_i32_0 = arith.constant 0 : i32
    %c0_i32_1 = arith.constant 0 : i32
    return %c0_i32, %c0_i32_0 : i32, i32
  }
  func.func @transform_12(%arg0: i32) -> (i32, i32) {
    %c0_i32 = arith.constant 0 : i32
    %c0_i32_0 = arith.constant 0 : i32
    %c0_i32_1 = arith.constant 0 : i32
    return %c0_i32, %c0_i32_0 : i32, i32
  }
  func.func @transform_13(%arg0: i32) -> (i32, i32) {
    %c0_i32 = arith.constant 0 : i32
    %c0_i32_0 = arith.constant 0 : i32
    %c0_i32_1 = arith.constant 0 : i32
    return %c0_i32, %c0_i32_0 : i32, i32
  }
  func.func @transform_14(%arg0: i32) -> (i32, i32, i32) {
    %c0_i32 = arith.constant 0 : i32
    %c0_i32_0 = arith.constant 0 : i32
    %c0_i32_1 = arith.constant 0 : i32
    return %arg0, %c0_i32, %c0_i32_0 : i32, i32, i32
  }
}

</mosaic_0001>

<bundles_post_ra>
// kernel: encode_sample.4
= control target key start
LH: loop header
LB: loop body
LE: loop exit
PB: predicated region body
PF: predicated region fallthrough
CT: control target
= control target key end

     0   :  { %8 = vsyncpa [#allocation3], 0  ;;  %s329_s12 = smov [#allocation2]   ;;  %s379_s0 = inlined_call_operand.vmem [shape: f32[8,192], index: 0, kind: input, shape index: {}]   ;;  %s380_s1 = inlined_call_operand.hbm [shape: bf16[192,256], index: 1, kind: input, shape index: {}]   ;;  %s381_s2 = inlined_call_operand.vmem [shape: f32[1,256], index: 2, kind: input, shape index: {}]   ;;  %s382_s3 = inlined_call_operand.vmem [shape: f32[8,256], index: 3, kind: output, shape index: {}]  }
   0x1   :  { %s16_s13 = sshll.u32 %s329_s12, 4  ;;  %s305_s16 = scalar_lea.hbm %s380_s1, 3072  ;;  %s17_s13 = int_to_ptr.vmem [resolvable:$true] %s16_s13 }
   0x2   :  { %p306_p0 = scmp.ne.s32.totalorder %s380_s1, %s305_s16  ;;  %p309_p1 = scmp.lt.u32.totalorder %s305_s16, %s380_s1 }
   0x4   :  { %p311_p2 = pnand %p309_p1, %p306_p0 }
   0x6   :  { %314 = shalt.err (!%p311_p2)
}
   0x7   :  { %s315_s21 = scalar_lea.vmem %s17_s13, 3072  ;;  %p320_p4 = scmp.lt.s32.totalorder %s17_s13, %s17_s13 }
   0x8   :  { %p316_p3 = scmp.ne.s32.totalorder %s17_s13, %s315_s21  ;;  %p321_p5 = scmp.lt.s32.totalorder %s315_s21, %s315_s21 }
   0xa   :  { %p322_p6 = por %p321_p5, %p320_p4 }
   0xc   :  { %p323_p7 = pnand %p322_p6, %p316_p3 }
   0xe   :  { %326 = shalt.err (!%p323_p7)
}
   0xf   :  { %s330_s22 = smov 128   ;;  %s331_s23 = smov 8  }
  0x10   :  { %22 = dma.hbm_to_vmem [thread:$0]  %s380_s1, 3072, %s17_s13, [#allocation3], %s330_s22, %s330_s22, %s331_s23  }
  0x11   :  { %327 = dma.done.wait [#allocation3], 3072  }
  0x12   :  { %328 = vsyncadd [#allocation3], 4294964224  ;;  %v269_v0 = vld [vmem:[#allocation2 + $0x4] ss:$8 sps:$4 sm:$0xff]   ;;  %v271_v1 = vld [vmem:[#allocation2] ss:$8 sps:$4 sm:$0xff]   ;;  %v59_v28 = vlaneseq }
  0x13   :  { %193 = vmatprep.subr.bf16.mxu0 %v269_v0  ;;  %v272_v2 = vld [vmem:[#allocation2 + $0x14] ss:$8 sps:$4 sm:$0xff]   ;;  %v274_v3 = vld [vmem:[#allocation2 + $0x10] ss:$8 sps:$4 sm:$0xff]   ;;  %v275_v4 = vld [vmem:[#allocation2 + $0x24] ss:$8 sps:$4 sm:$0xff]  }
  0x14   :  { %194 = vmatpush1.bf16.msra.mxu0 %v271_v1  ;;  %v277_v5 = vld [vmem:[#allocation2 + $0x20] ss:$8 sps:$4 sm:$0xff]   ;;  %v278_v6 = vld [vmem:[#allocation2 + $0x34] ss:$8 sps:$4 sm:$0xff]   ;;  %v280_v7 = vld [vmem:[#allocation2 + $0x30] ss:$8 sps:$4 sm:$0xff]  }
  0x15   :  { %195 = vmatprep.subr.bf16.mxu0 %v272_v2  ;;  %v281_v8 = vld [vmem:[#allocation2 + $0x44] ss:$8 sps:$4 sm:$0xff]   ;;  %v283_v9 = vld [vmem:[#allocation2 + $0x40] ss:$8 sps:$4 sm:$0xff]   ;;  %v284_v10 = vld [vmem:[#allocation2 + $0x54] ss:$8 sps:$4 sm:$0xff]  }
  0x16   :  { %v30_v11 = vld [vmem:[%s379_s0 + $0x8] sm:$0xff]  ;;  %vm189_vm0 = vcmask 523264   ;;  %v286_v13 = vld [vmem:[#allocation2 + $0x50] ss:$8 sps:$4 sm:$0xff]   ;;  %v290_v16 = vld [vmem:[#allocation2 + $0x74] ss:$8 sps:$4 sm:$0xff]  }
  0x17   :  { %v32_v12 = vpack.c.bf16 %v30_v11, %v30_v11  ;;  %v287_v14 = vld [vmem:[#allocation2 + $0x64] ss:$8 sps:$4 sm:$0xff]   ;;  %v289_v15 = vld [vmem:[#allocation2 + $0x60] ss:$8 sps:$4 sm:$0xff]   ;;  %v292_v17 = vld [vmem:[#allocation2 + $0x70] ss:$8 sps:$4 sm:$0xff]  }
  0x18   :  { %196 = vmatpush1.bf16.msra.mxu0 %v274_v3  ;;  %v293_v18 = vld [vmem:[#allocation2 + $0x84] ss:$8 sps:$4 sm:$0xff]   ;;  %v295_v19 = vld [vmem:[#allocation2 + $0x80] ss:$8 sps:$4 sm:$0xff]   ;;  %v296_v20 = vld [vmem:[#allocation2 + $0x94] ss:$8 sps:$4 sm:$0xff]  }
  0x19   :  { %197 = vmatprep.subr.bf16.mxu0 %v275_v4  ;;  %265 = vmatprep.mubr.msk.bf16.mxu0 %vm189_vm0, %v32_v12  ;;  %v298_v21 = vld [vmem:[#allocation2 + $0x90] ss:$8 sps:$4 sm:$0xff]   ;;  %v299_v22 = vld [vmem:[#allocation2 + $0xa4] ss:$8 sps:$4 sm:$0xff]   ;;  %v301_v23 = vld [vmem:[#allocation2 + $0xa0] ss:$8 sps:$4 sm:$0xff]  }
  0x1a   :  { %v302_v24 = vld [vmem:[#allocation2 + $0xb4] ss:$8 sps:$4 sm:$0xff]   ;;  %v304_v25 = vld [vmem:[#allocation2 + $0xb0] ss:$8 sps:$4 sm:$0xff]   ;;  %v29_v26 = vld [vmem:[%s379_s0] sm:$0xff]  ;;  %v60_v29 = vshrl.u32 %v59_v28, 7 }
  0x1b   :  { %v31_v27 = vpack.c.bf16 %v29_v26, %v29_v26  ;;  %v57_v31 = vld [vmem:[%s381_s2] sm:$0x3] }
  0x1c   :  { %198 = vmatpush1.bf16.msra.mxu0 %v277_v5  ;;  %v61_v30 = vsub.s32 0, %v60_v29  ;;  %v65_v32 = vsub.s32 1, %v60_v29 }
  0x1d   :  { %199 = vmatprep.subr.bf16.mxu0 %v278_v6 }
  0x1e   :  { %v62_v33 = vrot.slane %v57_v31, %v61_v30  ;;  %v66_v34 = vrot.slane %v57_v31, %v65_v32 }
  0x20   :  { %200 = vmatpush1.bf16.msra.mxu0 %v280_v7 }
  0x21   :  { %201 = vmatprep.subr.bf16.mxu0 %v281_v8 }
  0x24   :  { %202 = vmatpush1.bf16.msra.mxu0 %v283_v9 }
  0x25   :  { %203 = vmatprep.subr.bf16.mxu0 %v284_v10 }
  0x28   :  { %204 = vmatpush1.bf16.msra.mxu0 %v286_v13 }
  0x29   :  { %205 = vmatprep.subr.bf16.mxu0 %v287_v14 }
  0x2c   :  { %206 = vmatpush1.bf16.msra.mxu0 %v289_v15 }
  0x2d   :  { %207 = vmatprep.subr.bf16.mxu0 %v290_v16 }
  0x30   :  { %208 = vmatpush1.bf16.msra.mxu0 %v292_v17 }
  0x31   :  { %209 = vmatprep.subr.bf16.mxu0 %v293_v18 }
  0x34   :  { %210 = vmatpush1.bf16.msra.mxu0 %v295_v19 }
  0x35   :  { %211 = vmatprep.subr.bf16.mxu0 %v296_v20 }
  0x38   :  { %212 = vmatpush1.bf16.msra.mxu0 %v298_v21 }
  0x39   :  { %213 = vmatprep.subr.bf16.mxu0 %v299_v22 }
  0x3c   :  { %214 = vmatpush1.bf16.msra.mxu0 %v301_v23 }
  0x3d   :  { %215 = vmatprep.subr.bf16.mxu0 %v302_v24 }
  0x40   :  { %216 = vmatpush1.bf16.msra.mxu0 %v304_v25 }
  0x43   :  { %226 = vmatmul.mubr.bf16.vlgmr.msra.gmra.mrb[0].mxu0 %v31_v27 }
 0x116   :  { %v227_v35 = vpop.f32.mrb[0].mxu0 }
 0x117   :  { %v228_v36 = vadd.f32 %v227_v35, %v62_v33  ;;  %v229_v37 = vpop.f32.mrb[1].mxu0 }
 0x118   :  { %v230_v38 = vadd.f32 %v229_v37, %v66_v34  ;;  %v231_v39 = vpop.f32.mrb[2].mxu0 }
 0x119   :  { %234 = vst [vmem:[%s382_s3] sm:$0xff] %v228_v36  ;;  %v232_v40 = vpop.f32.mrb[3].mxu0 }
 0x11a   :  { %235 = vst [vmem:[%s382_s3 + $0x8] sm:$0xff] %v230_v38 }
 0x11b   :  { %240 = vsyncpa [#allocation3], 1 }

// kernel: encode_sample.7
= control target key start
LH: loop header
LB: loop body
LE: loop exit
PB: predicated region body
PF: predicated region fallthrough
CT: control target
= control target key end

     0   :  { %s711_s0 = inlined_call_operand.vmem [shape: f32[8,256], index: 0, kind: input, shape index: {}]   ;;  %s712_s1 = inlined_call_operand.vmem [shape: f32[1,256], index: 1, kind: input, shape index: {}]   ;;  %s713_s2 = inlined_call_operand.vmem [shape: f32[1,256], index: 2, kind: input, shape index: {}]   ;;  %s714_s3 = inlined_call_operand.vmem [shape: f32[8,256], index: 3, kind: input, shape index: {}]   ;;  %s715_s4 = inlined_call_operand.vmem [shape: bf16[256,256], index: 4, kind: input, shape index: {}]   ;;  %s716_s5 = inlined_call_operand.vmem [shape: f32[1,256], index: 5, kind: input, shape index: {}]   ;;  %s717_s6 = inlined_call_operand.vmem [shape: f32[1,256], index: 6, kind: input, shape index: {}]   ;;  %s718_s7 = inlined_call_operand.vmem [shape: f32[1,256], index: 7, kind: input, shape index: {}]   ;;  %s719_s8 = inlined_call_operand.hbm [shape: f32[8,256], index: 8, kind: output, shape index: {0}]   ;;  %s720_s9 = inlined_call_operand.vmem [shape: f32[8,256], index: 9, kind: output, shape index: {1}]  }
   0x1   :  { %v32_v0 = vld [vmem:[%s711_s0] sm:$0xff]  ;;  %v33_v1 = vld [vmem:[%s711_s0 + $0x8] sm:$0xff] }
   0x2   :  { %v36_v2 = vadd.f32 %v33_v1, %v32_v0 }
   0x4   :  { %37 = vadd.xlane.f32.xlu0 %v36_v2 }
   0x5   :  { %15 = vsyncpa [#allocation3], 0  ;;  %v429_v3 = vld [vmem:[%s715_s4 + $0x4] ss:$8 sps:$4 sm:$0xff]   ;;  %v431_v4 = vld [vmem:[%s715_s4] ss:$8 sps:$4 sm:$0xff]   ;;  %v54_v44 = vlaneseq }
   0x6   :  { %v432_v5 = vld [vmem:[%s715_s4 + $0x14] ss:$8 sps:$4 sm:$0xff]   ;;  %291 = vmatprep.subr.bf16.mxu0 %v429_v3  ;;  %v434_v6 = vld [vmem:[%s715_s4 + $0x10] ss:$8 sps:$4 sm:$0xff]   ;;  %v435_v7 = vld [vmem:[%s715_s4 + $0x24] ss:$8 sps:$4 sm:$0xff]  }
   0x7   :  { %292 = vmatpush1.bf16.msra.mxu0 %v431_v4  ;;  %v437_v8 = vld [vmem:[%s715_s4 + $0x20] ss:$8 sps:$4 sm:$0xff]   ;;  %v438_v9 = vld [vmem:[%s715_s4 + $0x34] ss:$8 sps:$4 sm:$0xff]   ;;  %v440_v10 = vld [vmem:[%s715_s4 + $0x30] ss:$8 sps:$4 sm:$0xff]  }
   0x8   :  { %293 = vmatprep.subr.bf16.mxu0 %v432_v5  ;;  %v441_v11 = vld [vmem:[%s715_s4 + $0x44] ss:$8 sps:$4 sm:$0xff]   ;;  %v443_v12 = vld [vmem:[%s715_s4 + $0x40] ss:$8 sps:$4 sm:$0xff]   ;;  %v444_v13 = vld [vmem:[%s715_s4 + $0x54] ss:$8 sps:$4 sm:$0xff]  }
   0x9   :  { %v446_v14 = vld [vmem:[%s715_s4 + $0x50] ss:$8 sps:$4 sm:$0xff]   ;;  %v447_v15 = vld [vmem:[%s715_s4 + $0x64] ss:$8 sps:$4 sm:$0xff]   ;;  %v449_v16 = vld [vmem:[%s715_s4 + $0x60] ss:$8 sps:$4 sm:$0xff]  }
   0xa   :  { %v450_v17 = vld [vmem:[%s715_s4 + $0x74] ss:$8 sps:$4 sm:$0xff]   ;;  %v452_v18 = vld [vmem:[%s715_s4 + $0x70] ss:$8 sps:$4 sm:$0xff]   ;;  %v453_v19 = vld [vmem:[%s715_s4 + $0x84] ss:$8 sps:$4 sm:$0xff]  }
   0xb   :  { %294 = vmatpush1.bf16.msra.mxu0 %v434_v6  ;;  %v455_v20 = vld [vmem:[%s715_s4 + $0x80] ss:$8 sps:$4 sm:$0xff]   ;;  %v456_v21 = vld [vmem:[%s715_s4 + $0x94] ss:$8 sps:$4 sm:$0xff]   ;;  %v458_v22 = vld [vmem:[%s715_s4 + $0x90] ss:$8 sps:$4 sm:$0xff]  }
   0xc   :  { %295 = vmatprep.subr.bf16.mxu0 %v435_v7  ;;  %v459_v30 = vld [vmem:[%s715_s4 + $0xa4] ss:$8 sps:$4 sm:$0xff]   ;;  %v461_v31 = vld [vmem:[%s715_s4 + $0xa0] ss:$8 sps:$4 sm:$0xff]   ;;  %v462_v32 = vld [vmem:[%s715_s4 + $0xb4] ss:$8 sps:$4 sm:$0xff]  }
   0xd   :  { %v464_v33 = vld [vmem:[%s715_s4 + $0xb0] ss:$8 sps:$4 sm:$0xff]   ;;  %v465_v34 = vld [vmem:[%s715_s4 + $0xc4] ss:$8 sps:$4 sm:$0xff]   ;;  %v467_v35 = vld [vmem:[%s715_s4 + $0xc0] ss:$8 sps:$4 sm:$0xff]  }
   0xe   :  { %v468_v36 = vld [vmem:[%s715_s4 + $0xd4] ss:$8 sps:$4 sm:$0xff]   ;;  %v470_v37 = vld [vmem:[%s715_s4 + $0xd0] ss:$8 sps:$4 sm:$0xff]   ;;  %v471_v38 = vld [vmem:[%s715_s4 + $0xe4] ss:$8 sps:$4 sm:$0xff]  }
   0xf   :  { %296 = vmatpush1.bf16.msra.mxu0 %v437_v8  ;;  %v473_v39 = vld [vmem:[%s715_s4 + $0xe0] ss:$8 sps:$4 sm:$0xff]   ;;  %v474_v40 = vld [vmem:[%s715_s4 + $0xf4] ss:$8 sps:$4 sm:$0xff]   ;;  %v476_v41 = vld [vmem:[%s715_s4 + $0xf0] ss:$8 sps:$4 sm:$0xff]  }
  0x10   :  { %297 = vmatprep.subr.bf16.mxu0 %v438_v9  ;;  %v55_v46 = vshrl.u32 %v54_v44, 7  ;;  %v34_v49 = vld [vmem:[%s712_s1] sm:$0x3]  ;;  %v80_v60 = vld [vmem:[%s714_s3 + $0x8] sm:$0xff] }
  0x11   :  { %v35_v50 = vld [vmem:[%s713_s2] sm:$0x3] }
  0x12   :  { %v658_v47 = vsub.s32 0, %v55_v46  ;;  %v660_v48 = vsub.s32 1, %v55_v46  ;;  %v79_v61 = vld [vmem:[%s714_s3] sm:$0xff]  ;;  %s505_s3 = smov [#allocation2]  }
  0x13   :  { %298 = vmatpush1.bf16.msra.mxu0 %v440_v10  ;;  %v119_v4 = vld [vmem:[%s716_s5] sm:$0x3]  ;;  %s384_s5 = sshll.u32 %s505_s3, 4  ;;  %s385_s5 = int_to_ptr.vmem [resolvable:$true] %s384_s5 }
  0x14   :  { %299 = vmatprep.subr.bf16.mxu0 %v441_v11  ;;  %v57_v51 = vrot.slane %v34_v49, %v658_v47  ;;  %v61_v52 = vrot.slane %v34_v49, %v660_v48  ;;  %v70_v56 = vrot.slane %v35_v50, %v658_v47  ;;  %v74_v57 = vrot.slane %v35_v50, %v660_v48  ;;  %s481_s18 = scalar_lea.vmem %s385_s5, 256  ;;  %p486_p1 = scmp.lt.s32.totalorder %s385_s5, %s385_s5 }
  0x15   :  { %v124_v5 = vrot.slane %v119_v4, %v658_v47  ;;  %v128_v6 = vrot.slane %v119_v4, %v660_v48  ;;  %p482_p0 = scmp.ne.s32.totalorder %s385_s5, %s481_s18  ;;  %p487_p2 = scmp.lt.s32.totalorder %s481_s18, %s481_s18 }
  0x17   :  { %300 = vmatpush1.bf16.msra.mxu0 %v443_v12  ;;  %p488_p3 = por %p487_p2, %p486_p1 }
  0x18   :  { %301 = vmatprep.subr.bf16.mxu0 %v444_v13 }
  0x19   :  { %p489_p4 = pnand %p488_p3, %p482_p0 }
  0x1b   :  { %302 = vmatpush1.bf16.msra.mxu0 %v446_v14 }
  0x1c   :  { %303 = vmatprep.subr.bf16.mxu0 %v447_v15 }
  0x1f   :  { %304 = vmatpush1.bf16.msra.mxu0 %v449_v16 }
  0x20   :  { %305 = vmatprep.subr.bf16.mxu0 %v450_v17 }
  0x23   :  { %306 = vmatpush1.bf16.msra.mxu0 %v452_v18 }
  0x24   :  { %307 = vmatprep.subr.bf16.mxu0 %v453_v19 }
  0x27   :  { %308 = vmatpush1.bf16.msra.mxu0 %v455_v20 }
  0x28   :  { %309 = vmatprep.subr.bf16.mxu0 %v456_v21 }
  0x2b   :  { %310 = vmatpush1.bf16.msra.mxu0 %v458_v22 }
  0x2c   :  { %311 = vmatprep.subr.bf16.mxu0 %v459_v30 }
  0x2f   :  { %312 = vmatpush1.bf16.msra.mxu0 %v461_v31 }
  0x30   :  { %313 = vmatprep.subr.bf16.mxu0 %v462_v32 }
  0x33   :  { %314 = vmatpush1.bf16.msra.mxu0 %v464_v33 }
  0x34   :  { %315 = vmatprep.subr.bf16.mxu0 %v465_v34 }
  0x37   :  { %316 = vmatpush1.bf16.msra.mxu0 %v467_v35 }
  0x38   :  { %317 = vmatprep.subr.bf16.mxu0 %v468_v36 }
  0x3b   :  { %318 = vmatpush1.bf16.msra.mxu0 %v470_v37 }
  0x3c   :  { %319 = vmatprep.subr.bf16.mxu0 %v471_v38 }
  0x3f   :  { %320 = vmatpush1.bf16.msra.mxu0 %v473_v39 }
  0x40   :  { %321 = vmatprep.subr.bf16.mxu0 %v474_v40 }
  0x43   :  { %322 = vmatpush1.bf16.msra.mxu0 %v476_v41 }
  0x91   :  { %v38_v23 = vpop.xlane.xlu0 %37 }
  0x92   :  { %v40_v24 = vmul.f32 0.00390625, %v38_v23 }
  0x94   :  { %v41_v25 = vsub.f32 %v32_v0, %v40_v24  ;;  %v42_v26 = vsub.f32 %v33_v1, %v40_v24 }
  0x96   :  { %v43_v27 = vmul.f32 %v41_v25, %v41_v25  ;;  %v44_v28 = vmul.f32 %v42_v26, %v42_v26 }
  0x98   :  { %v45_v29 = vadd.f32 %v44_v28, %v43_v27 }
  0x9a   :  { %46 = vadd.xlane.f32.xlu0 %v45_v29 }
 0x127   :  { %v47_v42 = vpop.xlane.xlu0 %46 }
 0x128   :  { %v48_v43 = vmul.f32 0.00390625, %v47_v42 }
 0x12a   :  { %v49_v45 = vadd.f32 1e-05, %v48_v43 }
 0x12c   :  { %477 = vrsqrt.f32 %v49_v45 }
 0x136   :  { %v478_v53 = vpop.eup %477 }
 0x137   :  { %v51_v54 = vmul.f32 %v478_v53, %v41_v25  ;;  %v52_v55 = vmul.f32 %v478_v53, %v42_v26 }
 0x139   :  { %v65_v58 = vmul.f32 %v61_v52, %v52_v55  ;;  %v64_v59 = vmul.f32 %v57_v51, %v51_v54 }
 0x13b   :  { %v78_v62 = vadd.f32 %v74_v57, %v65_v58  ;;  %v77_v63 = vadd.f32 %v70_v56, %v64_v59 }
 0x13d   :  { %v82_v0 = vadd.f32 %v80_v60, %v78_v62  ;;  %v81_v1 = vadd.f32 %v79_v61, %v77_v63 }
 0x13f   :  { %v86_v2 = vpack.c.bf16 %v82_v0, %v82_v0  ;;  %84 = vst [vmem:[#allocation2 + $0x8] sm:$0xff] %v82_v0  ;;  %v85_v3 = vpack.c.bf16 %v81_v1, %v81_v1  ;;  %83 = vst [vmem:[#allocation2] sm:$0xff] %v81_v1 }
 0x141   :  { %323 = vmatprep.mubr.bf16.mxu0 %v86_v2 }
 0x142   :  { %324 = vmatmul.mubr.bf16.vlgmr.msra.gmra.mrb[0].mxu0 %v85_v3 }
 0x215   :  { %v325_v7 = vpop.f32.mrb[0].mxu0 }
 0x216   :  { %v326_v8 = vadd.f32 %v325_v7, %v124_v5  ;;  %v327_v9 = vpop.f32.mrb[1].mxu0 }
 0x217   :  { %v328_v10 = vadd.f32 %v327_v9, %v128_v6  ;;  %v329_v11 = vpop.f32.mrb[2].mxu0 }
 0x218   :  { %v330_v12 = vpop.f32.mrb[3].mxu0 }
 0x219   :  { %v334_v13 = vadd.f32 %v328_v10, %v326_v8 }
 0x21b   :  { %335 = vadd.xlane.f32.xlu1 %v334_v13 }
 0x2a8   :  { %v336_v14 = vpop.xlane.xlu1 %335 }
 0x2a9   :  { %v337_v15 = vmul.f32 0.00390625, %v336_v14 }
 0x2ab   :  { %v338_v16 = vsub.f32 %v326_v8, %v337_v15  ;;  %v339_v17 = vsub.f32 %v328_v10, %v337_v15 }
 0x2ad   :  { %v340_v18 = vmul.f32 %v338_v16, %v338_v16  ;;  %v341_v19 = vmul.f32 %v339_v17, %v339_v17 }
 0x2af   :  { %v342_v20 = vadd.f32 %v341_v19, %v340_v18 }
 0x2b1   :  { %343 = vadd.xlane.f32.xlu1 %v342_v20 }
 0x2b2   :  { %492 = shalt.err (!%p489_p4)
}
 0x2b3   :  { %s493_s0 = scalar_lea.hbm %s719_s8, 256 }
 0x2b4   :  { %p494_p5 = scmp.ne.s32.totalorder %s719_s8, %s493_s0  ;;  %p497_p6 = scmp.lt.u32.totalorder %s493_s0, %s719_s8 }
 0x2b6   :  { %p499_p7 = pnand %p497_p6, %p494_p5 }
 0x2b8   :  { %502 = shalt.err (!%p499_p7)
}
 0x2b9   :  { %387 = dma.vmem_to_hbm [thread:$0]  %s385_s5, 256, %s719_s8, [#allocation3]   ;;  %v332_v24 = vld [vmem:[%s717_s6] sm:$0x3] }
 0x2ba   :  { %v333_v25 = vld [vmem:[%s718_s7] sm:$0x3]  ;;  %v354_v26 = vrot.slane %v332_v24, %v658_v47  ;;  %v358_v27 = vrot.slane %v332_v24, %v660_v48 }
 0x2bb   :  { %v367_v29 = vrot.slane %v333_v25, %v658_v47  ;;  %v371_v30 = vrot.slane %v333_v25, %v660_v48 }
 0x33e   :  { %v344_v21 = vpop.xlane.xlu1 %343 }
 0x33f   :  { %v345_v22 = vmul.f32 0.00390625, %v344_v21 }
 0x341   :  { %v346_v23 = vadd.f32 1e-05, %v345_v22 }
 0x343   :  { %479 = vrsqrt.f32 %v346_v23 }
 0x34d   :  { %v480_v28 = vpop.eup %479 }
 0x34e   :  { %v348_v31 = vmul.f32 %v480_v28, %v338_v16  ;;  %v349_v32 = vmul.f32 %v480_v28, %v339_v17 }
 0x350   :  { %v361_v33 = vmul.f32 %v354_v26, %v348_v31  ;;  %v362_v34 = vmul.f32 %v358_v27, %v349_v32 }
 0x352   :  { %v374_v35 = vadd.f32 %v367_v29, %v361_v33  ;;  %v375_v36 = vadd.f32 %v371_v30, %v362_v34 }
 0x354   :  { %376 = vst [vmem:[%s720_s9] sm:$0xff] %v374_v35  ;;  %377 = vst [vmem:[%s720_s9 + $0x8] sm:$0xff] %v375_v36 }
 0x355   :  { %503 = dma.done.wait [#allocation3], 256  }
 0x356   :  { %504 = vsyncadd [#allocation3], 4294967040 }
 0x357   :  { %395 = vsyncpa [#allocation3], 1 }

// kernel: encode_sample.6
= control target key start
LH: loop header
LB: loop body
LE: loop exit
PB: predicated region body
PF: predicated region fallthrough
CT: control target
= control target key end

     0   :  { %s3733_s29 = smov 0   ;;  %s4677_s0 = inlined_call_operand.vmem [shape: f32[2,4,256], index: 0, kind: input, shape index: {}]   ;;  %s4678_s1 = inlined_call_operand.vmem [shape: f32[4,4], index: 1, kind: input, shape index: {}]   ;;  %s4679_s2 = inlined_call_operand.vmem [shape: bf16[256,768], index: 2, kind: input, shape index: {}]   ;;  %s4680_s3 = inlined_call_operand.vmem [shape: f32[1,768], index: 3, kind: input, shape index: {}]   ;;  %s4681_s4 = inlined_call_operand.vmem [shape: bf16[256,256], index: 4, kind: input, shape index: {}]   ;;  %s4682_s5 = inlined_call_operand.vmem [shape: f32[1,256], index: 5, kind: input, shape index: {}]   ;;  %s4683_s6 = inlined_call_operand.vmem [shape: f32[1,256], index: 6, kind: input, shape index: {}]   ;;  %s4684_s7 = inlined_call_operand.vmem [shape: f32[1,256], index: 7, kind: input, shape index: {}]   ;;  %s4685_s8 = inlined_call_operand.vmem [shape: f32[1,256], index: 8, kind: input, shape index: {}]   ;;  %s4686_s9 = inlined_call_operand.vmem [shape: f32[1,256], index: 9, kind: input, shape index: {}]   ;;  %s4687_s10 = inlined_call_operand.vmem [shape: bf16[256,512], index: 10, kind: input, shape index: {}]   ;;  %s4688_s11 = inlined_call_operand.vmem [shape: f32[1,512], index: 11, kind: input, shape index: {}]   ;;  %s4689_s12 = inlined_call_operand.vmem [shape: bf16[512,256], index: 12, kind: input, shape index: {}]   ;;  %s4690_s13 = inlined_call_operand.vmem [shape: f32[1,256], index: 13, kind: input, shape index: {}]   ;;  %s4691_s14 = inlined_call_operand.vmem [shape: f32[2,4,256], index: 14, kind: output, shape index: {}]  }
   0x1 LB: > { %s2919_s30 = sadd.s32 4294967295, %s3652_s29   ;;  %p2923_p0 = scmp.ge.s32.totalorder %s3652_s29, 1  ;;  %s3652_s29 = sphi %s3733_s29, %s24_s29  }
   0x2   : > { %p412_p1 = scmp.lt.s32.totalorder %s3652_s29, 3 }
   0x4   : > { %p413_p2 = pnand %p2923_p0, %p412_p1 }
   0x5   : > { %p458_p3 = scmp.lt.s32.totalorder (!%p413_p2), %s2919_s30, 1  ;;  %vm508_vm0 = vcmask (!%p413_p2), 1043456   ;;  %v3241_v5 = vld [vmem:[%s4679_s2 + $0x4] ss:$24 sps:$4 sm:$0xff] (!%p413_p2)   ;;  %v3243_v6 = vld [vmem:[%s4679_s2] ss:$24 sps:$4 sm:$0xff] (!%p413_p2)   ;;  %v520_v26 = vlaneseq (!%p413_p2) }
   0x6   : > { %416 = sbr.rel (%p413_p2) target bundleno = 2998 (0xbb6), region = 76  ;;  %v3244_v7 = vld [vmem:[%s4679_s2 + $0x34] ss:$24 sps:$4 sm:$0xff] (!%p413_p2)   ;;  %1185 = vmatprep.subr.bf16.mxu0 (!%p413_p2), %v3241_v5  ;;  %v3246_v8 = vld [vmem:[%s4679_s2 + $0x30] ss:$24 sps:$4 sm:$0xff] (!%p413_p2)   ;;  %vm3656_vm1 = vmmov (!%p413_p2), 0  }
   0x7   : > { %1186 = vmatpush1.bf16.msra.mxu0 (!%p413_p2), %v3243_v6  ;;  %v3247_v9 = vld [vmem:[%s4679_s2 + $0x64] ss:$24 sps:$4 sm:$0xff] (!%p413_p2)   ;;  %v3249_v10 = vld [vmem:[%s4679_s2 + $0x60] ss:$24 sps:$4 sm:$0xff] (!%p413_p2)   ;;  %v3250_v11 = vld [vmem:[%s4679_s2 + $0x94] ss:$24 sps:$4 sm:$0xff] (!%p413_p2)  }
   0x8   : > { %1187 = vmatprep.subr.bf16.mxu0 (!%p413_p2), %v3244_v7  ;;  %v3252_v12 = vld [vmem:[%s4679_s2 + $0x90] ss:$24 sps:$4 sm:$0xff] (!%p413_p2)   ;;  %v3253_v13 = vld [vmem:[%s4679_s2 + $0xc4] ss:$24 sps:$4 sm:$0xff] (!%p413_p2)   ;;  %v3255_v14 = vld [vmem:[%s4679_s2 + $0xc0] ss:$24 sps:$4 sm:$0xff] (!%p413_p2)  }
   0x9   : > { %v3256_v15 = vld [vmem:[%s4679_s2 + $0xf4] ss:$24 sps:$4 sm:$0xff] (!%p413_p2)   ;;  %v3258_v16 = vld [vmem:[%s4679_s2 + $0xf0] ss:$24 sps:$4 sm:$0xff] (!%p413_p2)   ;;  %v3259_v17 = vld [vmem:[%s4679_s2 + $0x124] ss:$24 sps:$4 sm:$0xff] (!%p413_p2)  }
   0xa   : > { %v3261_v18 = vld [vmem:[%s4679_s2 + $0x120] ss:$24 sps:$4 sm:$0xff] (!%p413_p2)   ;;  %v3262_v19 = vld [vmem:[%s4679_s2 + $0x154] ss:$24 sps:$4 sm:$0xff] (!%p413_p2)   ;;  %v3264_v20 = vld [vmem:[%s4679_s2 + $0x150] ss:$24 sps:$4 sm:$0xff] (!%p413_p2)  }
   0xb   : > { %1188 = vmatpush1.bf16.msra.mxu0 (!%p413_p2), %v3246_v8  ;;  %v3265_v21 = vld [vmem:[%s4679_s2 + $0x184] ss:$24 sps:$4 sm:$0xff] (!%p413_p2)   ;;  %v3267_v22 = vld [vmem:[%s4679_s2 + $0x180] ss:$24 sps:$4 sm:$0xff] (!%p413_p2)   ;;  %v3268_v23 = vld [vmem:[%s4679_s2 + $0x1b4] ss:$24 sps:$4 sm:$0xff] (!%p413_p2)  }
   0xc   : > { %1189 = vmatprep.subr.bf16.mxu0 (!%p413_p2), %v3247_v9  ;;  %v3654_v24 = vmov (!%p413_p2), 839922192   ;;  %v3811_v28 = vshrl.u32 (!%p413_p2), %v520_v26, 7  ;;  %v3270_v39 = vld [vmem:[%s4679_s2 + $0x1b0] ss:$24 sps:$4 sm:$0xff] (!%p413_p2)   ;;  %vm1370_vm2 = vcmask (!%p413_p2), 1041408  }
   0xd   : > { %s4693_s30 = smov (!%p458_p3, %s2919_s30), 1  ;;  %v518_v25 = vunpack.c.l.s4 %v3654_v24  ;;  %v3271_v40 = vld [vmem:[%s4679_s2 + $0x1e4] ss:$24 sps:$4 sm:$0xff]   ;;  %v3273_v41 = vld [vmem:[%s4679_s2 + $0x1e0] ss:$24 sps:$4 sm:$0xff]   ;;  %vm1352_vm3 = vcmask 27648  }
   0xe   : > { %s3188_s15 = sshll.u32 %s4693_s30, 3  ;;  %v3274_v42 = vld [vmem:[%s4679_s2 + $0x214] ss:$24 sps:$4 sm:$0xff]   ;;  %v3276_v43 = vld [vmem:[%s4679_s2 + $0x210] ss:$24 sps:$4 sm:$0xff]   ;;  %v3862_v56 = vsub.s32 0, %v3811_v28 }
   0xf   : > { %s3749_s18 = scalar_lea.vmem %s4677_s0, %s3188_s15  ;;  %1190 = vmatpush1.bf16.msra.mxu0 %v3249_v10  ;;  %v519_v27 = vunpack.c.0.s8 %v518_v25  ;;  %v3277_v44 = vld [vmem:[%s4679_s2 + $0x244] ss:$24 sps:$4 sm:$0xff]   ;;  %v3279_v45 = vld [vmem:[%s4679_s2 + $0x240] ss:$24 sps:$4 sm:$0xff]   ;;  %v3280_v46 = vld [vmem:[%s4679_s2 + $0x274] ss:$24 sps:$4 sm:$0xff]   ;;  %s467_s26 = scalar_lea.vmem %s4691_s14, %s3188_s15 }
  0x10   : > { %v469_v0 = vld [vmem:[%s3749_s18] sm:$0xff]  ;;  %1191 = vmatprep.subr.bf16.mxu0 %v3250_v11  ;;  %v3282_v47 = vld [vmem:[%s4679_s2 + $0x270] ss:$24 sps:$4 sm:$0xff]   ;;  %v3286_v50 = vld [vmem:[%s4679_s2 + $0x2d4] ss:$24 sps:$4 sm:$0xff]   ;;  %v3865_v57 = vsub.s32 1, %v3811_v28 }
  0x11   : > { %v506_v1 = vcombine.high %v469_v0, %v469_v0  ;;  %v509_v2 = vsel %vm508_vm0, %v469_v0, 0.0  ;;  %v3814_v29 = vsub.s32 %v519_v27, %v3811_v28  ;;  %v3283_v48 = vld [vmem:[%s4679_s2 + $0x2a4] ss:$24 sps:$4 sm:$0xff]   ;;  %v3285_v49 = vld [vmem:[%s4679_s2 + $0x2a0] ss:$24 sps:$4 sm:$0xff]   ;;  %vm1366_vm4 = vcmask 31744  }
  0x12   : > { %v3288_v51 = vld [vmem:[%s4679_s2 + $0x2d0] ss:$24 sps:$4 sm:$0xff]   ;;  %v3291_v52 = vld [vmem:[%s4679_s2 + $0xc] ss:$24 sps:$4 sm:$0xff]   ;;  %v503_v58 = vld [vmem:[%s4683_s6] sm:$0x3] }
  0x13   : > { %v510_v3 = vsel %vm508_vm0, %v506_v1, 0.0  ;;  %1192 = vmatpush1.bf16.msra.mxu0 %v3252_v12  ;;  %v504_v59 = vld [vmem:[%s4684_s7] sm:$0x3]  ;;  %v552_v60 = vrot.slane %v503_v58, %v3862_v56  ;;  %v556_v61 = vrot.slane %v503_v58, %v3865_v57  ;;  %v3294_v11 = vld [vmem:[%s4679_s2 + $0x3c] ss:$24 sps:$4 sm:$0xff]  }
  0x14   : > { %v511_v4 = vadd.f32 %v510_v3, %v509_v2  ;;  %1193 = vmatprep.subr.bf16.mxu0 %v3253_v13  ;;  %v564_v62 = vrot.slane %v504_v59, %v3862_v56  ;;  %v568_v63 = vrot.slane %v504_v59, %v3865_v57  ;;  %v3289_v9 = vld [vmem:[%s4679_s2 + $0x8] ss:$24 sps:$4 sm:$0xff]   ;;  %v3292_v12 = vld [vmem:[%s4679_s2 + $0x38] ss:$24 sps:$4 sm:$0xff]   ;;  %v3297_v13 = vld [vmem:[%s4679_s2 + $0x6c] ss:$24 sps:$4 sm:$0xff]  }
  0x15   : > { %v557_v2 = vcombine.low %v552_v60, %v556_v61  ;;  %v3310_v24 = vld [vmem:[%s4679_s2 + $0x158] ss:$24 sps:$4 sm:$0xff]   ;;  %v3315_v25 = vld [vmem:[%s4679_s2 + $0x18c] ss:$24 sps:$4 sm:$0xff]   ;;  %v3313_v26 = vld [vmem:[%s4679_s2 + $0x188] ss:$24 sps:$4 sm:$0xff]  }
  0x16   : > { %512 = vadd.xlane.f32.xlu0 %v511_v4  ;;  %v569_v4 = vcombine.low %v564_v62, %v568_v63  ;;  %v3318_v27 = vld [vmem:[%s4679_s2 + $0x1bc] ss:$24 sps:$4 sm:$0xff]   ;;  %v3355_v58 = vld [vmem:[%s4679_s2 + $0x130] ss:$24 sps:$4 sm:$0xff]   ;;  %v3358_v60 = vld [vmem:[%s4679_s2 + $0x160] ss:$24 sps:$4 sm:$0xff]  }
  0x17   : > { %1194 = vmatpush1.bf16.msra.mxu0 %v3255_v14  ;;  %v3295_v14 = vld [vmem:[%s4679_s2 + $0x68] ss:$24 sps:$4 sm:$0xff]   ;;  %v3360_v59 = vld [vmem:[%s4679_s2 + $0x164] ss:$24 sps:$4 sm:$0xff]   ;;  %v3363_v61 = vld [vmem:[%s4679_s2 + $0x194] ss:$24 sps:$4 sm:$0xff]  }
  0x18   : > { %1195 = vmatprep.subr.bf16.mxu0 %v3256_v15  ;;  %v3300_v15 = vld [vmem:[%s4679_s2 + $0x9c] ss:$24 sps:$4 sm:$0xff]   ;;  %v3361_v62 = vld [vmem:[%s4679_s2 + $0x190] ss:$24 sps:$4 sm:$0xff]  }
  0x19   : > { %v3366_v63 = vld [vmem:[%s4679_s2 + $0x1c4] ss:$24 sps:$4 sm:$0xff]  }
  0x1b   : > { %1196 = vmatpush1.bf16.msra.mxu0 %v3258_v16  ;;  %v3298_v16 = vld [vmem:[%s4679_s2 + $0x98] ss:$24 sps:$4 sm:$0xff]  }
  0x1c   : > { %1197 = vmatprep.subr.bf16.mxu0 %v3259_v17  ;;  %v3303_v17 = vld [vmem:[%s4679_s2 + $0xcc] ss:$24 sps:$4 sm:$0xff]  }
  0x1f   : > { %1198 = vmatpush1.bf16.msra.mxu0 %v3261_v18  ;;  %v3301_v18 = vld [vmem:[%s4679_s2 + $0xc8] ss:$24 sps:$4 sm:$0xff]  }
  0x20   : > { %1199 = vmatprep.subr.bf16.mxu0 %v3262_v19  ;;  %v3306_v19 = vld [vmem:[%s4679_s2 + $0xfc] ss:$24 sps:$4 sm:$0xff]  }
  0x23   : > { %1200 = vmatpush1.bf16.msra.mxu0 %v3264_v20  ;;  %v3304_v20 = vld [vmem:[%s4679_s2 + $0xf8] ss:$24 sps:$4 sm:$0xff]  }
  0x24   : > { %1201 = vmatprep.subr.bf16.mxu0 %v3265_v21  ;;  %v3309_v21 = vld [vmem:[%s4679_s2 + $0x12c] ss:$24 sps:$4 sm:$0xff]  }
  0x27   : > { %1202 = vmatpush1.bf16.msra.mxu0 %v3267_v22  ;;  %v3307_v22 = vld [vmem:[%s4679_s2 + $0x128] ss:$24 sps:$4 sm:$0xff]  }
  0x28   : > { %1203 = vmatprep.subr.bf16.mxu0 %v3268_v23  ;;  %v3312_v23 = vld [vmem:[%s4679_s2 + $0x15c] ss:$24 sps:$4 sm:$0xff]  }
  0x2b   : > { %1204 = vmatpush1.bf16.msra.mxu0 %v3270_v39  ;;  %v3333_v39 = vld [vmem:[%s4679_s2 + $0x2ac] ss:$24 sps:$4 sm:$0xff]  }
  0x2c   : > { %1205 = vmatprep.subr.bf16.mxu0 %v3271_v40  ;;  %v3331_v40 = vld [vmem:[%s4679_s2 + $0x2a8] ss:$24 sps:$4 sm:$0xff]  }
  0x2f   : > { %1206 = vmatpush1.bf16.msra.mxu0 %v3273_v41  ;;  %v3336_v41 = vld [vmem:[%s4679_s2 + $0x2dc] ss:$24 sps:$4 sm:$0xff]  }
  0x30   : > { %1207 = vmatprep.subr.bf16.mxu0 %v3274_v42  ;;  %v3334_v42 = vld [vmem:[%s4679_s2 + $0x2d8] ss:$24 sps:$4 sm:$0xff]  }
  0x33   : > { %1208 = vmatpush1.bf16.msra.mxu0 %v3276_v43  ;;  %v3339_v43 = vld [vmem:[%s4679_s2 + $0x14] ss:$24 sps:$4 sm:$0xff]  }
  0x34   : > { %1209 = vmatprep.subr.bf16.mxu0 %v3277_v44  ;;  %v3337_v44 = vld [vmem:[%s4679_s2 + $0x10] ss:$24 sps:$4 sm:$0xff]  }
  0x37   : > { %1210 = vmatpush1.bf16.msra.mxu0 %v3279_v45  ;;  %v3342_v45 = vld [vmem:[%s4679_s2 + $0x44] ss:$24 sps:$4 sm:$0xff]  }
  0x38   : > { %1211 = vmatprep.subr.bf16.mxu0 %v3280_v46  ;;  %v3340_v46 = vld [vmem:[%s4679_s2 + $0x40] ss:$24 sps:$4 sm:$0xff]  }
  0x3b   : > { %1212 = vmatpush1.bf16.msra.mxu0 %v3282_v47  ;;  %v3345_v47 = vld [vmem:[%s4679_s2 + $0x74] ss:$24 sps:$4 sm:$0xff]  }
  0x3c   : > { %1213 = vmatprep.subr.bf16.mxu0 %v3283_v48  ;;  %v3343_v48 = vld [vmem:[%s4679_s2 + $0x70] ss:$24 sps:$4 sm:$0xff]  }
  0x3f   : > { %1214 = vmatpush1.bf16.msra.mxu0 %v3285_v49  ;;  %v3348_v49 = vld [vmem:[%s4679_s2 + $0xa4] ss:$24 sps:$4 sm:$0xff]  }
  0x40   : > { %1215 = vmatprep.subr.bf16.mxu0 %v3286_v50  ;;  %v3346_v50 = vld [vmem:[%s4679_s2 + $0xa0] ss:$24 sps:$4 sm:$0xff]  }
  0x43   : > { %1216 = vmatpush1.bf16.msra.mxu0 %v3288_v51  ;;  %v3351_v51 = vld [vmem:[%s4679_s2 + $0xd4] ss:$24 sps:$4 sm:$0xff]  }
  0x44   : > { %1226 = vmatprep.subr.bf16.mxu0 %v3291_v52  ;;  %v3349_v52 = vld [vmem:[%s4679_s2 + $0xd0] ss:$24 sps:$4 sm:$0xff]  }
  0xa3   : > { %v513_v30 = vpop.xlane.xlu0 %512 }
  0xa4   : > { %v515_v31 = vmul.f32 0.00390625, %v513_v30  ;;  %v3316_v30 = vld [vmem:[%s4679_s2 + $0x1b8] ss:$24 sps:$4 sm:$0xff]  }
  0xa6   : > { %v523_v32 = vrot.slane %v515_v31, %v3814_v29  ;;  %v3321_v31 = vld [vmem:[%s4679_s2 + $0x1ec] ss:$24 sps:$4 sm:$0xff]  }
  0xa8   : > { %v525_v33 = vsub.f32 %v469_v0, %v523_v32  ;;  %v3319_v32 = vld [vmem:[%s4679_s2 + $0x1e8] ss:$24 sps:$4 sm:$0xff]  }
  0xaa   : > { %v526_v34 = vmul.f32 %v525_v33, %v525_v33 }
  0xac   : > { %v528_v35 = vcombine.high %v526_v34, %v526_v34  ;;  %v530_v36 = vsel %vm508_vm0, %v526_v34, 0.0  ;;  %v3322_v34 = vld [vmem:[%s4679_s2 + $0x218] ss:$24 sps:$4 sm:$0xff]  }
  0xae   : > { %v531_v37 = vsel %vm508_vm0, %v528_v35, 0.0  ;;  %v3327_v35 = vld [vmem:[%s4679_s2 + $0x24c] ss:$24 sps:$4 sm:$0xff]  }
  0xaf   : > { %v532_v38 = vadd.f32 %v531_v37, %v530_v36  ;;  %v3325_v36 = vld [vmem:[%s4679_s2 + $0x248] ss:$24 sps:$4 sm:$0xff]   ;;  %v3330_v37 = vld [vmem:[%s4679_s2 + $0x27c] ss:$24 sps:$4 sm:$0xff]  }
  0xb1   : > { %533 = vadd.xlane.f32.xlu0 %v532_v38  ;;  %v3328_v38 = vld [vmem:[%s4679_s2 + $0x278] ss:$24 sps:$4 sm:$0xff]  }
 0x13e   : > { %v534_v53 = vpop.xlane.xlu0 %533 }
 0x13f   : > { %v535_v54 = vmul.f32 0.00390625, %v534_v53  ;;  %v3354_v53 = vld [vmem:[%s4679_s2 + $0x104] ss:$24 sps:$4 sm:$0xff]  }
 0x141   : > { %v536_v55 = vadd.f32 1e-05, %v535_v54  ;;  %v3352_v54 = vld [vmem:[%s4679_s2 + $0x100] ss:$24 sps:$4 sm:$0xff]  }
 0x143   : > { %3625 = vrsqrt.f32 %v536_v55  ;;  %v3357_v55 = vld [vmem:[%s4679_s2 + $0x134] ss:$24 sps:$4 sm:$0xff]  }
 0x14d   : > { %v3626_v0 = vpop.eup %3625 }
 0x14e   : > { %v545_v1 = vrot.slane %v3626_v0, %v3814_v29  ;;  %v3364_v0 = vld [vmem:[%s4679_s2 + $0x1c0] ss:$24 sps:$4 sm:$0xff]  }
 0x150   : > { %v547_v3 = vmul.f32 %v545_v1, %v525_v33  ;;  %v3324_v33 = vld [vmem:[%s4679_s2 + $0x21c] ss:$24 sps:$4 sm:$0xff]  }
 0x151   : > { %v3369_v1 = vld [vmem:[%s4679_s2 + $0x1f4] ss:$24 sps:$4 sm:$0xff]  }
 0x152   : > { %v559_v5 = vmul.f32 %v557_v2, %v547_v3  ;;  %v3367_v2 = vld [vmem:[%s4679_s2 + $0x1f0] ss:$24 sps:$4 sm:$0xff]   ;;  %v3372_v3 = vld [vmem:[%s4679_s2 + $0x224] ss:$24 sps:$4 sm:$0xff]  }
 0x154   : > { %v571_v6 = vadd.f32 %v569_v4, %v559_v5  ;;  %v3370_v4 = vld [vmem:[%s4679_s2 + $0x220] ss:$24 sps:$4 sm:$0xff]   ;;  %v3375_v5 = vld [vmem:[%s4679_s2 + $0x254] ss:$24 sps:$4 sm:$0xff]  }
 0x156   : > { %v573_v7 = vcombine.high %v571_v6, %v571_v6  ;;  %v3883_v10 = vpack.c.bf16 %v571_v6, %v571_v6  ;;  %v3373_v6 = vld [vmem:[%s4679_s2 + $0x250] ss:$24 sps:$4 sm:$0xff]  }
 0x158   : > { %v3878_v8 = vpack.c.bf16 %v573_v7, %v573_v7  ;;  %v3378_v7 = vld [vmem:[%s4679_s2 + $0x284] ss:$24 sps:$4 sm:$0xff]  }
 0x15a   : > { %1217 = vmatprep.mubr.bf16.mxu0 %v3878_v8 }
 0x15b   : > { %1218 = vmatmul.mubr.bf16.vlgmr.msra.gmra.mrb[0].mxu0 %v3883_v10 }
 0x15c   : > { %1227 = vmatpush1.bf16.msra.mxu0 %v3289_v9  ;;  %1258 = vmatprep.mubr.bf16.mxu0 %v3878_v8  ;;  %v3381_v9 = vld [vmem:[%s4679_s2 + $0x2b4] ss:$24 sps:$4 sm:$0xff]  }
 0x15d   : > { %1228 = vmatprep.subr.bf16.mxu0 %v3294_v11  ;;  %v3379_v11 = vld [vmem:[%s4679_s2 + $0x2b0] ss:$24 sps:$4 sm:$0xff]  }
 0x160   : > { %1229 = vmatpush1.bf16.msra.mxu0 %v3292_v12  ;;  %v3384_v12 = vld [vmem:[%s4679_s2 + $0x2e4] ss:$24 sps:$4 sm:$0xff]  }
 0x161   : > { %1230 = vmatprep.subr.bf16.mxu0 %v3297_v13  ;;  %v3382_v13 = vld [vmem:[%s4679_s2 + $0x2e0] ss:$24 sps:$4 sm:$0xff]  }
 0x164   : > { %1231 = vmatpush1.bf16.msra.mxu0 %v3295_v14  ;;  %v3655_v14 = vmov 0.0  }
 0x165   : > { %1232 = vmatprep.subr.bf16.mxu0 %v3300_v15  ;;  %3198 = vmatprep.subr.bf16.mxu1 %v3655_v14 }
 0x166   : > { %3200 = vmatprep.mubr.msk.bf16.mxu1 %vm3656_vm1, %v3655_v14 }
 0x168   : > { %1233 = vmatpush1.bf16.msra.mxu0 %v3298_v16 }
 0x169   : > { %1234 = vmatprep.subr.bf16.mxu0 %v3303_v17 }
 0x16c   : > { %1235 = vmatpush1.bf16.msra.mxu0 %v3301_v18 }
 0x16d   : > { %1236 = vmatprep.subr.bf16.mxu0 %v3306_v19  ;;  %v685_v19 = vsub.s32 2, %v3811_v28 }
 0x170   : > { %1237 = vmatpush1.bf16.msra.mxu0 %v3304_v20  ;;  %v4086_v20 = vld [vmem:[%s4680_s3] sm:$0x3f] }
 0x171   : > { %1238 = vmatprep.subr.bf16.mxu0 %v3309_v21 }
 0x174   : > { %1239 = vmatpush1.bf16.msra.mxu0 %v3307_v22 }
 0x175   : > { %1240 = vmatprep.subr.bf16.mxu0 %v3312_v23 }
 0x178   : > { %1241 = vmatpush1.bf16.msra.mxu0 %v3310_v24  ;;  %v678_v24 = vrot.slane %v4086_v20, %v3862_v56 }
 0x179   : > { %1242 = vmatprep.subr.bf16.mxu0 %v3315_v25 }
 0x17c   : > { %1243 = vmatpush1.bf16.msra.mxu0 %v3313_v26 }
 0x17d   : > { %1244 = vmatprep.subr.bf16.mxu0 %v3318_v27 }
 0x180   : > { %1245 = vmatpush1.bf16.msra.mxu0 %v3316_v30 }
 0x181   : > { %1246 = vmatprep.subr.bf16.mxu0 %v3321_v31 }
 0x184   : > { %1247 = vmatpush1.bf16.msra.mxu0 %v3319_v32  ;;  %v693_v32 = vsub.s32 4, %v3811_v28 }
 0x185   : > { %1248 = vmatprep.subr.bf16.mxu0 %v3324_v33  ;;  %v697_v33 = vsub.s32 5, %v3811_v28 }
 0x188   : > { %1249 = vmatpush1.bf16.msra.mxu0 %v3322_v34  ;;  %v694_v34 = vrot.slane %v4086_v20, %v693_v32 }
 0x189   : > { %1250 = vmatprep.subr.bf16.mxu0 %v3327_v35  ;;  %v698_v35 = vrot.slane %v4086_v20, %v697_v33 }
 0x18c   : > { %1251 = vmatpush1.bf16.msra.mxu0 %v3325_v36 }
 0x18d   : > { %1252 = vmatprep.subr.bf16.mxu0 %v3330_v37 }
 0x190   : > { %1253 = vmatpush1.bf16.msra.mxu0 %v3328_v38 }
 0x191   : > { %1254 = vmatprep.subr.bf16.mxu0 %v3333_v39 }
 0x194   : > { %1255 = vmatpush1.bf16.msra.mxu0 %v3331_v40 }
 0x195   : > { %1256 = vmatprep.subr.bf16.mxu0 %v3336_v41 }
 0x198   : > { %1257 = vmatpush1.bf16.msra.mxu0 %v3334_v42 }
 0x199   : > { %1267 = vmatprep.subr.bf16.mxu0 %v3339_v43 }
 0x19b   : > { %1259 = vmatmul.mubr.bf16.vlgmr.msra.gmra.mrb[4].mxu0 %v3883_v10 }
 0x19c   : > { %1268 = vmatpush1.bf16.msra.mxu0 %v3337_v44  ;;  %1299 = vmatprep.mubr.bf16.mxu0 %v3878_v8  ;;  %v3376_v8 = vld [vmem:[%s4679_s2 + $0x280] ss:$24 sps:$4 sm:$0xff]  }
 0x19d   : > { %1269 = vmatprep.subr.bf16.mxu0 %v3342_v45 }
 0x1a0   : > { %1270 = vmatpush1.bf16.msra.mxu0 %v3340_v46 }
 0x1a1   : > { %1271 = vmatprep.subr.bf16.mxu0 %v3345_v47  ;;  %v4108_v47 = vld [vmem:[%s4678_s1] sm:$0xf] }
 0x1a4   : > { %1272 = vmatpush1.bf16.msra.mxu0 %v3343_v48 }
 0x1a5   : > { %1273 = vmatprep.subr.bf16.mxu0 %v3348_v49 }
 0x1a8   : > { %1274 = vmatpush1.bf16.msra.mxu0 %v3346_v50 }
 0x1a9   : > { %1275 = vmatprep.subr.bf16.mxu0 %v3351_v51 }
 0x1ac   : > { %1276 = vmatpush1.bf16.msra.mxu0 %v3349_v52 }
 0x1ad   : > { %1277 = vmatprep.subr.bf16.mxu0 %v3354_v53 }
 0x1b0   : > { %1278 = vmatpush1.bf16.msra.mxu0 %v3352_v54 }
 0x1b1   : > { %1279 = vmatprep.subr.bf16.mxu0 %v3357_v55 }
 0x1b4   : > { %1280 = vmatpush1.bf16.msra.mxu0 %v3355_v58 }
 0x1b5   : > { %1281 = vmatprep.subr.bf16.mxu0 %v3360_v59 }
 0x1b8   : > { %1282 = vmatpush1.bf16.msra.mxu0 %v3358_v60 }
 0x1b9   : > { %1283 = vmatprep.subr.bf16.mxu0 %v3363_v61  ;;  %v3385_v61 = vld [vmem:[%s4681_s4] ss:$8 sps:$4 sm:$0xff]  }
 0x1bc   : > { %1284 = vmatpush1.bf16.msra.mxu0 %v3361_v62  ;;  %v3387_v62 = vld [vmem:[%s4681_s4 + $0x4] ss:$8 sps:$4 sm:$0xff]  }
 0x1bd   : > { %1285 = vmatprep.subr.bf16.mxu0 %v3366_v63  ;;  %v3390_v63 = vld [vmem:[%s4681_s4 + $0x14] ss:$8 sps:$4 sm:$0xff]  }
 0x1c0   : > { %1286 = vmatpush1.bf16.msra.mxu0 %v3364_v0  ;;  %v3388_v0 = vld [vmem:[%s4681_s4 + $0x10] ss:$8 sps:$4 sm:$0xff]  }
 0x1c1   : > { %1287 = vmatprep.subr.bf16.mxu0 %v3369_v1  ;;  %v3393_v1 = vld [vmem:[%s4681_s4 + $0x24] ss:$8 sps:$4 sm:$0xff]  }
 0x1c4   : > { %1288 = vmatpush1.bf16.msra.mxu0 %v3367_v2  ;;  %v3391_v2 = vld [vmem:[%s4681_s4 + $0x20] ss:$8 sps:$4 sm:$0xff]  }
 0x1c5   : > { %1289 = vmatprep.subr.bf16.mxu0 %v3372_v3  ;;  %v3396_v3 = vld [vmem:[%s4681_s4 + $0x34] ss:$8 sps:$4 sm:$0xff]  }
 0x1c8   : > { %1290 = vmatpush1.bf16.msra.mxu0 %v3370_v4  ;;  %v3394_v4 = vld [vmem:[%s4681_s4 + $0x30] ss:$8 sps:$4 sm:$0xff]  }
 0x1c9   : > { %1291 = vmatprep.subr.bf16.mxu0 %v3375_v5  ;;  %v3399_v5 = vld [vmem:[%s4681_s4 + $0x44] ss:$8 sps:$4 sm:$0xff]  }
 0x1cc   : > { %1292 = vmatpush1.bf16.msra.mxu0 %v3373_v6  ;;  %v3397_v6 = vld [vmem:[%s4681_s4 + $0x40] ss:$8 sps:$4 sm:$0xff]  }
 0x1cd   : > { %1293 = vmatprep.subr.bf16.mxu0 %v3378_v7  ;;  %v3402_v7 = vld [vmem:[%s4681_s4 + $0x54] ss:$8 sps:$4 sm:$0xff]  }
 0x1d0   : > { %1294 = vmatpush1.bf16.msra.mxu0 %v3376_v8  ;;  %v3400_v8 = vld [vmem:[%s4681_s4 + $0x50] ss:$8 sps:$4 sm:$0xff]  }
 0x1d1   : > { %1295 = vmatprep.subr.bf16.mxu0 %v3381_v9  ;;  %v3405_v9 = vld [vmem:[%s4681_s4 + $0x64] ss:$8 sps:$4 sm:$0xff]  }
 0x1d4   : > { %1296 = vmatpush1.bf16.msra.mxu0 %v3379_v11  ;;  %v3403_v11 = vld [vmem:[%s4681_s4 + $0x60] ss:$8 sps:$4 sm:$0xff]  }
 0x1d5   : > { %1297 = vmatprep.subr.bf16.mxu0 %v3384_v12  ;;  %v3408_v12 = vld [vmem:[%s4681_s4 + $0x74] ss:$8 sps:$4 sm:$0xff]  }
 0x1d8   : > { %1298 = vmatpush1.bf16.msra.mxu0 %v3382_v13  ;;  %v3406_v13 = vld [vmem:[%s4681_s4 + $0x70] ss:$8 sps:$4 sm:$0xff]  }
 0x1d9   : > { %1720 = vmatprep.subr.bf16.mxu0 %v3387_v62  ;;  %v3418_v62 = vld [vmem:[%s4681_s4 + $0xb0] ss:$8 sps:$4 sm:$0xff]  }
 0x1db   : > { %1300 = vmatmul.mubr.bf16.vlgmr.msra.gmra.mrb[8].mxu0 %v3883_v10  ;;  %v686_v10 = vrot.slane %v4086_v20, %v685_v19 }
 0x1dc   : > { %1721 = vmatpush1.bf16.msra.mxu0 %v3385_v61  ;;  %v3420_v61 = vld [vmem:[%s4681_s4 + $0xb4] ss:$8 sps:$4 sm:$0xff]  }
 0x1dd   : > { %1722 = vmatprep.subr.bf16.mxu0 %v3390_v63  ;;  %v3423_v63 = vld [vmem:[%s4681_s4 + $0xc4] ss:$8 sps:$4 sm:$0xff]  }
 0x1e0   : > { %1723 = vmatpush1.bf16.msra.mxu0 %v3388_v0  ;;  %v3421_v0 = vld [vmem:[%s4681_s4 + $0xc0] ss:$8 sps:$4 sm:$0xff]  }
 0x1e1   : > { %1724 = vmatprep.subr.bf16.mxu0 %v3393_v1  ;;  %v3426_v1 = vld [vmem:[%s4681_s4 + $0xd4] ss:$8 sps:$4 sm:$0xff]  }
 0x1e4   : > { %1725 = vmatpush1.bf16.msra.mxu0 %v3391_v2  ;;  %v3424_v2 = vld [vmem:[%s4681_s4 + $0xd0] ss:$8 sps:$4 sm:$0xff]  }
 0x1e5   : > { %1726 = vmatprep.subr.bf16.mxu0 %v3396_v3  ;;  %v3429_v3 = vld [vmem:[%s4681_s4 + $0xe4] ss:$8 sps:$4 sm:$0xff]  }
 0x1e8   : > { %1727 = vmatpush1.bf16.msra.mxu0 %v3394_v4  ;;  %v3427_v4 = vld [vmem:[%s4681_s4 + $0xe0] ss:$8 sps:$4 sm:$0xff]  }
 0x1e9   : > { %1728 = vmatprep.subr.bf16.mxu0 %v3399_v5  ;;  %v3432_v5 = vld [vmem:[%s4681_s4 + $0xf4] ss:$8 sps:$4 sm:$0xff]  }
 0x1ec   : > { %1729 = vmatpush1.bf16.msra.mxu0 %v3397_v6  ;;  %v3430_v6 = vld [vmem:[%s4681_s4 + $0xf0] ss:$8 sps:$4 sm:$0xff]  }
 0x1ed   : > { %1730 = vmatprep.subr.bf16.mxu0 %v3402_v7 }
 0x1f0   : > { %1731 = vmatpush1.bf16.msra.mxu0 %v3400_v8 }
 0x1f1   : > { %1732 = vmatprep.subr.bf16.mxu0 %v3405_v9 }
 0x1f4   : > { %1733 = vmatpush1.bf16.msra.mxu0 %v3403_v11 }
 0x1f5   : > { %1734 = vmatprep.subr.bf16.mxu0 %v3408_v12 }
 0x1f8   : > { %1735 = vmatpush1.bf16.msra.mxu0 %v3406_v13  ;;  %v1761_v13 = vld [vmem:[%s4682_s5] sm:$0x3] }
 0x22e   : > { %v1219_v15 = vpop.f32.mrb[0].mxu0 }
 0x22f   : > { %v4080_v16 = vpop.f32.mrb[1].mxu0  ;;  %v1220_v30 = vadd.f32 %v1219_v15, %v678_v24  ;;  %v682_v24 = vrot.slane %v4086_v20, %v3865_v57 }
 0x230   : > { %v1223_v17 = vpop.f32.mrb[2].mxu0 }
 0x231   : > { %v1224_v18 = vpop.f32.mrb[3].mxu0  ;;  %v1308_v31 = vpack.c.bf16 %v1220_v30, %v1220_v30  ;;  %v689_v17 = vsub.s32 3, %v3811_v28  ;;  %v3597_v28 = vld [vmem:[%s4689_s12 + $0x164] ss:$8 sps:$4 sm:$0xff]  }
 0x233   : > { %v690_v18 = vrot.slane %v4086_v20, %v689_v17  ;;  %v3657_v20 = vmov 0  }
 0x234   : > { %1752 = vmatprep.mubr.bf16.mxu0 %v3657_v20 }
 0x26e   : > { %v1260_v21 = vpop.f32.mrb[4].mxu0 }
 0x26f   : > { %v1261_v22 = vadd.f32 %v1260_v21, %v686_v10  ;;  %v4091_v23 = vpop.f32.mrb[5].mxu0 }
 0x270   : > { %v1264_v25 = vpop.f32.mrb[6].mxu0  ;;  %v1263_v21 = vadd.f32 %v4091_v23, %v690_v18 }
 0x271   : > { %v1309_v26 = vpack.c.bf16 %v1261_v22, %v1261_v22  ;;  %v1265_v27 = vpop.f32.mrb[7].mxu0 }
 0x272   : > { %v1222_v27 = vadd.f32 %v4080_v16, %v682_v24 }
 0x273   : > { %3199 = vmatpush3.bf16.xpose.msra.mxu1 %v1309_v26  ;;  %v1416_v26 = vpack.c.bf16 %v1263_v21, %v1263_v21 }
 0x274   : > { %3204 = vmatprep.subr.bf16.mxu1 %v3655_v14  ;;  %v1415_v30 = vpack.c.bf16 %v1222_v27, %v1222_v27 }
 0x27a   : > { %3201 = vmatmul.mubr.bf16.vlgmr.msra.gmra.mrb[0].mxu1 %v1308_v31 }
 0x27b   : > { %3206 = vmatprep.mubr.msk.bf16.mxu1 %vm3656_vm1, %v3655_v14 }
 0x2ae   : > { %v1301_v36 = vpop.f32.mrb[8].mxu0 }
 0x2af   : > { %v1302_v37 = vadd.f32 %v1301_v36, %v694_v34  ;;  %v1303_v38 = vpop.f32.mrb[9].mxu0 }
 0x2b0   : > { %v1304_v39 = vadd.f32 %v1303_v38, %v698_v35  ;;  %v1305_v40 = vpop.f32.mrb[10].mxu0 }
 0x2b1   : > { %v1365_v41 = vpack.c.bf16 %v1302_v37, %v1302_v37  ;;  %v1306_v42 = vpop.f32.mrb[11].mxu0 }
 0x2b2   : > { %v1471_v43 = vpack.c.bf16 %v1304_v39, %v1304_v39 }
 0x2b3   : > { %v1372_v44 = vsel %vm1370_vm2, %v1365_v41, 0 }
 0x2b4   : > { %v4102_v45 = vsel %vm1370_vm2, %v1471_v43, 0  ;;  %3205 = vmatpush3.bf16.msra.mxu1 %v1372_v44 }
 0x2b5   : > { %3210 = vmatprep.subr.bf16.mxu1 %v3655_v14 }
 0x34d   : > { %v1344_v46 = vpop.f32.mrb[0].mxu1 }
 0x34e   : > { %v1350_v48 = vmul.f32 0.088388346, %v1344_v46  ;;  %v3202_v49 = vpop.f32.mrb[1].mxu1 }
 0x34f   : > { %v1347_v50 = vpop.f32.mrb[2].mxu1 }
 0x350   : > { %v3203_v51 = vpop.f32.mrb[3].mxu1  ;;  %v1351_v52 = vadd.f32 %v1350_v48, %v4108_v47 }
 0x352   : > { %v1353_v53 = vsel %vm1352_vm3, %v1351_v52, -inf }
 0x353   : > { %1354 = vmax.xlane.f32.xlu1 %v1353_v53  ;;  %v3409_v53 = vld [vmem:[%s4681_s4 + $0x80] ss:$8 sps:$4 sm:$0xff]  }
 0x3e0   : > { %v1355_v54 = vpop.xlane.xlu1 %1354 }
 0x3e1   : > { %v1356_v55 = vsub.f32 %v1351_v52, %v1355_v54 }
 0x3e3   : > { %v1357_v58 = vmul.f32 1.442695, %v1356_v55  ;;  %v3414_v55 = vld [vmem:[%s4681_s4 + $0x94] ss:$8 sps:$4 sm:$0xff]  }
 0x3e5   : > { %3627 = vpow2.f32 %v1357_v58  ;;  %v3412_v58 = vld [vmem:[%s4681_s4 + $0x90] ss:$8 sps:$4 sm:$0xff]  }
 0x3ef   : > { %v3628_v59 = vpop.eup %3627 }
 0x3f0   : > { %v1359_v60 = vsel %vm1352_vm3, %v3628_v59, 0.0 }
 0x3f1   : > { %1360 = vadd.xlane.f32.xlu1 %v1359_v60  ;;  %v3415_v60 = vld [vmem:[%s4681_s4 + $0xa0] ss:$8 sps:$4 sm:$0xff]  }
 0x47e   : > { %v1361_v15 = vpop.xlane.xlu1 %1360 }
 0x47f   : > { %3629 = vrcp.f32 %v1361_v15  ;;  %v1766_v15 = vrot.slane %v1761_v13, %v3862_v56 }
 0x489   : > { %v3630_v10 = vpop.eup %3629 }
 0x48a   : > { %v1363_v22 = vmul.f32 %v3630_v10, %v3628_v59  ;;  %v3417_v59 = vld [vmem:[%s4681_s4 + $0xa4] ss:$8 sps:$4 sm:$0xff]   ;;  %v1770_v10 = vrot.slane %v1761_v13, %v3865_v57 }
 0x48c   : > { %v1364_v25 = vpack.c.bf16 %v1363_v22, %v1363_v22 }
 0x48e   : > { %3207 = vmatmul.mubr.msk.bf16.vlgmr.msra.gmra.mrb[4].mxu1 %vm1366_vm4, %v1364_v25 }
 0x48f   : > { %3211 = vmatpush3.bf16.xpose.msra.mxu1 %v1416_v26  ;;  %3212 = vmatprep.mubr.msk.bf16.mxu1 %vm3656_vm1, %v3655_v14 }
 0x490   : > { %3216 = vmatprep.subr.bf16.mxu1 %v3655_v14 }
 0x496   : > { %3213 = vmatmul.mubr.bf16.vlgmr.msra.gmra.mrb[8].mxu1 %v1415_v30 }
 0x497   : > { %3217 = vmatpush3.bf16.msra.mxu1 %v4102_v45  ;;  %3218 = vmatprep.mubr.msk.bf16.mxu1 %vm3656_vm1, %v3655_v14  ;;  %v3411_v45 = vld [vmem:[%s4681_s4 + $0x84] ss:$8 sps:$4 sm:$0xff]  }
 0x498   : > { %1599 = vmatprep.subr.bf16.mxu1 %v3411_v45  ;;  %v3448_v45 = vld [vmem:[%s4687_s10 + $0x48] ss:$16 sps:$4 sm:$0xff]  }
 0x561   : > { %v1408_v23 = vpop.f32.mrb[4].mxu1 }
 0x562   : > { %v1414_v31 = vpack.c.bf16 %v1408_v23, %v1408_v23  ;;  %v3208_v32 = vpop.f32.mrb[5].mxu1  ;;  %v3645_v23 = vld [vmem:[%s3749_s18] sm:$0xff] }
 0x563   : > { %v1411_v33 = vpop.f32.mrb[6].mxu1 }
 0x564   : > { %v3209_v34 = vpop.f32.mrb[7].mxu1  ;;  %1753 = vmatmul.mubr.bf16.vlgmr.msra.gmra.mrb[12].mxu0 %v1414_v31 }
 0x569   : > { %v1451_v35 = vpop.f32.mrb[8].mxu1 }
 0x56a   : > { %v1457_v36 = vmul.f32 0.088388346, %v1451_v35  ;;  %v3214_v16 = vpop.f32.mrb[9].mxu1 }
 0x56b   : > { %v1454_v37 = vpop.f32.mrb[10].mxu1  ;;  %v3435_v16 = vld [vmem:[%s4687_s10 + $0x4] ss:$16 sps:$4 sm:$0xff]  }
 0x56c   : > { %v3215_v38 = vpop.f32.mrb[11].mxu1  ;;  %v1458_v39 = vadd.f32 %v1457_v36, %v4108_v47  ;;  %v3433_v36 = vld [vmem:[%s4687_s10] ss:$16 sps:$4 sm:$0xff]   ;;  %v3436_v37 = vld [vmem:[%s4687_s10 + $0x8] ss:$16 sps:$4 sm:$0xff]  }
 0x56d   : > { %v3438_v38 = vld [vmem:[%s4687_s10 + $0xc] ss:$16 sps:$4 sm:$0xff]  }
 0x56e   : > { %v1459_v40 = vsel %vm1352_vm3, %v1458_v39, -inf  ;;  %2299 = vmatprep.subr.bf16.mxu0 %v3438_v38  ;;  %v3508_v38 = vld [vmem:[%s4687_s10 + $0x188] ss:$16 sps:$4 sm:$0xff]  }
 0x56f   : > { %1460 = vmax.xlane.f32.xlu0 %v1459_v40  ;;  %v3444_v40 = vld [vmem:[%s4687_s10 + $0x2c] ss:$16 sps:$4 sm:$0xff]   ;;  %2300 = vmatpush1.bf16.msra.mxu0 %v3436_v37  ;;  %v3505_v37 = vld [vmem:[%s4687_s10 + $0x180] ss:$16 sps:$4 sm:$0xff]  }
 0x570   : > { %2301 = vmatprep.subr.bf16.mxu0 %v3444_v40  ;;  %v3513_v40 = vld [vmem:[%s4687_s10 + $0x1a4] ss:$16 sps:$4 sm:$0xff]  }
 0x5fc   : > { %v1461_v41 = vpop.xlane.xlu0 %1460 }
 0x5fd   : > { %v1462_v14 = vsub.f32 %v1458_v39, %v1461_v41  ;;  %v3441_v39 = vld [vmem:[%s4687_s10 + $0x24] ss:$16 sps:$4 sm:$0xff]   ;;  %v3439_v41 = vld [vmem:[%s4687_s10 + $0x20] ss:$16 sps:$4 sm:$0xff]  }
 0x5ff   : > { %v1463_v42 = vmul.f32 1.442695, %v1462_v14  ;;  %v3442_v14 = vld [vmem:[%s4687_s10 + $0x28] ss:$16 sps:$4 sm:$0xff]  }
 0x600   : > { %2302 = vmatpush1.bf16.msra.mxu0 %v3442_v14  ;;  %v3516_v14 = vld [vmem:[%s4687_s10 + $0x1ac] ss:$16 sps:$4 sm:$0xff]  }
 0x601   : > { %3631 = vpow2.f32 %v1463_v42  ;;  %v3447_v42 = vld [vmem:[%s4687_s10 + $0x44] ss:$16 sps:$4 sm:$0xff]  }
 0x60b   : > { %v3632_v43 = vpop.eup %3631 }
 0x60c   : > { %v1465_v44 = vsel %vm1352_vm3, %v3632_v43, 0.0 }
 0x60d   : > { %1466 = vadd.xlane.f32.xlu1 %v1465_v44  ;;  %v3445_v44 = vld [vmem:[%s4687_s10 + $0x40] ss:$16 sps:$4 sm:$0xff]  }
 0x637   : > { %v1754_v46 = vpop.f32.mrb[12].mxu0 }
 0x638   : > { %v1756_v48 = vpop.f32.mrb[13].mxu0 }
 0x639   : > { %v1758_v49 = vpop.f32.mrb[14].mxu0 }
 0x63a   : > { %v1759_v47 = vpop.f32.mrb[15].mxu0  ;;  %v3451_v49 = vld [vmem:[%s4687_s10 + $0x60] ss:$16 sps:$4 sm:$0xff]  }
 0x63b   : > { %v3454_v47 = vld [vmem:[%s4687_s10 + $0x68] ss:$16 sps:$4 sm:$0xff]  }
 0x69a   : > { %v1467_v50 = vpop.xlane.xlu1 %1466 }
 0x69b   : > { %3633 = vrcp.f32 %v1467_v50  ;;  %v3459_v50 = vld [vmem:[%s4687_s10 + $0x84] ss:$16 sps:$4 sm:$0xff]  }
 0x6a5   : > { %v3634_v51 = vpop.eup %3633 }
 0x6a6   : > { %v1469_v52 = vmul.f32 %v3634_v51, %v3632_v43  ;;  %v3450_v43 = vld [vmem:[%s4687_s10 + $0x4c] ss:$16 sps:$4 sm:$0xff]  }
 0x6a7   : > { %2303 = vmatprep.subr.bf16.mxu0 %v3450_v43  ;;  %v3462_v51 = vld [vmem:[%s4687_s10 + $0x8c] ss:$16 sps:$4 sm:$0xff]  }
 0x6a8   : > { %v1470_v54 = vpack.c.bf16 %v1469_v52, %v1469_v52  ;;  %2304 = vmatpush1.bf16.msra.mxu0 %v3448_v45  ;;  %v3457_v52 = vld [vmem:[%s4687_s10 + $0x80] ss:$16 sps:$4 sm:$0xff]   ;;  %v3522_v43 = vld [vmem:[%s4687_s10 + $0x1cc] ss:$16 sps:$4 sm:$0xff]   ;;  %v3520_v45 = vld [vmem:[%s4687_s10 + $0x1c8] ss:$16 sps:$4 sm:$0xff]  }
 0x6aa   : > { %3219 = vmatmul.mubr.msk.bf16.vlgmr.msra.gmra.mrb[12].mxu1 %vm1366_vm4, %v1470_v54  ;;  %v3465_v54 = vld [vmem:[%s4687_s10 + $0xa4] ss:$16 sps:$4 sm:$0xff]  }
 0x6ab   : > { %1600 = vmatpush1.bf16.msra.mxu1 %v3409_v53  ;;  %1631 = vmatprep.mubr.bf16.mxu1 %v3657_v20  ;;  %v3460_v53 = vld [vmem:[%s4687_s10 + $0x88] ss:$16 sps:$4 sm:$0xff]  }
 0x6ac   : > { %1601 = vmatprep.subr.bf16.mxu1 %v3414_v55  ;;  %v3468_v55 = vld [vmem:[%s4687_s10 + $0xac] ss:$16 sps:$4 sm:$0xff]  }
 0x6af   : > { %1602 = vmatpush1.bf16.msra.mxu1 %v3412_v58  ;;  %v3463_v58 = vld [vmem:[%s4687_s10 + $0xa0] ss:$16 sps:$4 sm:$0xff]  }
 0x6b0   : > { %1603 = vmatprep.subr.bf16.mxu1 %v3417_v59  ;;  %v3466_v59 = vld [vmem:[%s4687_s10 + $0xa8] ss:$16 sps:$4 sm:$0xff]  }
 0x6b3   : > { %1604 = vmatpush1.bf16.msra.mxu1 %v3415_v60  ;;  %v3471_v60 = vld [vmem:[%s4687_s10 + $0xc4] ss:$16 sps:$4 sm:$0xff]  }
 0x6b4   : > { %1605 = vmatprep.subr.bf16.mxu1 %v3420_v61  ;;  %v3474_v61 = vld [vmem:[%s4687_s10 + $0xcc] ss:$16 sps:$4 sm:$0xff]  }
 0x6b7   : > { %1606 = vmatpush1.bf16.msra.mxu1 %v3418_v62  ;;  %v3469_v62 = vld [vmem:[%s4687_s10 + $0xc0] ss:$16 sps:$4 sm:$0xff]  }
 0x6b8   : > { %1607 = vmatprep.subr.bf16.mxu1 %v3423_v63  ;;  %v3472_v63 = vld [vmem:[%s4687_s10 + $0xc8] ss:$16 sps:$4 sm:$0xff]  }
 0x6bb   : > { %1608 = vmatpush1.bf16.msra.mxu1 %v3421_v0  ;;  %v3477_v0 = vld [vmem:[%s4687_s10 + $0xe4] ss:$16 sps:$4 sm:$0xff]  }
 0x6bc   : > { %1609 = vmatprep.subr.bf16.mxu1 %v3426_v1  ;;  %v3480_v1 = vld [vmem:[%s4687_s10 + $0xec] ss:$16 sps:$4 sm:$0xff]  }
 0x6bf   : > { %1610 = vmatpush1.bf16.msra.mxu1 %v3424_v2  ;;  %v3475_v2 = vld [vmem:[%s4687_s10 + $0xe0] ss:$16 sps:$4 sm:$0xff]  }
 0x6c0   : > { %1611 = vmatprep.subr.bf16.mxu1 %v3429_v3  ;;  %v3478_v3 = vld [vmem:[%s4687_s10 + $0xe8] ss:$16 sps:$4 sm:$0xff]  }
 0x6c3   : > { %1612 = vmatpush1.bf16.msra.mxu1 %v3427_v4  ;;  %v3483_v4 = vld [vmem:[%s4687_s10 + $0x104] ss:$16 sps:$4 sm:$0xff]  }
 0x6c4   : > { %1613 = vmatprep.subr.bf16.mxu1 %v3432_v5  ;;  %v3486_v5 = vld [vmem:[%s4687_s10 + $0x10c] ss:$16 sps:$4 sm:$0xff]  }
 0x6c7   : > { %1614 = vmatpush1.bf16.msra.mxu1 %v3430_v6  ;;  %v3481_v6 = vld [vmem:[%s4687_s10 + $0x100] ss:$16 sps:$4 sm:$0xff]  }
 0x6c8   : > { %2258 = vmatprep.subr.bf16.mxu1 %v3435_v16  ;;  %v3510_v16 = vld [vmem:[%s4687_s10 + $0x18c] ss:$16 sps:$4 sm:$0xff]  }
 0x77d   : > { %v1512_v7 = vpop.f32.mrb[12].mxu1 }
 0x77e   : > { %v1518_v8 = vpack.c.bf16 %v1512_v7, %v1512_v7  ;;  %v3220_v9 = vpop.f32.mrb[13].mxu1  ;;  %v3484_v7 = vld [vmem:[%s4687_s10 + $0x108] ss:$16 sps:$4 sm:$0xff]  }
 0x77f   : > { %v1515_v11 = vpop.f32.mrb[14].mxu1 }
 0x780   : > { %v3221_v12 = vpop.f32.mrb[15].mxu1  ;;  %1632 = vmatmul.mubr.bf16.vlgmr.msra.gmra.mrb[16].mxu1 %v1518_v8 }
 0x781   : > { %2259 = vmatpush1.bf16.msra.mxu1 %v3433_v36  ;;  %v3507_v36 = vld [vmem:[%s4687_s10 + $0x184] ss:$16 sps:$4 sm:$0xff]  }
 0x782   : > { %2260 = vmatprep.subr.bf16.mxu1 %v3441_v39  ;;  %v3511_v39 = vld [vmem:[%s4687_s10 + $0x1a0] ss:$16 sps:$4 sm:$0xff]  }
 0x785   : > { %2261 = vmatpush1.bf16.msra.mxu1 %v3439_v41  ;;  %v3514_v41 = vld [vmem:[%s4687_s10 + $0x1a8] ss:$16 sps:$4 sm:$0xff]  }
 0x786   : > { %2262 = vmatprep.subr.bf16.mxu1 %v3447_v42  ;;  %v3519_v42 = vld [vmem:[%s4687_s10 + $0x1c4] ss:$16 sps:$4 sm:$0xff]  }
 0x789   : > { %2263 = vmatpush1.bf16.msra.mxu1 %v3445_v44  ;;  %v3517_v44 = vld [vmem:[%s4687_s10 + $0x1c0] ss:$16 sps:$4 sm:$0xff]  }
 0x853   : > { %v1633_v18 = vpop.f32.mrb[16].mxu1 }
 0x854   : > { %v1755_v21 = vadd.f32 %v1754_v46, %v1633_v18  ;;  %v1635_v22 = vpop.f32.mrb[17].mxu1  ;;  %v3453_v46 = vld [vmem:[%s4687_s10 + $0x64] ss:$16 sps:$4 sm:$0xff]  }
 0x855   : > { %v1757_v24 = vadd.f32 %v1756_v48, %v1635_v22  ;;  %v1637_v25 = vpop.f32.mrb[18].mxu1  ;;  %v3456_v48 = vld [vmem:[%s4687_s10 + $0x6c] ss:$16 sps:$4 sm:$0xff]   ;;  %2264 = vmatprep.subr.bf16.mxu1 %v3453_v46  ;;  %v3489_v22 = vld [vmem:[%s4687_s10 + $0x124] ss:$16 sps:$4 sm:$0xff]  }
 0x856   : > { %v1773_v26 = vadd.f32 %v1766_v15, %v1755_v21  ;;  %v1638_v27 = vpop.f32.mrb[19].mxu1  ;;  %2305 = vmatprep.subr.bf16.mxu0 %v3456_v48  ;;  %2265 = vmatpush1.bf16.msra.mxu1 %v3451_v49  ;;  %v3487_v25 = vld [vmem:[%s4687_s10 + $0x120] ss:$16 sps:$4 sm:$0xff]   ;;  %v3525_v46 = vld [vmem:[%s4687_s10 + $0x1e4] ss:$16 sps:$4 sm:$0xff]  }
 0x857   : > { %v1774_v30 = vadd.f32 %v1770_v10, %v1757_v24  ;;  %2306 = vmatpush1.bf16.msra.mxu0 %v3454_v47  ;;  %2266 = vmatprep.subr.bf16.mxu1 %v3459_v50  ;;  %v3492_v24 = vld [vmem:[%s4687_s10 + $0x12c] ss:$16 sps:$4 sm:$0xff]   ;;  %v3495_v27 = vld [vmem:[%s4687_s10 + $0x144] ss:$16 sps:$4 sm:$0xff]   ;;  %v3523_v49 = vld [vmem:[%s4687_s10 + $0x1e0] ss:$16 sps:$4 sm:$0xff]  }
 0x858   : > { %2307 = vmatprep.subr.bf16.mxu0 %v3462_v51  ;;  %v3528_v48 = vld [vmem:[%s4687_s10 + $0x1ec] ss:$16 sps:$4 sm:$0xff]   ;;  %v3526_v47 = vld [vmem:[%s4687_s10 + $0x1e8] ss:$16 sps:$4 sm:$0xff]  }
 0x859   : > { %v1777_v20 = vcombine.low %v1773_v26, %v1774_v30  ;;  %v3490_v26 = vld [vmem:[%s4687_s10 + $0x128] ss:$16 sps:$4 sm:$0xff]   ;;  %v3498_v30 = vld [vmem:[%s4687_s10 + $0x14c] ss:$16 sps:$4 sm:$0xff]  }
 0x85a   : > { %2267 = vmatpush1.bf16.msra.mxu1 %v3457_v52  ;;  %v3531_v50 = vld [vmem:[%s4689_s12 + $0x4] ss:$8 sps:$4 sm:$0xff]  }
 0x85b   : > { %v4234_v31 = vadd.f32 %v3645_v23, %v1777_v20  ;;  %2308 = vmatpush1.bf16.msra.mxu0 %v3460_v53  ;;  %2268 = vmatprep.subr.bf16.mxu1 %v3465_v54  ;;  %v3493_v20 = vld [vmem:[%s4687_s10 + $0x140] ss:$16 sps:$4 sm:$0xff]   ;;  %v3496_v23 = vld [vmem:[%s4687_s10 + $0x148] ss:$16 sps:$4 sm:$0xff]  }
 0x85c   : > { %2309 = vmatprep.subr.bf16.mxu0 %v3468_v55  ;;  %v1780_v54 = vld [vmem:[%s4685_s8] sm:$0x3] }
 0x85d   : > { %v1783_v32 = vcombine.high %v4234_v31, %v4234_v31  ;;  %v1785_v33 = vsel %vm508_vm0, %v4234_v31, 0.0  ;;  %v1781_v55 = vld [vmem:[%s4686_s9] sm:$0x3] }
 0x85e   : > { %2269 = vmatpush1.bf16.msra.mxu1 %v3463_v58  ;;  %v1827_v58 = vrot.slane %v1780_v54, %v3862_v56 }
 0x85f   : > { %v1786_v34 = vsel %vm508_vm0, %v1783_v32, 0.0  ;;  %2310 = vmatpush1.bf16.msra.mxu0 %v3466_v59  ;;  %2270 = vmatprep.subr.bf16.mxu1 %v3471_v60  ;;  %v3501_v32 = vld [vmem:[%s4687_s10 + $0x164] ss:$16 sps:$4 sm:$0xff]   ;;  %v1831_v59 = vrot.slane %v1780_v54, %v3865_v57  ;;  %v1839_v60 = vrot.slane %v1781_v55, %v3862_v56 }
 0x860   : > { %v1787_v35 = vadd.f32 %v1786_v34, %v1785_v33  ;;  %2311 = vmatprep.subr.bf16.mxu0 %v3474_v61  ;;  %v3504_v33 = vld [vmem:[%s4687_s10 + $0x16c] ss:$16 sps:$4 sm:$0xff]   ;;  %v3499_v34 = vld [vmem:[%s4687_s10 + $0x160] ss:$16 sps:$4 sm:$0xff]   ;;  %v1843_v61 = vrot.slane %v1781_v55, %v3865_v57 }
 0x862   : > { %1788 = vadd.xlane.f32.xlu0 %v1787_v35  ;;  %2271 = vmatpush1.bf16.msra.mxu1 %v3469_v62  ;;  %v3502_v35 = vld [vmem:[%s4687_s10 + $0x168] ss:$16 sps:$4 sm:$0xff]  }
 0x863   : > { %2312 = vmatpush1.bf16.msra.mxu0 %v3472_v63  ;;  %2272 = vmatprep.subr.bf16.mxu1 %v3477_v0  ;;  %v1832_v0 = vcombine.low %v1827_v58, %v1831_v59 }
 0x864   : > { %2313 = vmatprep.subr.bf16.mxu0 %v3480_v1 }
 0x866   : > { %2273 = vmatpush1.bf16.msra.mxu1 %v3475_v2  ;;  %v1844_v2 = vcombine.low %v1839_v60, %v1843_v61 }
 0x867   : > { %2314 = vmatpush1.bf16.msra.mxu0 %v3478_v3  ;;  %2274 = vmatprep.subr.bf16.mxu1 %v3483_v4 }
 0x868   : > { %2315 = vmatprep.subr.bf16.mxu0 %v3486_v5 }
 0x86a   : > { %2275 = vmatpush1.bf16.msra.mxu1 %v3481_v6 }
 0x86b   : > { %2316 = vmatpush1.bf16.msra.mxu0 %v3484_v7  ;;  %2276 = vmatprep.subr.bf16.mxu1 %v3489_v22  ;;  %v3529_v7 = vld [vmem:[%s4689_s12] ss:$8 sps:$4 sm:$0xff]   ;;  %v3544_v22 = vld [vmem:[%s4689_s12 + $0x50] ss:$8 sps:$4 sm:$0xff]  }
 0x86c   : > { %2317 = vmatprep.subr.bf16.mxu0 %v3492_v24  ;;  %v3549_v24 = vld [vmem:[%s4689_s12 + $0x64] ss:$8 sps:$4 sm:$0xff]  }
 0x86e   : > { %2277 = vmatpush1.bf16.msra.mxu1 %v3487_v25  ;;  %v3547_v25 = vld [vmem:[%s4689_s12 + $0x60] ss:$8 sps:$4 sm:$0xff]  }
 0x86f   : > { %2318 = vmatpush1.bf16.msra.mxu0 %v3490_v26  ;;  %2278 = vmatprep.subr.bf16.mxu1 %v3495_v27  ;;  %v3552_v26 = vld [vmem:[%s4689_s12 + $0x74] ss:$8 sps:$4 sm:$0xff]   ;;  %v3550_v27 = vld [vmem:[%s4689_s12 + $0x70] ss:$8 sps:$4 sm:$0xff]  }
 0x870   : > { %2319 = vmatprep.subr.bf16.mxu0 %v3498_v30  ;;  %v3555_v30 = vld [vmem:[%s4689_s12 + $0x84] ss:$8 sps:$4 sm:$0xff]  }
 0x872   : > { %2279 = vmatpush1.bf16.msra.mxu1 %v3493_v20  ;;  %v3553_v20 = vld [vmem:[%s4689_s12 + $0x80] ss:$8 sps:$4 sm:$0xff]  }
 0x873   : > { %2320 = vmatpush1.bf16.msra.mxu0 %v3496_v23  ;;  %2280 = vmatprep.subr.bf16.mxu1 %v3501_v32  ;;  %v3558_v23 = vld [vmem:[%s4689_s12 + $0x94] ss:$8 sps:$4 sm:$0xff]   ;;  %v3556_v32 = vld [vmem:[%s4689_s12 + $0x90] ss:$8 sps:$4 sm:$0xff]  }
 0x874   : > { %2321 = vmatprep.subr.bf16.mxu0 %v3504_v33  ;;  %v3561_v33 = vld [vmem:[%s4689_s12 + $0xa4] ss:$8 sps:$4 sm:$0xff]  }
 0x876   : > { %2281 = vmatpush1.bf16.msra.mxu1 %v3499_v34  ;;  %v3559_v34 = vld [vmem:[%s4689_s12 + $0xa0] ss:$8 sps:$4 sm:$0xff]  }
 0x877   : > { %2322 = vmatpush1.bf16.msra.mxu0 %v3502_v35  ;;  %2282 = vmatprep.subr.bf16.mxu1 %v3507_v36  ;;  %v3562_v35 = vld [vmem:[%s4689_s12 + $0xb0] ss:$8 sps:$4 sm:$0xff]   ;;  %v3564_v36 = vld [vmem:[%s4689_s12 + $0xb4] ss:$8 sps:$4 sm:$0xff]  }
 0x878   : > { %2323 = vmatprep.subr.bf16.mxu0 %v3510_v16  ;;  %v3567_v16 = vld [vmem:[%s4689_s12 + $0xc4] ss:$8 sps:$4 sm:$0xff]  }
 0x87a   : > { %2283 = vmatpush1.bf16.msra.mxu1 %v3505_v37  ;;  %v3565_v37 = vld [vmem:[%s4689_s12 + $0xc0] ss:$8 sps:$4 sm:$0xff]  }
 0x87b   : > { %2324 = vmatpush1.bf16.msra.mxu0 %v3508_v38  ;;  %2284 = vmatprep.subr.bf16.mxu1 %v3513_v40  ;;  %v3570_v38 = vld [vmem:[%s4689_s12 + $0xd4] ss:$8 sps:$4 sm:$0xff]   ;;  %v3573_v40 = vld [vmem:[%s4689_s12 + $0xe4] ss:$8 sps:$4 sm:$0xff]  }
 0x87c   : > { %2325 = vmatprep.subr.bf16.mxu0 %v3516_v14  ;;  %v3576_v14 = vld [vmem:[%s4689_s12 + $0xf4] ss:$8 sps:$4 sm:$0xff]  }
 0x87e   : > { %2285 = vmatpush1.bf16.msra.mxu1 %v3511_v39  ;;  %v3568_v39 = vld [vmem:[%s4689_s12 + $0xd0] ss:$8 sps:$4 sm:$0xff]  }
 0x87f   : > { %2326 = vmatpush1.bf16.msra.mxu0 %v3514_v41  ;;  %2286 = vmatprep.subr.bf16.mxu1 %v3519_v42  ;;  %v3571_v41 = vld [vmem:[%s4689_s12 + $0xe0] ss:$8 sps:$4 sm:$0xff]   ;;  %v3574_v42 = vld [vmem:[%s4689_s12 + $0xf0] ss:$8 sps:$4 sm:$0xff]  }
 0x880   : > { %2327 = vmatprep.subr.bf16.mxu0 %v3522_v43  ;;  %v3579_v43 = vld [vmem:[%s4689_s12 + $0x104] ss:$8 sps:$4 sm:$0xff]  }
 0x882   : > { %2287 = vmatpush1.bf16.msra.mxu1 %v3517_v44  ;;  %v4555_v44 = vld [vmem:[%s4688_s11] sm:$0xf] }
 0x883   : > { %2328 = vmatpush1.bf16.msra.mxu0 %v3520_v45  ;;  %2288 = vmatprep.subr.bf16.mxu1 %v3525_v46  ;;  %v1921_v45 = vrot.slane %v4555_v44, %v3862_v56  ;;  %v1925_v46 = vrot.slane %v4555_v44, %v3865_v57 }
 0x884   : > { %2329 = vmatprep.subr.bf16.mxu0 %v3528_v48  ;;  %v1933_v48 = vrot.slane %v4555_v44, %v689_v17 }
 0x886   : > { %2289 = vmatpush1.bf16.msra.mxu1 %v3523_v49 }
 0x887   : > { %2330 = vmatpush1.bf16.msra.mxu0 %v3526_v47  ;;  %2776 = vmatprep.subr.bf16.mxu1 %v3531_v50 }
 0x8ef   : > { %v1789_v8 = vpop.xlane.xlu0 %1788 }
 0x8f0   : > { %v1790_v9 = vmul.f32 0.00390625, %v1789_v8 }
 0x8f2   : > { %v1798_v11 = vrot.slane %v1790_v9, %v3814_v29  ;;  %v3534_v9 = vld [vmem:[%s4689_s12 + $0x14] ss:$8 sps:$4 sm:$0xff]  }
 0x8f4   : > { %v4351_v12 = vsub.f32 %v4234_v31, %v1798_v11  ;;  %v3537_v11 = vld [vmem:[%s4689_s12 + $0x24] ss:$8 sps:$4 sm:$0xff]  }
 0x8f6   : > { %v1801_v13 = vmul.f32 %v4351_v12, %v4351_v12 }
 0x8f8   : > { %v1803_v15 = vcombine.high %v1801_v13, %v1801_v13  ;;  %v1805_v18 = vsel %vm508_vm0, %v1801_v13, 0.0  ;;  %v3540_v13 = vld [vmem:[%s4689_s12 + $0x34] ss:$8 sps:$4 sm:$0xff]  }
 0x8fa   : > { %v1806_v10 = vsel %vm508_vm0, %v1803_v15, 0.0  ;;  %v3538_v15 = vld [vmem:[%s4689_s12 + $0x30] ss:$8 sps:$4 sm:$0xff]  }
 0x8fb   : > { %v1807_v21 = vadd.f32 %v1806_v10, %v1805_v18  ;;  %v3543_v18 = vld [vmem:[%s4689_s12 + $0x44] ss:$8 sps:$4 sm:$0xff]   ;;  %v3541_v10 = vld [vmem:[%s4689_s12 + $0x40] ss:$8 sps:$4 sm:$0xff]  }
 0x8fd   : > { %1808 = vadd.xlane.f32.xlu1 %v1807_v21  ;;  %v3546_v21 = vld [vmem:[%s4689_s12 + $0x54] ss:$8 sps:$4 sm:$0xff]  }
 0x98a   : > { %v1809_v51 = vpop.xlane.xlu1 %1808 }
 0x98b   : > { %v1810_v52 = vmul.f32 0.00390625, %v1809_v51 }
 0x98d   : > { %v1811_v53 = vadd.f32 1e-05, %v1810_v52 }
 0x98f   : > { %3635 = vrsqrt.f32 %v1811_v53 }
 0x999   : > { %v3636_v62 = vpop.eup %3635 }
 0x99a   : > { %v1820_v63 = vrot.slane %v3636_v62, %v3814_v29  ;;  %v3532_v29 = vld [vmem:[%s4689_s12 + $0x10] ss:$8 sps:$4 sm:$0xff]  }
 0x99c   : > { %v1822_v1 = vmul.f32 %v1820_v63, %v4351_v12  ;;  %v3535_v12 = vld [vmem:[%s4689_s12 + $0x20] ss:$8 sps:$4 sm:$0xff]  }
 0x99e   : > { %v1834_v3 = vmul.f32 %v1832_v0, %v1822_v1 }
 0x9a0   : > { %v1846_v4 = vadd.f32 %v1844_v2, %v1834_v3 }
 0x9a2   : > { %v1848_v5 = vcombine.high %v1846_v4, %v1846_v4  ;;  %v1850_v8 = vpack.c.bf16 %v1846_v4, %v1846_v4 }
 0x9a4   : > { %v1851_v6 = vpack.c.bf16 %v1848_v5, %v1848_v5 }
 0x9a6   : > { %2290 = vmatprep.mubr.bf16.mxu1 %v1851_v6  ;;  %2331 = vmatprep.mubr.bf16.mxu0 %v1851_v6 }
 0x9a7   : > { %2291 = vmatmul.mubr.bf16.vlgmr.msra.gmra.mrb[20].mxu1 %v1850_v8  ;;  %2332 = vmatmul.mubr.bf16.vlgmr.msra.gmra.mrb[16].mxu0 %v1850_v8 }
 0x9a8   : > { %2777 = vmatpush1.bf16.msra.mxu1 %v3529_v7 }
 0x9a9   : > { %2778 = vmatprep.subr.bf16.mxu1 %v3534_v9 }
 0x9ac   : > { %2779 = vmatpush1.bf16.msra.mxu1 %v3532_v29 }
 0x9ad   : > { %2780 = vmatprep.subr.bf16.mxu1 %v3537_v11 }
 0x9b0   : > { %2781 = vmatpush1.bf16.msra.mxu1 %v3535_v12 }
 0x9b1   : > { %2782 = vmatprep.subr.bf16.mxu1 %v3540_v13 }
 0x9b4   : > { %2783 = vmatpush1.bf16.msra.mxu1 %v3538_v15 }
 0x9b5   : > { %2784 = vmatprep.subr.bf16.mxu1 %v3543_v18 }
 0x9b8   : > { %2785 = vmatpush1.bf16.msra.mxu1 %v3541_v10 }
 0x9b9   : > { %2786 = vmatprep.subr.bf16.mxu1 %v3546_v21 }
 0x9bc   : > { %2787 = vmatpush1.bf16.msra.mxu1 %v3544_v22 }
 0x9bd   : > { %2788 = vmatprep.subr.bf16.mxu1 %v3549_v24 }
 0x9c0   : > { %2789 = vmatpush1.bf16.msra.mxu1 %v3547_v25 }
 0x9c1   : > { %2790 = vmatprep.subr.bf16.mxu1 %v3552_v26 }
 0x9c4   : > { %2791 = vmatpush1.bf16.msra.mxu1 %v3550_v27 }
 0x9c5   : > { %2792 = vmatprep.subr.bf16.mxu1 %v3555_v30 }
 0x9c8   : > { %2793 = vmatpush1.bf16.msra.mxu1 %v3553_v20  ;;  %v3577_v20 = vld [vmem:[%s4689_s12 + $0x100] ss:$8 sps:$4 sm:$0xff]  }
 0x9c9   : > { %2794 = vmatprep.subr.bf16.mxu1 %v3558_v23 }
 0x9cc   : > { %2795 = vmatpush1.bf16.msra.mxu1 %v3556_v32  ;;  %v3582_v32 = vld [vmem:[%s4689_s12 + $0x114] ss:$8 sps:$4 sm:$0xff]  }
 0x9cd   : > { %2796 = vmatprep.subr.bf16.mxu1 %v3561_v33 }
 0x9d0   : > { %2797 = vmatpush1.bf16.msra.mxu1 %v3559_v34  ;;  %v3580_v34 = vld [vmem:[%s4689_s12 + $0x110] ss:$8 sps:$4 sm:$0xff]  }
 0x9d1   : > { %2798 = vmatprep.subr.bf16.mxu1 %v3564_v36  ;;  %v3583_v36 = vld [vmem:[%s4689_s12 + $0x120] ss:$8 sps:$4 sm:$0xff]  }
 0x9d4   : > { %2799 = vmatpush1.bf16.msra.mxu1 %v3562_v35  ;;  %v3585_v35 = vld [vmem:[%s4689_s12 + $0x124] ss:$8 sps:$4 sm:$0xff]  }
 0x9d5   : > { %2800 = vmatprep.subr.bf16.mxu1 %v3567_v16  ;;  %v3588_v16 = vld [vmem:[%s4689_s12 + $0x134] ss:$8 sps:$4 sm:$0xff]  }
 0x9d8   : > { %2801 = vmatpush1.bf16.msra.mxu1 %v3565_v37  ;;  %v3586_v37 = vld [vmem:[%s4689_s12 + $0x130] ss:$8 sps:$4 sm:$0xff]  }
 0x9d9   : > { %2802 = vmatprep.subr.bf16.mxu1 %v3570_v38  ;;  %v3591_v38 = vld [vmem:[%s4689_s12 + $0x144] ss:$8 sps:$4 sm:$0xff]  }
 0x9dc   : > { %2803 = vmatpush1.bf16.msra.mxu1 %v3568_v39  ;;  %v1929_v39 = vrot.slane %v4555_v44, %v685_v19  ;;  %v3600_v44 = vld [vmem:[%s4689_s12 + $0x174] ss:$8 sps:$4 sm:$0xff]  }
 0x9dd   : > { %2804 = vmatprep.subr.bf16.mxu1 %v3573_v40  ;;  %v3589_v40 = vld [vmem:[%s4689_s12 + $0x140] ss:$8 sps:$4 sm:$0xff]  }
 0x9e0   : > { %2805 = vmatpush1.bf16.msra.mxu1 %v3571_v41  ;;  %v3594_v41 = vld [vmem:[%s4689_s12 + $0x154] ss:$8 sps:$4 sm:$0xff]  }
 0x9e1   : > { %2806 = vmatprep.subr.bf16.mxu1 %v3576_v14 }
 0x9e4   : > { %2807 = vmatpush1.bf16.msra.mxu1 %v3574_v42  ;;  %v3592_v42 = vld [vmem:[%s4689_s12 + $0x150] ss:$8 sps:$4 sm:$0xff]  }
 0x9e5   : > { %2817 = vmatprep.subr.bf16.mxu1 %v3579_v43  ;;  %v3595_v43 = vld [vmem:[%s4689_s12 + $0x160] ss:$8 sps:$4 sm:$0xff]  }
 0xa7a   : > { %v2292_v49 = vpop.f32.mrb[20].mxu1  ;;  %v4564_v47 = vpop.f32.mrb[16].mxu0 }
 0xa7b   : > { %v2293_v50 = vadd.f32 %v2292_v49, %v1921_v45  ;;  %v2294_v51 = vpop.f32.mrb[21].mxu1  ;;  %v2335_v52 = vpop.f32.mrb[17].mxu0  ;;  %v2334_v14 = vadd.f32 %v4564_v47, %v1929_v39  ;;  %v3601_v47 = vld [vmem:[%s4689_s12 + $0x180] ss:$8 sps:$4 sm:$0xff]  }
 0xa7c   : > { %v2295_v53 = vadd.f32 %v2294_v51, %v1925_v46  ;;  %v2336_v54 = vadd.f32 %v2335_v52, %v1933_v48  ;;  %v2296_v55 = vpop.f32.mrb[22].mxu1  ;;  %v2337_v58 = vpop.f32.mrb[18].mxu0  ;;  %v3598_v46 = vld [vmem:[%s4689_s12 + $0x170] ss:$8 sps:$4 sm:$0xff]   ;;  %v3603_v48 = vld [vmem:[%s4689_s12 + $0x184] ss:$8 sps:$4 sm:$0xff]  }
 0xa7d   : > { %v2344_v59 = vmul.f32 0.044715, %v2293_v50  ;;  %v2297_v60 = vpop.f32.mrb[23].mxu1  ;;  %v2338_v61 = vpop.f32.mrb[19].mxu0  ;;  %v2340_v13 = vmul.f32 0.5, %v2293_v50 }
 0xa7e   : > { %v2345_v62 = vmul.f32 0.044715, %v2295_v53  ;;  %v2347_v63 = vmul.f32 0.044715, %v2336_v54  ;;  %v2341_v10 = vmul.f32 0.5, %v2295_v53  ;;  %v2343_v24 = vmul.f32 0.5, %v2336_v54 }
 0xa7f   : > { %v2348_v0 = vmul.f32 %v2344_v59, %v2293_v50  ;;  %v2346_v19 = vmul.f32 0.044715, %v2334_v14  ;;  %v3604_v52 = vld [vmem:[%s4689_s12 + $0x190] ss:$8 sps:$4 sm:$0xff]   ;;  %v3612_v58 = vld [vmem:[%s4689_s12 + $0x1b4] ss:$8 sps:$4 sm:$0xff]  }
 0xa80   : > { %v2349_v1 = vmul.f32 %v2345_v62, %v2295_v53  ;;  %v2351_v2 = vmul.f32 %v2347_v63, %v2336_v54  ;;  %v3610_v59 = vld [vmem:[%s4689_s12 + $0x1b0] ss:$8 sps:$4 sm:$0xff]   ;;  %v3615_v60 = vld [vmem:[%s4689_s12 + $0x1c4] ss:$8 sps:$4 sm:$0xff]   ;;  %v3613_v61 = vld [vmem:[%s4689_s12 + $0x1c0] ss:$8 sps:$4 sm:$0xff]  }
 0xa81   : > { %v2352_v3 = vmul.f32 %v2348_v0, %v2293_v50  ;;  %v2350_v45 = vmul.f32 %v2346_v19, %v2334_v14  ;;  %v3618_v62 = vld [vmem:[%s4689_s12 + $0x1d4] ss:$8 sps:$4 sm:$0xff]   ;;  %v3616_v63 = vld [vmem:[%s4689_s12 + $0x1d0] ss:$8 sps:$4 sm:$0xff]   ;;  %v3621_v0 = vld [vmem:[%s4689_s12 + $0x1e4] ss:$8 sps:$4 sm:$0xff]  }
 0xa82   : > { %v2353_v17 = vmul.f32 %v2349_v1, %v2295_v53  ;;  %v2355_v4 = vmul.f32 %v2351_v2, %v2336_v54  ;;  %v3619_v2 = vld [vmem:[%s4689_s12 + $0x1e0] ss:$8 sps:$4 sm:$0xff]  }
 0xa83   : > { %v2356_v5 = vadd.f32 %v2352_v3, %v2293_v50  ;;  %v2354_v49 = vmul.f32 %v2350_v45, %v2334_v14  ;;  %v3606_v50 = vld [vmem:[%s4689_s12 + $0x194] ss:$8 sps:$4 sm:$0xff]  }
 0xa84   : > { %v2357_v6 = vadd.f32 %v2353_v17, %v2295_v53  ;;  %v2359_v7 = vadd.f32 %v2355_v4, %v2336_v54  ;;  %v3609_v53 = vld [vmem:[%s4689_s12 + $0x1a4] ss:$8 sps:$4 sm:$0xff]   ;;  %v3607_v54 = vld [vmem:[%s4689_s12 + $0x1a0] ss:$8 sps:$4 sm:$0xff]   ;;  %v3624_v3 = vld [vmem:[%s4689_s12 + $0x1f4] ss:$8 sps:$4 sm:$0xff]  }
 0xa85   : > { %v2360_v8 = vmul.f32 0.7978846, %v2356_v5  ;;  %v2358_v51 = vadd.f32 %v2354_v49, %v2334_v14  ;;  %v2342_v4 = vmul.f32 0.5, %v2334_v14  ;;  %v3622_v5 = vld [vmem:[%s4689_s12 + $0x1f0] ss:$8 sps:$4 sm:$0xff]  }
 0xa86   : > { %v2361_v9 = vmul.f32 0.7978846, %v2357_v6  ;;  %v2363_v29 = vmul.f32 0.7978846, %v2359_v7 }
 0xa87   : > { %3637 = vtanh.f32 %v2360_v8  ;;  %v2362_v55 = vmul.f32 0.7978846, %v2358_v51  ;;  %v2444_v8 = vld [vmem:[%s4690_s13] sm:$0x3] }
 0xa88   : > { %3639 = vtanh.f32 %v2361_v9  ;;  %v2449_v9 = vrot.slane %v2444_v8, %v3862_v56 }
 0xa89   : > { %3641 = vtanh.f32 %v2363_v29  ;;  %v2453_v29 = vrot.slane %v2444_v8, %v3865_v57 }
 0xa8a   : > { %3643 = vtanh.f32 %v2362_v55 }
 0xa91   : > { %v3638_v11 = vpop.eup %3637 }
 0xa92   : > { %v3640_v12 = vpop.eup %3639  ;;  %v2368_v15 = vadd.f32 1.0, %v3638_v11 }
 0xa93   : > { %v3642_v18 = vpop.eup %3641  ;;  %v2369_v21 = vadd.f32 1.0, %v3640_v12 }
 0xa94   : > { %v2372_v22 = vmul.f32 %v2368_v15, %v2340_v13  ;;  %v2371_v25 = vadd.f32 1.0, %v3642_v18  ;;  %v3644_v1 = vpop.eup %3643 }
 0xa95   : > { %v2373_v26 = vmul.f32 %v2369_v21, %v2341_v10  ;;  %v2370_v17 = vadd.f32 1.0, %v3644_v1 }
 0xa96   : > { %v2375_v27 = vmul.f32 %v2371_v25, %v2343_v24  ;;  %v2376_v23 = vpack.c.bf16 %v2372_v22, %v2372_v22 }
 0xa97   : > { %v2377_v30 = vpack.c.bf16 %v2373_v26, %v2373_v26  ;;  %v2374_v6 = vmul.f32 %v2370_v17, %v2342_v4 }
 0xa98   : > { %v2379_v33 = vpack.c.bf16 %v2375_v27, %v2375_v27 }
 0xa99   : > { %2808 = vmatprep.mubr.bf16.mxu1 %v2377_v30  ;;  %v2378_v7 = vpack.c.bf16 %v2374_v6, %v2374_v6 }
 0xa9a   : > { %2809 = vmatmul.mubr.bf16.vlgmr.msra.gmra.mrb[24].mxu1 %v2376_v23 }
 0xa9b   : > { %2818 = vmatpush1.bf16.msra.mxu1 %v3577_v20  ;;  %2849 = vmatprep.mubr.bf16.mxu1 %v2379_v33 }
 0xa9c   : > { %2819 = vmatprep.subr.bf16.mxu1 %v3582_v32 }
 0xa9f   : > { %2820 = vmatpush1.bf16.msra.mxu1 %v3580_v34 }
 0xaa0   : > { %2821 = vmatprep.subr.bf16.mxu1 %v3585_v35 }
 0xaa3   : > { %2822 = vmatpush1.bf16.msra.mxu1 %v3583_v36 }
 0xaa4   : > { %2823 = vmatprep.subr.bf16.mxu1 %v3588_v16 }
 0xaa7   : > { %2824 = vmatpush1.bf16.msra.mxu1 %v3586_v37 }
 0xaa8   : > { %2825 = vmatprep.subr.bf16.mxu1 %v3591_v38 }
 0xaab   : > { %2826 = vmatpush1.bf16.msra.mxu1 %v3589_v40 }
 0xaac   : > { %2827 = vmatprep.subr.bf16.mxu1 %v3594_v41 }
 0xaaf   : > { %2828 = vmatpush1.bf16.msra.mxu1 %v3592_v42 }
 0xab0   : > { %2829 = vmatprep.subr.bf16.mxu1 %v3597_v28 }
 0xab3   : > { %2830 = vmatpush1.bf16.msra.mxu1 %v3595_v43 }
 0xab4   : > { %2831 = vmatprep.subr.bf16.mxu1 %v3600_v44 }
 0xab7   : > { %2832 = vmatpush1.bf16.msra.mxu1 %v3598_v46 }
 0xab8   : > { %2833 = vmatprep.subr.bf16.mxu1 %v3603_v48 }
 0xabb   : > { %2834 = vmatpush1.bf16.msra.mxu1 %v3601_v47 }
 0xabc   : > { %2835 = vmatprep.subr.bf16.mxu1 %v3606_v50 }
 0xabf   : > { %2836 = vmatpush1.bf16.msra.mxu1 %v3604_v52 }
 0xac0   : > { %2837 = vmatprep.subr.bf16.mxu1 %v3609_v53 }
 0xac3   : > { %2838 = vmatpush1.bf16.msra.mxu1 %v3607_v54 }
 0xac4   : > { %2839 = vmatprep.subr.bf16.mxu1 %v3612_v58 }
 0xac7   : > { %2840 = vmatpush1.bf16.msra.mxu1 %v3610_v59 }
 0xac8   : > { %2841 = vmatprep.subr.bf16.mxu1 %v3615_v60 }
 0xacb   : > { %2842 = vmatpush1.bf16.msra.mxu1 %v3613_v61 }
 0xacc   : > { %2843 = vmatprep.subr.bf16.mxu1 %v3618_v62 }
 0xacf   : > { %2844 = vmatpush1.bf16.msra.mxu1 %v3616_v63 }
 0xad0   : > { %2845 = vmatprep.subr.bf16.mxu1 %v3621_v0 }
 0xad3   : > { %2846 = vmatpush1.bf16.msra.mxu1 %v3619_v2 }
 0xad4   : > { %2847 = vmatprep.subr.bf16.mxu1 %v3624_v3 }
 0xad7   : > { %2848 = vmatpush1.bf16.msra.mxu1 %v3622_v5 }
 0xada   : > { %2850 = vmatmul.mubr.bf16.vlgmr.msra.gmra.mrb[24].mxu1 %v2378_v7 }
 0xbad   : > { %v2851_v11 = vpop.f32.mrb[24].mxu1 }
 0xbae   : > { %v3222_v12 = vadd.f32 %v2851_v11, %v2449_v9  ;;  %v2853_v13 = vpop.f32.mrb[25].mxu1 }
 0xbaf   : > { %v3223_v15 = vadd.f32 %v2853_v13, %v2453_v29  ;;  %v2855_v18 = vpop.f32.mrb[26].mxu1 }
 0xbb0   : > { %v2856_v10 = vpop.f32.mrb[27].mxu1 }
 0xbb1   : > { %v2860_v21 = vcombine.low %v3222_v12, %v3223_v15 }
 0xbb3   : > { %v2862_v22 = vadd.f32 %v2860_v21, %v4234_v31 }
 0xbb5   : > { %2863 = vst [vmem:[%s467_s26] sm:$0xff] %v2862_v22 }
 0xbb6 PF: > { %s24_s29 = sadd.s32 1, %s3652_s29  }
 0xbb7   : > { %p21_p4 = scmp.ge.s32.totalorder %s24_s29, 4  }
 0xbb9   :  { %23 = sbr.rel (!%p21_p4) target bundleno = 1 (0x1), region = 106 }

// kernel: encode_sample.5
= control target key start
LH: loop header
LB: loop body
LE: loop exit
PB: predicated region body
PF: predicated region fallthrough
CT: control target
= control target key end

     0   :  { %19 = vsyncpa [#allocation3], 0  ;;  %s4612_s0 = inlined_call_operand.vmem [shape: f32[2,4,256], index: 0, kind: input, shape index: {}]   ;;  %s4613_s1 = inlined_call_operand.vmem [shape: f32[4,4], index: 1, kind: input, shape index: {}]   ;;  %s4614_s2 = inlined_call_operand.vmem [shape: bf16[256,768], index: 2, kind: input, shape index: {}]   ;;  %s4615_s3 = inlined_call_operand.vmem [shape: f32[1,768], index: 3, kind: input, shape index: {}]   ;;  %s4616_s4 = inlined_call_operand.hbm [shape: bf16[256,256], index: 4, kind: input, shape index: {}]   ;;  %s4617_s5 = inlined_call_operand.vmem [shape: f32[1,256], index: 5, kind: input, shape index: {}]   ;;  %s4618_s6 = inlined_call_operand.vmem [shape: f32[1,256], index: 6, kind: input, shape index: {}]   ;;  %s4619_s7 = inlined_call_operand.vmem [shape: f32[1,256], index: 7, kind: input, shape index: {}]   ;;  %s4620_s8 = inlined_call_operand.vmem [shape: f32[1,256], index: 8, kind: input, shape index: {}]   ;;  %s4621_s9 = inlined_call_operand.vmem [shape: f32[1,256], index: 9, kind: input, shape index: {}]   ;;  %s4622_s10 = inlined_call_operand.vmem [shape: bf16[256,512], index: 10, kind: input, shape index: {}]   ;;  %s4623_s11 = inlined_call_operand.vmem [shape: f32[1,512], index: 11, kind: input, shape index: {}]   ;;  %s4624_s12 = inlined_call_operand.hbm [shape: bf16[512,256], index: 12, kind: input, shape index: {}]   ;;  %s4625_s13 = inlined_call_operand.vmem [shape: f32[1,256], index: 13, kind: input, shape index: {}]   ;;  %s4626_s14 = inlined_call_operand.vmem [shape: f32[2,4,256], index: 14, kind: output, shape index: {}]  }
   0x1   :  { %20 = vsyncpa [#allocation5], 0  ;;  %s3880_s29 = smov 0  }
   0x2 LB: > { %4630 = sst [smem:[#allocation8_spill]] %s3795_s29  ;;  %s3886_s30 = sadd.s32 4294967295, %s3795_s29   ;;  %s3795_s29 = sphi %s3880_s29, %s26_s29  }
   0x3   : > { %p2973_p0 = scmp.ge.s32.totalorder %s3795_s29, 1  ;;  %p356_p1 = scmp.lt.s32.totalorder %s3795_s29, 3 }
   0x4   : > { %s3797_s15 = smov [#allocation2]   ;;  %p4627_p3 = scmp.eq.s32.totalorder %s3886_s30, 0 }
   0x5   : > { %s377_s16 = sshll.u32 %s3797_s15, 4  ;;  %p3890_p2 = pnand %p2973_p0, %p356_p1  ;;  %s378_s16 = int_to_ptr.vmem [resolvable:$true] %s377_s16 }
   0x6   : > { %s3798_s18 = smov [#allocation4]   ;;  %s3725_s23 = scalar_lea.hbm %s4616_s4, 4096 }
   0x7   : > { %s4631_s17 = scalar_select %p3890_p2, 1, 0 }
   0x8   : > { %p3292_p4 = pneg %p3890_p2  ;;  %s411_s19 = sshll.u32 %s3798_s18, 4  ;;  %s3903_s19 = int_to_ptr.vmem [resolvable:$true] %s411_s19 }
   0x9   : > { %p3726_p6 = scmp.ne.s32.totalorder %s4616_s4, %s3725_s23  ;;  %p3732_p10 = scmp.lt.u32.totalorder %s3725_s23, %s4616_s4 }
   0xa   : > { %p3899_p5 = pnand %p4627_p3, %p3292_p4 }
   0xc   : > { %p3727_p7 = pneg %p3899_p5 }
   0xe   : > { %p3728_p8 = pnand %p3727_p7, %p3726_p6 }
  0x10   : > { %p3729_p9 = pneg %p3728_p8 }
  0x12   : > { %p3734_p11 = pnand %p3732_p10, %p3729_p9 }
  0x14   : > { %3737 = shalt.err (!%p3734_p11)
}
  0x15   : > { %s3738_s28 = scalar_lea.vmem %s378_s16, 4096  ;;  %p3746_p1 = scmp.lt.s32.totalorder %s378_s16, %s378_s16 }
  0x16   : > { %p3739_p12 = scmp.ne.s32.totalorder %s378_s16, %s3738_s28  ;;  %p3747_p4 = scmp.lt.s32.totalorder %s3738_s28, %s3738_s28 }
  0x18   : > { %p3741_p13 = pnand %p3739_p12, %p3727_p7  ;;  %p3748_p3 = por %p3747_p4, %p3746_p1 }
  0x1a   : > { %p3742_p0 = pneg %p3741_p13 }
  0x1c   : > { %p3749_p2 = pnand %p3748_p3, %p3742_p0 }
  0x1e   : > { %3752 = shalt.err (!%p3749_p2)
}
  0x1f   : > { %s3799_s15 = smov 128   ;;  %s3800_s18 = smov 8  }
  0x20   : > { %3295 = dma.hbm_to_vmem [thread:$0]  (!%p3899_p5), %s4616_s4, 4096, %s378_s16, [#allocation3], %s3799_s15, %s3799_s15, %s3800_s18  }
  0x21   : > { %s3753_s25 = scalar_lea.hbm %s4624_s12, 8192 }
  0x22   : > { %p3754_p6 = scmp.ne.s32.totalorder %s4624_s12, %s3753_s25  ;;  %p3760_p8 = scmp.lt.u32.totalorder %s3753_s25, %s4624_s12 }
  0x24   : > { %p3756_p2 = pnand %p3754_p6, %p3727_p7 }
  0x26   : > { %p3757_p3 = pneg %p3756_p2 }
  0x28   : > { %p3762_p9 = pnand %p3760_p8, %p3757_p3 }
  0x2a   : > { %3765 = shalt.err (!%p3762_p9)
}
  0x2b   : > { %s3766_s16 = scalar_lea.vmem %s3903_s19, 8192  ;;  %p3774_p13 = scmp.lt.s32.totalorder %s3903_s19, %s3903_s19 }
  0x2c   : > { %p3767_p10 = scmp.ne.s32.totalorder %s3903_s19, %s3766_s16  ;;  %p3775_p0 = scmp.lt.s32.totalorder %s3766_s16, %s3766_s16 }
  0x2e   : > { %p3769_p11 = pnand %p3767_p10, %p3727_p7  ;;  %p3776_p1 = por %p3775_p0, %p3774_p13 }
  0x30   : > { %p3770_p12 = pneg %p3769_p11 }
  0x32   : > { %p3777_p4 = pnand %p3776_p1, %p3770_p12 }
  0x34   : > { %3780 = shalt.err (!%p3777_p4)
}
  0x35   : > { %3298 = dma.hbm_to_vmem [thread:$0]  (!%p3899_p5), %s4624_s12, 8192, %s3903_s19, [#allocation5], %s3799_s15, %s3799_s15, %s3800_s18  }
  0x36   : > { %p4633_p6 = scmp.ne.s32.totalorder %s4631_s17, 0 }
  0x37   : > { %p4634_p2 = scmp.eq.s32.totalorder (!%p4633_p6), %s3886_s30, 0 }
  0x38   : > { %438 = sbr.rel (%p4633_p6) target bundleno = 3054 (0xbee), region = 76 }
  0x3f   : > { %3786 = dma.done.wait (%p4634_p2), [#allocation3], 4096   ;;  %p4635_p7 = pmov %p4634_p2 }
  0x40   : > { %p4636_p3 = pmov %p4634_p2 }
  0x41   : > { %3788 = vsyncadd (%p4635_p7), [#allocation3], 4294963200 }
  0x42   : > { %3790 = dma.done.wait (%p4636_p3), [#allocation5], 8192   ;;  %p4637_p8 = pmov %p4634_p2 }
  0x43   : > { %p488_p9 = scmp.lt.s32.totalorder %s3886_s30, 1  ;;  %vm538_vm0 = vcmask 1043456   ;;  %v3320_v5 = vld [vmem:[%s4614_s2 + $0x4] ss:$24 sps:$4 sm:$0xff]   ;;  %v3322_v6 = vld [vmem:[%s4614_s2] ss:$24 sps:$4 sm:$0xff]   ;;  %v550_v26 = vlaneseq }
  0x44   : > { %3792 = vsyncadd (%p4637_p8), [#allocation5], 4294959104  ;;  %v3323_v7 = vld [vmem:[%s4614_s2 + $0x34] ss:$24 sps:$4 sm:$0xff]   ;;  %1215 = vmatprep.subr.bf16.mxu0 %v3320_v5  ;;  %v3325_v8 = vld [vmem:[%s4614_s2 + $0x30] ss:$24 sps:$4 sm:$0xff]  }
  0x45   : > { %s4640_s30 = smov (!%p488_p9, %s3886_s30), 1  ;;  %1216 = vmatpush1.bf16.msra.mxu0 %v3322_v6  ;;  %v3326_v9 = vld [vmem:[%s4614_s2 + $0x64] ss:$24 sps:$4 sm:$0xff]   ;;  %v3328_v10 = vld [vmem:[%s4614_s2 + $0x60] ss:$24 sps:$4 sm:$0xff]   ;;  %v4034_v28 = vshrl.u32 %v550_v26, 7 }
  0x46   : > { %s3244_s17 = sshll.u32 %s4640_s30, 3  ;;  %1217 = vmatprep.subr.bf16.mxu0 %v3323_v7  ;;  %v3329_v11 = vld [vmem:[%s4614_s2 + $0x94] ss:$24 sps:$4 sm:$0xff]   ;;  %v3331_v12 = vld [vmem:[%s4614_s2 + $0x90] ss:$24 sps:$4 sm:$0xff]   ;;  %vm3803_vm1 = vmmov 0  }
  0x47   : > { %s3972_s15 = scalar_lea.vmem %s4612_s0, %s3244_s17  ;;  %v3332_v13 = vld [vmem:[%s4614_s2 + $0xc4] ss:$24 sps:$4 sm:$0xff]   ;;  %v3334_v14 = vld [vmem:[%s4614_s2 + $0xc0] ss:$24 sps:$4 sm:$0xff]   ;;  %v3335_v15 = vld [vmem:[%s4614_s2 + $0xf4] ss:$24 sps:$4 sm:$0xff]   ;;  %s497_s26 = scalar_lea.vmem %s4626_s14, %s3244_s17 }
  0x48   : > { %v499_v0 = vld [vmem:[%s3972_s15] sm:$0xff]  ;;  %v3337_v16 = vld [vmem:[%s4614_s2 + $0xf0] ss:$24 sps:$4 sm:$0xff]   ;;  %v3341_v19 = vld [vmem:[%s4614_s2 + $0x154] ss:$24 sps:$4 sm:$0xff]   ;;  %v4085_v56 = vsub.s32 0, %v4034_v28 }
  0x49   : > { %v536_v1 = vcombine.high %v499_v0, %v499_v0  ;;  %v539_v2 = vsel %vm538_vm0, %v499_v0, 0.0  ;;  %1218 = vmatpush1.bf16.msra.mxu0 %v3325_v8  ;;  %v3338_v17 = vld [vmem:[%s4614_s2 + $0x124] ss:$24 sps:$4 sm:$0xff]   ;;  %v3340_v18 = vld [vmem:[%s4614_s2 + $0x120] ss:$24 sps:$4 sm:$0xff]   ;;  %v4088_v57 = vsub.s32 1, %v4034_v28 }
  0x4a   : > { %1219 = vmatprep.subr.bf16.mxu0 %v3326_v9  ;;  %v3343_v20 = vld [vmem:[%s4614_s2 + $0x150] ss:$24 sps:$4 sm:$0xff]   ;;  %v3344_v21 = vld [vmem:[%s4614_s2 + $0x184] ss:$24 sps:$4 sm:$0xff]   ;;  %v3346_v22 = vld [vmem:[%s4614_s2 + $0x180] ss:$24 sps:$4 sm:$0xff]  }
  0x4b   : > { %v540_v3 = vsel %vm538_vm0, %v536_v1, 0.0  ;;  %v3347_v23 = vld [vmem:[%s4614_s2 + $0x1b4] ss:$24 sps:$4 sm:$0xff]   ;;  %v3801_v24 = vmov 839922192   ;;  %vm1400_vm2 = vcmask 1041408  }
  0x4c   : > { %v541_v4 = vadd.f32 %v540_v3, %v539_v2  ;;  %v548_v25 = vunpack.c.l.s4 %v3801_v24  ;;  %v3349_v39 = vld [vmem:[%s4614_s2 + $0x1b0] ss:$24 sps:$4 sm:$0xff]   ;;  %v3350_v40 = vld [vmem:[%s4614_s2 + $0x1e4] ss:$24 sps:$4 sm:$0xff]   ;;  %v3352_v41 = vld [vmem:[%s4614_s2 + $0x1e0] ss:$24 sps:$4 sm:$0xff]  }
  0x4d   : > { %1220 = vmatpush1.bf16.msra.mxu0 %v3328_v10  ;;  %v3353_v42 = vld [vmem:[%s4614_s2 + $0x214] ss:$24 sps:$4 sm:$0xff]   ;;  %v3355_v43 = vld [vmem:[%s4614_s2 + $0x210] ss:$24 sps:$4 sm:$0xff]   ;;  %v3356_v44 = vld [vmem:[%s4614_s2 + $0x244] ss:$24 sps:$4 sm:$0xff]  }
  0x4e   : > { %542 = vadd.xlane.f32.xlu0 %v541_v4  ;;  %1221 = vmatprep.subr.bf16.mxu0 %v3329_v11  ;;  %v549_v27 = vunpack.c.0.s8 %v548_v25  ;;  %v3358_v45 = vld [vmem:[%s4614_s2 + $0x240] ss:$24 sps:$4 sm:$0xff]   ;;  %v3359_v46 = vld [vmem:[%s4614_s2 + $0x274] ss:$24 sps:$4 sm:$0xff]   ;;  %v3361_v47 = vld [vmem:[%s4614_s2 + $0x270] ss:$24 sps:$4 sm:$0xff]  }
  0x4f   : > { %v3362_v48 = vld [vmem:[%s4614_s2 + $0x2a4] ss:$24 sps:$4 sm:$0xff]   ;;  %v3364_v49 = vld [vmem:[%s4614_s2 + $0x2a0] ss:$24 sps:$4 sm:$0xff]   ;;  %v3365_v50 = vld [vmem:[%s4614_s2 + $0x2d4] ss:$24 sps:$4 sm:$0xff]  }
  0x50   : > { %v4037_v29 = vsub.s32 %v549_v27, %v4034_v28  ;;  %v3367_v51 = vld [vmem:[%s4614_s2 + $0x2d0] ss:$24 sps:$4 sm:$0xff]   ;;  %v3370_v52 = vld [vmem:[%s4614_s2 + $0xc] ss:$24 sps:$4 sm:$0xff]   ;;  %v533_v58 = vld [vmem:[%s4618_s6] sm:$0x3] }
  0x51   : > { %1222 = vmatpush1.bf16.msra.mxu0 %v3331_v12  ;;  %v534_v59 = vld [vmem:[%s4619_s7] sm:$0x3]  ;;  %v582_v60 = vrot.slane %v533_v58, %v4085_v56  ;;  %v586_v61 = vrot.slane %v533_v58, %v4088_v57  ;;  %v3373_v11 = vld [vmem:[%s4614_s2 + $0x3c] ss:$24 sps:$4 sm:$0xff]   ;;  %v3371_v12 = vld [vmem:[%s4614_s2 + $0x38] ss:$24 sps:$4 sm:$0xff]  }
  0x52   : > { %1223 = vmatprep.subr.bf16.mxu0 %v3332_v13  ;;  %v594_v62 = vrot.slane %v534_v59, %v4085_v56  ;;  %v598_v63 = vrot.slane %v534_v59, %v4088_v57  ;;  %v3368_v9 = vld [vmem:[%s4614_s2 + $0x8] ss:$24 sps:$4 sm:$0xff]   ;;  %v3376_v13 = vld [vmem:[%s4614_s2 + $0x6c] ss:$24 sps:$4 sm:$0xff]   ;;  %v3389_v24 = vld [vmem:[%s4614_s2 + $0x158] ss:$24 sps:$4 sm:$0xff]  }
  0x53   : > { %v587_v2 = vcombine.low %v582_v60, %v586_v61  ;;  %v3394_v25 = vld [vmem:[%s4614_s2 + $0x18c] ss:$24 sps:$4 sm:$0xff]   ;;  %v3392_v26 = vld [vmem:[%s4614_s2 + $0x188] ss:$24 sps:$4 sm:$0xff]   ;;  %v3397_v27 = vld [vmem:[%s4614_s2 + $0x1bc] ss:$24 sps:$4 sm:$0xff]  }
  0x54   : > { %v599_v4 = vcombine.low %v594_v62, %v598_v63  ;;  %v3434_v58 = vld [vmem:[%s4614_s2 + $0x130] ss:$24 sps:$4 sm:$0xff]   ;;  %v3439_v59 = vld [vmem:[%s4614_s2 + $0x164] ss:$24 sps:$4 sm:$0xff]   ;;  %v3437_v60 = vld [vmem:[%s4614_s2 + $0x160] ss:$24 sps:$4 sm:$0xff]  }
  0x55   : > { %1224 = vmatpush1.bf16.msra.mxu0 %v3334_v14  ;;  %v3374_v14 = vld [vmem:[%s4614_s2 + $0x68] ss:$24 sps:$4 sm:$0xff]   ;;  %v3442_v61 = vld [vmem:[%s4614_s2 + $0x194] ss:$24 sps:$4 sm:$0xff]   ;;  %v3445_v63 = vld [vmem:[%s4614_s2 + $0x1c4] ss:$24 sps:$4 sm:$0xff]  }
  0x56   : > { %1225 = vmatprep.subr.bf16.mxu0 %v3335_v15  ;;  %v3379_v15 = vld [vmem:[%s4614_s2 + $0x9c] ss:$24 sps:$4 sm:$0xff]   ;;  %v3440_v62 = vld [vmem:[%s4614_s2 + $0x190] ss:$24 sps:$4 sm:$0xff]   ;;  %vm1382_vm3 = vcmask 27648   ;;  %vm1396_vm4 = vcmask 31744  }
  0x59   : > { %1226 = vmatpush1.bf16.msra.mxu0 %v3337_v16  ;;  %v3377_v16 = vld [vmem:[%s4614_s2 + $0x98] ss:$24 sps:$4 sm:$0xff]  }
  0x5a   : > { %1227 = vmatprep.subr.bf16.mxu0 %v3338_v17  ;;  %v3382_v17 = vld [vmem:[%s4614_s2 + $0xcc] ss:$24 sps:$4 sm:$0xff]  }
  0x5d   : > { %1228 = vmatpush1.bf16.msra.mxu0 %v3340_v18  ;;  %v3380_v18 = vld [vmem:[%s4614_s2 + $0xc8] ss:$24 sps:$4 sm:$0xff]  }
  0x5e   : > { %1229 = vmatprep.subr.bf16.mxu0 %v3341_v19  ;;  %v3385_v19 = vld [vmem:[%s4614_s2 + $0xfc] ss:$24 sps:$4 sm:$0xff]  }
  0x61   : > { %1230 = vmatpush1.bf16.msra.mxu0 %v3343_v20  ;;  %v3383_v20 = vld [vmem:[%s4614_s2 + $0xf8] ss:$24 sps:$4 sm:$0xff]  }
  0x62   : > { %1231 = vmatprep.subr.bf16.mxu0 %v3344_v21  ;;  %v3388_v21 = vld [vmem:[%s4614_s2 + $0x12c] ss:$24 sps:$4 sm:$0xff]  }
  0x65   : > { %1232 = vmatpush1.bf16.msra.mxu0 %v3346_v22  ;;  %v3386_v22 = vld [vmem:[%s4614_s2 + $0x128] ss:$24 sps:$4 sm:$0xff]  }
  0x66   : > { %1233 = vmatprep.subr.bf16.mxu0 %v3347_v23  ;;  %v3391_v23 = vld [vmem:[%s4614_s2 + $0x15c] ss:$24 sps:$4 sm:$0xff]  }
  0x69   : > { %1234 = vmatpush1.bf16.msra.mxu0 %v3349_v39  ;;  %v3412_v39 = vld [vmem:[%s4614_s2 + $0x2ac] ss:$24 sps:$4 sm:$0xff]  }
  0x6a   : > { %1235 = vmatprep.subr.bf16.mxu0 %v3350_v40  ;;  %v3410_v40 = vld [vmem:[%s4614_s2 + $0x2a8] ss:$24 sps:$4 sm:$0xff]  }
  0x6d   : > { %1236 = vmatpush1.bf16.msra.mxu0 %v3352_v41  ;;  %v3415_v41 = vld [vmem:[%s4614_s2 + $0x2dc] ss:$24 sps:$4 sm:$0xff]  }
  0x6e   : > { %1237 = vmatprep.subr.bf16.mxu0 %v3353_v42  ;;  %v3413_v42 = vld [vmem:[%s4614_s2 + $0x2d8] ss:$24 sps:$4 sm:$0xff]  }
  0x71   : > { %1238 = vmatpush1.bf16.msra.mxu0 %v3355_v43  ;;  %v3418_v43 = vld [vmem:[%s4614_s2 + $0x14] ss:$24 sps:$4 sm:$0xff]  }
  0x72   : > { %1239 = vmatprep.subr.bf16.mxu0 %v3356_v44  ;;  %v3416_v44 = vld [vmem:[%s4614_s2 + $0x10] ss:$24 sps:$4 sm:$0xff]  }
  0x75   : > { %1240 = vmatpush1.bf16.msra.mxu0 %v3358_v45  ;;  %v3421_v45 = vld [vmem:[%s4614_s2 + $0x44] ss:$24 sps:$4 sm:$0xff]  }
  0x76   : > { %1241 = vmatprep.subr.bf16.mxu0 %v3359_v46  ;;  %v3419_v46 = vld [vmem:[%s4614_s2 + $0x40] ss:$24 sps:$4 sm:$0xff]  }
  0x79   : > { %1242 = vmatpush1.bf16.msra.mxu0 %v3361_v47  ;;  %v3424_v47 = vld [vmem:[%s4614_s2 + $0x74] ss:$24 sps:$4 sm:$0xff]  }
  0x7a   : > { %1243 = vmatprep.subr.bf16.mxu0 %v3362_v48  ;;  %v3422_v48 = vld [vmem:[%s4614_s2 + $0x70] ss:$24 sps:$4 sm:$0xff]  }
  0x7d   : > { %1244 = vmatpush1.bf16.msra.mxu0 %v3364_v49  ;;  %v3427_v49 = vld [vmem:[%s4614_s2 + $0xa4] ss:$24 sps:$4 sm:$0xff]  }
  0x7e   : > { %1245 = vmatprep.subr.bf16.mxu0 %v3365_v50  ;;  %v3425_v50 = vld [vmem:[%s4614_s2 + $0xa0] ss:$24 sps:$4 sm:$0xff]  }
  0x81   : > { %1246 = vmatpush1.bf16.msra.mxu0 %v3367_v51  ;;  %v3430_v51 = vld [vmem:[%s4614_s2 + $0xd4] ss:$24 sps:$4 sm:$0xff]  }
  0x82   : > { %1256 = vmatprep.subr.bf16.mxu0 %v3370_v52  ;;  %v3428_v52 = vld [vmem:[%s4614_s2 + $0xd0] ss:$24 sps:$4 sm:$0xff]  }
  0xdb   : > { %v543_v30 = vpop.xlane.xlu0 %542 }
  0xdc   : > { %v545_v31 = vmul.f32 0.00390625, %v543_v30  ;;  %v3395_v30 = vld [vmem:[%s4614_s2 + $0x1b8] ss:$24 sps:$4 sm:$0xff]  }
  0xde   : > { %v553_v32 = vrot.slane %v545_v31, %v4037_v29  ;;  %v3400_v31 = vld [vmem:[%s4614_s2 + $0x1ec] ss:$24 sps:$4 sm:$0xff]  }
  0xe0   : > { %v555_v33 = vsub.f32 %v499_v0, %v553_v32  ;;  %v3398_v32 = vld [vmem:[%s4614_s2 + $0x1e8] ss:$24 sps:$4 sm:$0xff]  }
  0xe2   : > { %v556_v34 = vmul.f32 %v555_v33, %v555_v33 }
  0xe4   : > { %v558_v35 = vcombine.high %v556_v34, %v556_v34  ;;  %v560_v36 = vsel %vm538_vm0, %v556_v34, 0.0  ;;  %v3401_v34 = vld [vmem:[%s4614_s2 + $0x218] ss:$24 sps:$4 sm:$0xff]  }
  0xe6   : > { %v561_v37 = vsel %vm538_vm0, %v558_v35, 0.0  ;;  %v3406_v35 = vld [vmem:[%s4614_s2 + $0x24c] ss:$24 sps:$4 sm:$0xff]  }
  0xe7   : > { %v562_v38 = vadd.f32 %v561_v37, %v560_v36  ;;  %v3404_v36 = vld [vmem:[%s4614_s2 + $0x248] ss:$24 sps:$4 sm:$0xff]   ;;  %v3409_v37 = vld [vmem:[%s4614_s2 + $0x27c] ss:$24 sps:$4 sm:$0xff]  }
  0xe9   : > { %563 = vadd.xlane.f32.xlu0 %v562_v38  ;;  %v3407_v38 = vld [vmem:[%s4614_s2 + $0x278] ss:$24 sps:$4 sm:$0xff]  }
 0x176   : > { %v564_v53 = vpop.xlane.xlu0 %563 }
 0x177   : > { %v565_v54 = vmul.f32 0.00390625, %v564_v53  ;;  %v3433_v53 = vld [vmem:[%s4614_s2 + $0x104] ss:$24 sps:$4 sm:$0xff]  }
 0x179   : > { %v566_v55 = vadd.f32 1e-05, %v565_v54  ;;  %v3431_v54 = vld [vmem:[%s4614_s2 + $0x100] ss:$24 sps:$4 sm:$0xff]  }
 0x17b   : > { %3704 = vrsqrt.f32 %v566_v55  ;;  %v3436_v55 = vld [vmem:[%s4614_s2 + $0x134] ss:$24 sps:$4 sm:$0xff]  }
 0x185   : > { %v3705_v0 = vpop.eup %3704 }
 0x186   : > { %v575_v1 = vrot.slane %v3705_v0, %v4037_v29  ;;  %v3443_v0 = vld [vmem:[%s4614_s2 + $0x1c0] ss:$24 sps:$4 sm:$0xff]  }
 0x188   : > { %v577_v3 = vmul.f32 %v575_v1, %v555_v33  ;;  %v3403_v33 = vld [vmem:[%s4614_s2 + $0x21c] ss:$24 sps:$4 sm:$0xff]  }
 0x189   : > { %v3448_v1 = vld [vmem:[%s4614_s2 + $0x1f4] ss:$24 sps:$4 sm:$0xff]  }
 0x18a   : > { %v589_v5 = vmul.f32 %v587_v2, %v577_v3  ;;  %v3446_v2 = vld [vmem:[%s4614_s2 + $0x1f0] ss:$24 sps:$4 sm:$0xff]   ;;  %v3451_v3 = vld [vmem:[%s4614_s2 + $0x224] ss:$24 sps:$4 sm:$0xff]  }
 0x18c   : > { %v601_v6 = vadd.f32 %v599_v4, %v589_v5  ;;  %v3449_v4 = vld [vmem:[%s4614_s2 + $0x220] ss:$24 sps:$4 sm:$0xff]   ;;  %v3454_v5 = vld [vmem:[%s4614_s2 + $0x254] ss:$24 sps:$4 sm:$0xff]  }
 0x18e   : > { %v603_v7 = vcombine.high %v601_v6, %v601_v6  ;;  %v4106_v10 = vpack.c.bf16 %v601_v6, %v601_v6  ;;  %v3452_v6 = vld [vmem:[%s4614_s2 + $0x250] ss:$24 sps:$4 sm:$0xff]  }
 0x190   : > { %v4101_v8 = vpack.c.bf16 %v603_v7, %v603_v7  ;;  %v3457_v7 = vld [vmem:[%s4614_s2 + $0x284] ss:$24 sps:$4 sm:$0xff]  }
 0x192   : > { %1247 = vmatprep.mubr.bf16.mxu0 %v4101_v8 }
 0x193   : > { %1248 = vmatmul.mubr.bf16.vlgmr.msra.gmra.mrb[0].mxu0 %v4106_v10 }
 0x194   : > { %1257 = vmatpush1.bf16.msra.mxu0 %v3368_v9  ;;  %1288 = vmatprep.mubr.bf16.mxu0 %v4101_v8  ;;  %v3460_v9 = vld [vmem:[%s4614_s2 + $0x2b4] ss:$24 sps:$4 sm:$0xff]  }
 0x195   : > { %1258 = vmatprep.subr.bf16.mxu0 %v3373_v11  ;;  %v3458_v11 = vld [vmem:[%s4614_s2 + $0x2b0] ss:$24 sps:$4 sm:$0xff]  }
 0x198   : > { %1259 = vmatpush1.bf16.msra.mxu0 %v3371_v12  ;;  %v3463_v12 = vld [vmem:[%s4614_s2 + $0x2e4] ss:$24 sps:$4 sm:$0xff]  }
 0x199   : > { %1260 = vmatprep.subr.bf16.mxu0 %v3376_v13  ;;  %v3461_v13 = vld [vmem:[%s4614_s2 + $0x2e0] ss:$24 sps:$4 sm:$0xff]  }
 0x19c   : > { %1261 = vmatpush1.bf16.msra.mxu0 %v3374_v14  ;;  %v3802_v14 = vmov 0.0  }
 0x19d   : > { %1262 = vmatprep.subr.bf16.mxu0 %v3379_v15  ;;  %3254 = vmatprep.subr.bf16.mxu1 %v3802_v14 }
 0x19e   : > { %3256 = vmatprep.mubr.msk.bf16.mxu1 %vm3803_vm1, %v3802_v14 }
 0x1a0   : > { %1263 = vmatpush1.bf16.msra.mxu0 %v3377_v16 }
 0x1a1   : > { %1264 = vmatprep.subr.bf16.mxu0 %v3382_v17 }
 0x1a4   : > { %1265 = vmatpush1.bf16.msra.mxu0 %v3380_v18 }
 0x1a5   : > { %1266 = vmatprep.subr.bf16.mxu0 %v3385_v19  ;;  %v715_v19 = vsub.s32 2, %v4034_v28 }
 0x1a8   : > { %1267 = vmatpush1.bf16.msra.mxu0 %v3383_v20  ;;  %v4309_v20 = vld [vmem:[%s4615_s3] sm:$0x3f] }
 0x1a9   : > { %1268 = vmatprep.subr.bf16.mxu0 %v3388_v21 }
 0x1ac   : > { %1269 = vmatpush1.bf16.msra.mxu0 %v3386_v22 }
 0x1ad   : > { %1270 = vmatprep.subr.bf16.mxu0 %v3391_v23 }
 0x1b0   : > { %1271 = vmatpush1.bf16.msra.mxu0 %v3389_v24  ;;  %v708_v24 = vrot.slane %v4309_v20, %v4085_v56 }
 0x1b1   : > { %1272 = vmatprep.subr.bf16.mxu0 %v3394_v25 }
 0x1b4   : > { %1273 = vmatpush1.bf16.msra.mxu0 %v3392_v26 }
 0x1b5   : > { %1274 = vmatprep.subr.bf16.mxu0 %v3397_v27 }
 0x1b8   : > { %1275 = vmatpush1.bf16.msra.mxu0 %v3395_v30 }
 0x1b9   : > { %1276 = vmatprep.subr.bf16.mxu0 %v3400_v31 }
 0x1bc   : > { %1277 = vmatpush1.bf16.msra.mxu0 %v3398_v32  ;;  %v723_v32 = vsub.s32 4, %v4034_v28 }
 0x1bd   : > { %1278 = vmatprep.subr.bf16.mxu0 %v3403_v33  ;;  %v727_v33 = vsub.s32 5, %v4034_v28 }
 0x1c0   : > { %1279 = vmatpush1.bf16.msra.mxu0 %v3401_v34  ;;  %v724_v34 = vrot.slane %v4309_v20, %v723_v32 }
 0x1c1   : > { %1280 = vmatprep.subr.bf16.mxu0 %v3406_v35  ;;  %v728_v35 = vrot.slane %v4309_v20, %v727_v33 }
 0x1c4   : > { %1281 = vmatpush1.bf16.msra.mxu0 %v3404_v36 }
 0x1c5   : > { %1282 = vmatprep.subr.bf16.mxu0 %v3409_v37 }
 0x1c8   : > { %1283 = vmatpush1.bf16.msra.mxu0 %v3407_v38 }
 0x1c9   : > { %1284 = vmatprep.subr.bf16.mxu0 %v3412_v39 }
 0x1cc   : > { %1285 = vmatpush1.bf16.msra.mxu0 %v3410_v40 }
 0x1cd   : > { %1286 = vmatprep.subr.bf16.mxu0 %v3415_v41 }
 0x1d0   : > { %1287 = vmatpush1.bf16.msra.mxu0 %v3413_v42 }
 0x1d1   : > { %1297 = vmatprep.subr.bf16.mxu0 %v3418_v43 }
 0x1d3   : > { %1289 = vmatmul.mubr.bf16.vlgmr.msra.gmra.mrb[4].mxu0 %v4106_v10 }
 0x1d4   : > { %1298 = vmatpush1.bf16.msra.mxu0 %v3416_v44  ;;  %1329 = vmatprep.mubr.bf16.mxu0 %v4101_v8  ;;  %v3455_v8 = vld [vmem:[%s4614_s2 + $0x280] ss:$24 sps:$4 sm:$0xff]  }
 0x1d5   : > { %1299 = vmatprep.subr.bf16.mxu0 %v3421_v45 }
 0x1d8   : > { %1300 = vmatpush1.bf16.msra.mxu0 %v3419_v46 }
 0x1d9   : > { %1301 = vmatprep.subr.bf16.mxu0 %v3424_v47  ;;  %v4331_v47 = vld [vmem:[%s4613_s1] sm:$0xf] }
 0x1dc   : > { %1302 = vmatpush1.bf16.msra.mxu0 %v3422_v48 }
 0x1dd   : > { %1303 = vmatprep.subr.bf16.mxu0 %v3427_v49 }
 0x1e0   : > { %1304 = vmatpush1.bf16.msra.mxu0 %v3425_v50 }
 0x1e1   : > { %1305 = vmatprep.subr.bf16.mxu0 %v3430_v51 }
 0x1e4   : > { %1306 = vmatpush1.bf16.msra.mxu0 %v3428_v52 }
 0x1e5   : > { %1307 = vmatprep.subr.bf16.mxu0 %v3433_v53 }
 0x1e8   : > { %1308 = vmatpush1.bf16.msra.mxu0 %v3431_v54 }
 0x1e9   : > { %1309 = vmatprep.subr.bf16.mxu0 %v3436_v55 }
 0x1ec   : > { %1310 = vmatpush1.bf16.msra.mxu0 %v3434_v58 }
 0x1ed   : > { %1311 = vmatprep.subr.bf16.mxu0 %v3439_v59 }
 0x1f0   : > { %1312 = vmatpush1.bf16.msra.mxu0 %v3437_v60 }
 0x1f1   : > { %1313 = vmatprep.subr.bf16.mxu0 %v3442_v61  ;;  %v3464_v61 = vld [vmem:[#allocation2] ss:$8 sps:$4 sm:$0xff]  }
 0x1f4   : > { %1314 = vmatpush1.bf16.msra.mxu0 %v3440_v62  ;;  %v3466_v62 = vld [vmem:[#allocation2 + $0x4] ss:$8 sps:$4 sm:$0xff]  }
 0x1f5   : > { %1315 = vmatprep.subr.bf16.mxu0 %v3445_v63  ;;  %v3469_v63 = vld [vmem:[#allocation2 + $0x14] ss:$8 sps:$4 sm:$0xff]  }
 0x1f8   : > { %1316 = vmatpush1.bf16.msra.mxu0 %v3443_v0  ;;  %v3467_v0 = vld [vmem:[#allocation2 + $0x10] ss:$8 sps:$4 sm:$0xff]  }
 0x1f9   : > { %1317 = vmatprep.subr.bf16.mxu0 %v3448_v1  ;;  %v3472_v1 = vld [vmem:[#allocation2 + $0x24] ss:$8 sps:$4 sm:$0xff]  }
 0x1fc   : > { %1318 = vmatpush1.bf16.msra.mxu0 %v3446_v2  ;;  %v3470_v2 = vld [vmem:[#allocation2 + $0x20] ss:$8 sps:$4 sm:$0xff]  }
 0x1fd   : > { %1319 = vmatprep.subr.bf16.mxu0 %v3451_v3  ;;  %v3475_v3 = vld [vmem:[#allocation2 + $0x34] ss:$8 sps:$4 sm:$0xff]  }
 0x200   : > { %1320 = vmatpush1.bf16.msra.mxu0 %v3449_v4  ;;  %v3473_v4 = vld [vmem:[#allocation2 + $0x30] ss:$8 sps:$4 sm:$0xff]  }
 0x201   : > { %1321 = vmatprep.subr.bf16.mxu0 %v3454_v5  ;;  %v3478_v5 = vld [vmem:[#allocation2 + $0x44] ss:$8 sps:$4 sm:$0xff]  }
 0x204   : > { %1322 = vmatpush1.bf16.msra.mxu0 %v3452_v6  ;;  %v3476_v6 = vld [vmem:[#allocation2 + $0x40] ss:$8 sps:$4 sm:$0xff]  }
 0x205   : > { %1323 = vmatprep.subr.bf16.mxu0 %v3457_v7  ;;  %v3481_v7 = vld [vmem:[#allocation2 + $0x54] ss:$8 sps:$4 sm:$0xff]  }
 0x208   : > { %1324 = vmatpush1.bf16.msra.mxu0 %v3455_v8  ;;  %v3479_v8 = vld [vmem:[#allocation2 + $0x50] ss:$8 sps:$4 sm:$0xff]  }
 0x209   : > { %1325 = vmatprep.subr.bf16.mxu0 %v3460_v9  ;;  %v3484_v9 = vld [vmem:[#allocation2 + $0x64] ss:$8 sps:$4 sm:$0xff]  }
 0x20c   : > { %1326 = vmatpush1.bf16.msra.mxu0 %v3458_v11  ;;  %v3482_v11 = vld [vmem:[#allocation2 + $0x60] ss:$8 sps:$4 sm:$0xff]  }
 0x20d   : > { %1327 = vmatprep.subr.bf16.mxu0 %v3463_v12  ;;  %v3487_v12 = vld [vmem:[#allocation2 + $0x74] ss:$8 sps:$4 sm:$0xff]  }
 0x210   : > { %1328 = vmatpush1.bf16.msra.mxu0 %v3461_v13  ;;  %v3485_v13 = vld [vmem:[#allocation2 + $0x70] ss:$8 sps:$4 sm:$0xff]  }
 0x211   : > { %1750 = vmatprep.subr.bf16.mxu0 %v3466_v62  ;;  %v3497_v62 = vld [vmem:[#allocation2 + $0xb0] ss:$8 sps:$4 sm:$0xff]  }
 0x213   : > { %1330 = vmatmul.mubr.bf16.vlgmr.msra.gmra.mrb[8].mxu0 %v4106_v10  ;;  %v716_v10 = vrot.slane %v4309_v20, %v715_v19 }
 0x214   : > { %1751 = vmatpush1.bf16.msra.mxu0 %v3464_v61  ;;  %v3499_v61 = vld [vmem:[#allocation2 + $0xb4] ss:$8 sps:$4 sm:$0xff]  }
 0x215   : > { %1752 = vmatprep.subr.bf16.mxu0 %v3469_v63  ;;  %v3502_v63 = vld [vmem:[#allocation2 + $0xc4] ss:$8 sps:$4 sm:$0xff]  }
 0x218   : > { %1753 = vmatpush1.bf16.msra.mxu0 %v3467_v0  ;;  %v3500_v0 = vld [vmem:[#allocation2 + $0xc0] ss:$8 sps:$4 sm:$0xff]  }
 0x219   : > { %1754 = vmatprep.subr.bf16.mxu0 %v3472_v1  ;;  %v3505_v1 = vld [vmem:[#allocation2 + $0xd4] ss:$8 sps:$4 sm:$0xff]  }
 0x21c   : > { %1755 = vmatpush1.bf16.msra.mxu0 %v3470_v2  ;;  %v3503_v2 = vld [vmem:[#allocation2 + $0xd0] ss:$8 sps:$4 sm:$0xff]  }
 0x21d   : > { %1756 = vmatprep.subr.bf16.mxu0 %v3475_v3  ;;  %v3508_v3 = vld [vmem:[#allocation2 + $0xe4] ss:$8 sps:$4 sm:$0xff]  }
 0x220   : > { %1757 = vmatpush1.bf16.msra.mxu0 %v3473_v4  ;;  %v3506_v4 = vld [vmem:[#allocation2 + $0xe0] ss:$8 sps:$4 sm:$0xff]  }
 0x221   : > { %1758 = vmatprep.subr.bf16.mxu0 %v3478_v5  ;;  %v3511_v5 = vld [vmem:[#allocation2 + $0xf4] ss:$8 sps:$4 sm:$0xff]  }
 0x224   : > { %1759 = vmatpush1.bf16.msra.mxu0 %v3476_v6  ;;  %v3509_v6 = vld [vmem:[#allocation2 + $0xf0] ss:$8 sps:$4 sm:$0xff]  }
 0x225   : > { %1760 = vmatprep.subr.bf16.mxu0 %v3481_v7 }
 0x228   : > { %1761 = vmatpush1.bf16.msra.mxu0 %v3479_v8 }
 0x229   : > { %1762 = vmatprep.subr.bf16.mxu0 %v3484_v9 }
 0x22c   : > { %1763 = vmatpush1.bf16.msra.mxu0 %v3482_v11 }
 0x22d   : > { %1764 = vmatprep.subr.bf16.mxu0 %v3487_v12 }
 0x230   : > { %1765 = vmatpush1.bf16.msra.mxu0 %v3485_v13  ;;  %v1791_v13 = vld [vmem:[%s4617_s5] sm:$0x3] }
 0x266   : > { %v1249_v15 = vpop.f32.mrb[0].mxu0 }
 0x267   : > { %v4303_v16 = vpop.f32.mrb[1].mxu0  ;;  %v1250_v30 = vadd.f32 %v1249_v15, %v708_v24  ;;  %v712_v24 = vrot.slane %v4309_v20, %v4088_v57 }
 0x268   : > { %v1253_v17 = vpop.f32.mrb[2].mxu0 }
 0x269   : > { %v1254_v18 = vpop.f32.mrb[3].mxu0  ;;  %v1338_v31 = vpack.c.bf16 %v1250_v30, %v1250_v30  ;;  %v719_v17 = vsub.s32 3, %v4034_v28  ;;  %v3677_v28 = vld [vmem:[#allocation4 + $0x170] ss:$8 sps:$4 sm:$0xff]  }
 0x26b   : > { %v720_v18 = vrot.slane %v4309_v20, %v719_v17  ;;  %v3804_v20 = vmov 0  }
 0x26c   : > { %1782 = vmatprep.mubr.bf16.mxu0 %v3804_v20 }
 0x2a6   : > { %v1290_v21 = vpop.f32.mrb[4].mxu0 }
 0x2a7   : > { %v1291_v22 = vadd.f32 %v1290_v21, %v716_v10  ;;  %v4314_v23 = vpop.f32.mrb[5].mxu0 }
 0x2a8   : > { %v1294_v25 = vpop.f32.mrb[6].mxu0  ;;  %v1293_v21 = vadd.f32 %v4314_v23, %v720_v18 }
 0x2a9   : > { %v1339_v26 = vpack.c.bf16 %v1291_v22, %v1291_v22  ;;  %v1295_v27 = vpop.f32.mrb[7].mxu0 }
 0x2aa   : > { %v1252_v27 = vadd.f32 %v4303_v16, %v712_v24 }
 0x2ab   : > { %3255 = vmatpush3.bf16.xpose.msra.mxu1 %v1339_v26  ;;  %v1446_v26 = vpack.c.bf16 %v1293_v21, %v1293_v21 }
 0x2ac   : > { %3260 = vmatprep.subr.bf16.mxu1 %v3802_v14  ;;  %v1445_v30 = vpack.c.bf16 %v1252_v27, %v1252_v27 }
 0x2b2   : > { %3257 = vmatmul.mubr.bf16.vlgmr.msra.gmra.mrb[0].mxu1 %v1338_v31 }
 0x2b3   : > { %3262 = vmatprep.mubr.msk.bf16.mxu1 %vm3803_vm1, %v3802_v14 }
 0x2e6   : > { %v1331_v36 = vpop.f32.mrb[8].mxu0 }
 0x2e7   : > { %v1332_v37 = vadd.f32 %v1331_v36, %v724_v34  ;;  %v1333_v38 = vpop.f32.mrb[9].mxu0 }
 0x2e8   : > { %v1334_v39 = vadd.f32 %v1333_v38, %v728_v35  ;;  %v1335_v40 = vpop.f32.mrb[10].mxu0 }
 0x2e9   : > { %v1395_v41 = vpack.c.bf16 %v1332_v37, %v1332_v37  ;;  %v1336_v42 = vpop.f32.mrb[11].mxu0 }
 0x2ea   : > { %v1501_v43 = vpack.c.bf16 %v1334_v39, %v1334_v39 }
 0x2eb   : > { %v1402_v44 = vsel %vm1400_vm2, %v1395_v41, 0 }
 0x2ec   : > { %v4325_v45 = vsel %vm1400_vm2, %v1501_v43, 0  ;;  %3261 = vmatpush3.bf16.msra.mxu1 %v1402_v44 }
 0x2ed   : > { %3266 = vmatprep.subr.bf16.mxu1 %v3802_v14 }
 0x385   : > { %v1374_v46 = vpop.f32.mrb[0].mxu1 }
 0x386   : > { %v1380_v48 = vmul.f32 0.088388346, %v1374_v46  ;;  %v3258_v49 = vpop.f32.mrb[1].mxu1 }
 0x387   : > { %v1377_v50 = vpop.f32.mrb[2].mxu1 }
 0x388   : > { %v3259_v51 = vpop.f32.mrb[3].mxu1  ;;  %v1381_v52 = vadd.f32 %v1380_v48, %v4331_v47 }
 0x38a   : > { %v1383_v53 = vsel %vm1382_vm3, %v1381_v52, -inf }
 0x38b   : > { %1384 = vmax.xlane.f32.xlu1 %v1383_v53  ;;  %v3488_v53 = vld [vmem:[#allocation2 + $0x80] ss:$8 sps:$4 sm:$0xff]  }
 0x418   : > { %v1385_v54 = vpop.xlane.xlu1 %1384 }
 0x419   : > { %v1386_v55 = vsub.f32 %v1381_v52, %v1385_v54 }
 0x41b   : > { %v1387_v58 = vmul.f32 1.442695, %v1386_v55  ;;  %v3493_v55 = vld [vmem:[#allocation2 + $0x94] ss:$8 sps:$4 sm:$0xff]  }
 0x41d   : > { %3706 = vpow2.f32 %v1387_v58  ;;  %v3491_v58 = vld [vmem:[#allocation2 + $0x90] ss:$8 sps:$4 sm:$0xff]  }
 0x427   : > { %v3707_v59 = vpop.eup %3706 }
 0x428   : > { %v1389_v60 = vsel %vm1382_vm3, %v3707_v59, 0.0 }
 0x429   : > { %1390 = vadd.xlane.f32.xlu1 %v1389_v60  ;;  %v3494_v60 = vld [vmem:[#allocation2 + $0xa0] ss:$8 sps:$4 sm:$0xff]  }
 0x4b6   : > { %v1391_v15 = vpop.xlane.xlu1 %1390 }
 0x4b7   : > { %3708 = vrcp.f32 %v1391_v15  ;;  %v1796_v15 = vrot.slane %v1791_v13, %v4085_v56 }
 0x4c1   : > { %v3709_v10 = vpop.eup %3708 }
 0x4c2   : > { %v1393_v22 = vmul.f32 %v3709_v10, %v3707_v59  ;;  %v3496_v59 = vld [vmem:[#allocation2 + $0xa4] ss:$8 sps:$4 sm:$0xff]   ;;  %v1800_v10 = vrot.slane %v1791_v13, %v4088_v57 }
 0x4c4   : > { %v1394_v25 = vpack.c.bf16 %v1393_v22, %v1393_v22 }
 0x4c6   : > { %3263 = vmatmul.mubr.msk.bf16.vlgmr.msra.gmra.mrb[4].mxu1 %vm1396_vm4, %v1394_v25 }
 0x4c7   : > { %3267 = vmatpush3.bf16.xpose.msra.mxu1 %v1446_v26  ;;  %3268 = vmatprep.mubr.msk.bf16.mxu1 %vm3803_vm1, %v3802_v14 }
 0x4c8   : > { %3272 = vmatprep.subr.bf16.mxu1 %v3802_v14 }
 0x4ce   : > { %3269 = vmatmul.mubr.bf16.vlgmr.msra.gmra.mrb[8].mxu1 %v1445_v30 }
 0x4cf   : > { %3273 = vmatpush3.bf16.msra.mxu1 %v4325_v45  ;;  %3274 = vmatprep.mubr.msk.bf16.mxu1 %vm3803_vm1, %v3802_v14  ;;  %v3490_v45 = vld [vmem:[#allocation2 + $0x84] ss:$8 sps:$4 sm:$0xff]  }
 0x4d0   : > { %1629 = vmatprep.subr.bf16.mxu1 %v3490_v45  ;;  %v3527_v45 = vld [vmem:[%s4622_s10 + $0x48] ss:$16 sps:$4 sm:$0xff]  }
 0x599   : > { %v1438_v23 = vpop.f32.mrb[4].mxu1 }
 0x59a   : > { %v1444_v31 = vpack.c.bf16 %v1438_v23, %v1438_v23  ;;  %v3264_v32 = vpop.f32.mrb[5].mxu1  ;;  %v3724_v23 = vld [vmem:[%s3972_s15] sm:$0xff] }
 0x59b   : > { %v1441_v33 = vpop.f32.mrb[6].mxu1 }
 0x59c   : > { %v3265_v34 = vpop.f32.mrb[7].mxu1  ;;  %1783 = vmatmul.mubr.bf16.vlgmr.msra.gmra.mrb[12].mxu0 %v1444_v31 }
 0x5a1   : > { %v1481_v35 = vpop.f32.mrb[8].mxu1 }
 0x5a2   : > { %v1487_v36 = vmul.f32 0.088388346, %v1481_v35  ;;  %v3270_v16 = vpop.f32.mrb[9].mxu1 }
 0x5a3   : > { %v1484_v37 = vpop.f32.mrb[10].mxu1  ;;  %v3514_v16 = vld [vmem:[%s4622_s10 + $0x4] ss:$16 sps:$4 sm:$0xff]  }
 0x5a4   : > { %v3271_v38 = vpop.f32.mrb[11].mxu1  ;;  %v1488_v39 = vadd.f32 %v1487_v36, %v4331_v47  ;;  %v3512_v36 = vld [vmem:[%s4622_s10] ss:$16 sps:$4 sm:$0xff]   ;;  %v3515_v37 = vld [vmem:[%s4622_s10 + $0x8] ss:$16 sps:$4 sm:$0xff]  }
 0x5a5   : > { %v3517_v38 = vld [vmem:[%s4622_s10 + $0xc] ss:$16 sps:$4 sm:$0xff]  }
 0x5a6   : > { %v1489_v40 = vsel %vm1382_vm3, %v1488_v39, -inf  ;;  %2329 = vmatprep.subr.bf16.mxu0 %v3517_v38  ;;  %v3587_v38 = vld [vmem:[%s4622_s10 + $0x188] ss:$16 sps:$4 sm:$0xff]  }
 0x5a7   : > { %1490 = vmax.xlane.f32.xlu0 %v1489_v40  ;;  %v3523_v40 = vld [vmem:[%s4622_s10 + $0x2c] ss:$16 sps:$4 sm:$0xff]   ;;  %2330 = vmatpush1.bf16.msra.mxu0 %v3515_v37  ;;  %v3584_v37 = vld [vmem:[%s4622_s10 + $0x180] ss:$16 sps:$4 sm:$0xff]  }
 0x5a8   : > { %2331 = vmatprep.subr.bf16.mxu0 %v3523_v40  ;;  %v3592_v40 = vld [vmem:[%s4622_s10 + $0x1a4] ss:$16 sps:$4 sm:$0xff]  }
 0x634   : > { %v1491_v41 = vpop.xlane.xlu0 %1490 }
 0x635   : > { %v1492_v14 = vsub.f32 %v1488_v39, %v1491_v41  ;;  %v3520_v39 = vld [vmem:[%s4622_s10 + $0x24] ss:$16 sps:$4 sm:$0xff]   ;;  %v3518_v41 = vld [vmem:[%s4622_s10 + $0x20] ss:$16 sps:$4 sm:$0xff]  }
 0x637   : > { %v1493_v42 = vmul.f32 1.442695, %v1492_v14  ;;  %v3521_v14 = vld [vmem:[%s4622_s10 + $0x28] ss:$16 sps:$4 sm:$0xff]  }
 0x638   : > { %2332 = vmatpush1.bf16.msra.mxu0 %v3521_v14  ;;  %v3595_v14 = vld [vmem:[%s4622_s10 + $0x1ac] ss:$16 sps:$4 sm:$0xff]  }
 0x639   : > { %3710 = vpow2.f32 %v1493_v42  ;;  %v3526_v42 = vld [vmem:[%s4622_s10 + $0x44] ss:$16 sps:$4 sm:$0xff]  }
 0x643   : > { %v3711_v43 = vpop.eup %3710 }
 0x644   : > { %v1495_v44 = vsel %vm1382_vm3, %v3711_v43, 0.0 }
 0x645   : > { %1496 = vadd.xlane.f32.xlu1 %v1495_v44  ;;  %v3524_v44 = vld [vmem:[%s4622_s10 + $0x40] ss:$16 sps:$4 sm:$0xff]  }
 0x66f   : > { %v1784_v46 = vpop.f32.mrb[12].mxu0 }
 0x670   : > { %v1786_v48 = vpop.f32.mrb[13].mxu0 }
 0x671   : > { %v1788_v49 = vpop.f32.mrb[14].mxu0 }
 0x672   : > { %v1789_v50 = vpop.f32.mrb[15].mxu0  ;;  %v3530_v49 = vld [vmem:[%s4622_s10 + $0x60] ss:$16 sps:$4 sm:$0xff]  }
 0x673   : > { %v3533_v50 = vld [vmem:[%s4622_s10 + $0x68] ss:$16 sps:$4 sm:$0xff]  }
 0x6d2   : > { %v1497_v51 = vpop.xlane.xlu1 %1496 }
 0x6d3   : > { %3712 = vrcp.f32 %v1497_v51  ;;  %v3538_v51 = vld [vmem:[%s4622_s10 + $0x84] ss:$16 sps:$4 sm:$0xff]  }
 0x6dd   : > { %v3713_v47 = vpop.eup %3712 }
 0x6de   : > { %v1499_v52 = vmul.f32 %v3713_v47, %v3711_v43  ;;  %v3529_v43 = vld [vmem:[%s4622_s10 + $0x4c] ss:$16 sps:$4 sm:$0xff]  }
 0x6df   : > { %2333 = vmatprep.subr.bf16.mxu0 %v3529_v43  ;;  %v3541_v47 = vld [vmem:[%s4622_s10 + $0x8c] ss:$16 sps:$4 sm:$0xff]  }
 0x6e0   : > { %v1500_v54 = vpack.c.bf16 %v1499_v52, %v1499_v52  ;;  %2334 = vmatpush1.bf16.msra.mxu0 %v3527_v45  ;;  %v3536_v52 = vld [vmem:[%s4622_s10 + $0x80] ss:$16 sps:$4 sm:$0xff]   ;;  %v3601_v43 = vld [vmem:[%s4622_s10 + $0x1cc] ss:$16 sps:$4 sm:$0xff]   ;;  %v3599_v45 = vld [vmem:[%s4622_s10 + $0x1c8] ss:$16 sps:$4 sm:$0xff]  }
 0x6e2   : > { %3275 = vmatmul.mubr.msk.bf16.vlgmr.msra.gmra.mrb[12].mxu1 %vm1396_vm4, %v1500_v54  ;;  %v3544_v54 = vld [vmem:[%s4622_s10 + $0xa4] ss:$16 sps:$4 sm:$0xff]  }
 0x6e3   : > { %1630 = vmatpush1.bf16.msra.mxu1 %v3488_v53  ;;  %1661 = vmatprep.mubr.bf16.mxu1 %v3804_v20  ;;  %v3539_v53 = vld [vmem:[%s4622_s10 + $0x88] ss:$16 sps:$4 sm:$0xff]  }
 0x6e4   : > { %1631 = vmatprep.subr.bf16.mxu1 %v3493_v55  ;;  %v3547_v55 = vld [vmem:[%s4622_s10 + $0xac] ss:$16 sps:$4 sm:$0xff]  }
 0x6e7   : > { %1632 = vmatpush1.bf16.msra.mxu1 %v3491_v58  ;;  %v3542_v58 = vld [vmem:[%s4622_s10 + $0xa0] ss:$16 sps:$4 sm:$0xff]  }
 0x6e8   : > { %1633 = vmatprep.subr.bf16.mxu1 %v3496_v59  ;;  %v3545_v59 = vld [vmem:[%s4622_s10 + $0xa8] ss:$16 sps:$4 sm:$0xff]  }
 0x6eb   : > { %1634 = vmatpush1.bf16.msra.mxu1 %v3494_v60  ;;  %v3550_v60 = vld [vmem:[%s4622_s10 + $0xc4] ss:$16 sps:$4 sm:$0xff]  }
 0x6ec   : > { %1635 = vmatprep.subr.bf16.mxu1 %v3499_v61  ;;  %v3553_v61 = vld [vmem:[%s4622_s10 + $0xcc] ss:$16 sps:$4 sm:$0xff]  }
 0x6ef   : > { %1636 = vmatpush1.bf16.msra.mxu1 %v3497_v62  ;;  %v3548_v62 = vld [vmem:[%s4622_s10 + $0xc0] ss:$16 sps:$4 sm:$0xff]  }
 0x6f0   : > { %1637 = vmatprep.subr.bf16.mxu1 %v3502_v63  ;;  %v3551_v63 = vld [vmem:[%s4622_s10 + $0xc8] ss:$16 sps:$4 sm:$0xff]  }
 0x6f3   : > { %1638 = vmatpush1.bf16.msra.mxu1 %v3500_v0  ;;  %v3556_v0 = vld [vmem:[%s4622_s10 + $0xe4] ss:$16 sps:$4 sm:$0xff]  }
 0x6f4   : > { %1639 = vmatprep.subr.bf16.mxu1 %v3505_v1  ;;  %v3559_v1 = vld [vmem:[%s4622_s10 + $0xec] ss:$16 sps:$4 sm:$0xff]  }
 0x6f7   : > { %1640 = vmatpush1.bf16.msra.mxu1 %v3503_v2  ;;  %v3554_v2 = vld [vmem:[%s4622_s10 + $0xe0] ss:$16 sps:$4 sm:$0xff]  }
 0x6f8   : > { %1641 = vmatprep.subr.bf16.mxu1 %v3508_v3  ;;  %v3557_v3 = vld [vmem:[%s4622_s10 + $0xe8] ss:$16 sps:$4 sm:$0xff]  }
 0x6fb   : > { %1642 = vmatpush1.bf16.msra.mxu1 %v3506_v4  ;;  %v3562_v4 = vld [vmem:[%s4622_s10 + $0x104] ss:$16 sps:$4 sm:$0xff]  }
 0x6fc   : > { %1643 = vmatprep.subr.bf16.mxu1 %v3511_v5  ;;  %v3565_v5 = vld [vmem:[%s4622_s10 + $0x10c] ss:$16 sps:$4 sm:$0xff]  }
 0x6ff   : > { %1644 = vmatpush1.bf16.msra.mxu1 %v3509_v6  ;;  %v3560_v6 = vld [vmem:[%s4622_s10 + $0x100] ss:$16 sps:$4 sm:$0xff]  }
 0x700   : > { %2288 = vmatprep.subr.bf16.mxu1 %v3514_v16  ;;  %v3589_v16 = vld [vmem:[%s4622_s10 + $0x18c] ss:$16 sps:$4 sm:$0xff]  }
 0x7b5   : > { %v1542_v7 = vpop.f32.mrb[12].mxu1 }
 0x7b6   : > { %v1548_v8 = vpack.c.bf16 %v1542_v7, %v1542_v7  ;;  %v3276_v9 = vpop.f32.mrb[13].mxu1  ;;  %v3563_v7 = vld [vmem:[%s4622_s10 + $0x108] ss:$16 sps:$4 sm:$0xff]  }
 0x7b7   : > { %v1545_v11 = vpop.f32.mrb[14].mxu1 }
 0x7b8   : > { %v3277_v12 = vpop.f32.mrb[15].mxu1  ;;  %1662 = vmatmul.mubr.bf16.vlgmr.msra.gmra.mrb[16].mxu1 %v1548_v8 }
 0x7b9   : > { %2289 = vmatpush1.bf16.msra.mxu1 %v3512_v36  ;;  %v3586_v36 = vld [vmem:[%s4622_s10 + $0x184] ss:$16 sps:$4 sm:$0xff]  }
 0x7ba   : > { %2290 = vmatprep.subr.bf16.mxu1 %v3520_v39  ;;  %v3590_v39 = vld [vmem:[%s4622_s10 + $0x1a0] ss:$16 sps:$4 sm:$0xff]  }
 0x7bd   : > { %2291 = vmatpush1.bf16.msra.mxu1 %v3518_v41  ;;  %v3593_v41 = vld [vmem:[%s4622_s10 + $0x1a8] ss:$16 sps:$4 sm:$0xff]  }
 0x7be   : > { %2292 = vmatprep.subr.bf16.mxu1 %v3526_v42  ;;  %v3598_v42 = vld [vmem:[%s4622_s10 + $0x1c4] ss:$16 sps:$4 sm:$0xff]  }
 0x7c1   : > { %2293 = vmatpush1.bf16.msra.mxu1 %v3524_v44  ;;  %v3596_v44 = vld [vmem:[%s4622_s10 + $0x1c0] ss:$16 sps:$4 sm:$0xff]  }
 0x88b   : > { %v1663_v18 = vpop.f32.mrb[16].mxu1 }
 0x88c   : > { %v1785_v21 = vadd.f32 %v1784_v46, %v1663_v18  ;;  %v1665_v22 = vpop.f32.mrb[17].mxu1  ;;  %v3532_v46 = vld [vmem:[%s4622_s10 + $0x64] ss:$16 sps:$4 sm:$0xff]  }
 0x88d   : > { %v1787_v24 = vadd.f32 %v1786_v48, %v1665_v22  ;;  %v1667_v25 = vpop.f32.mrb[18].mxu1  ;;  %v3535_v48 = vld [vmem:[%s4622_s10 + $0x6c] ss:$16 sps:$4 sm:$0xff]   ;;  %2294 = vmatprep.subr.bf16.mxu1 %v3532_v46  ;;  %v3568_v22 = vld [vmem:[%s4622_s10 + $0x124] ss:$16 sps:$4 sm:$0xff]  }
 0x88e   : > { %v1803_v26 = vadd.f32 %v1796_v15, %v1785_v21  ;;  %v1668_v27 = vpop.f32.mrb[19].mxu1  ;;  %2335 = vmatprep.subr.bf16.mxu0 %v3535_v48  ;;  %2295 = vmatpush1.bf16.msra.mxu1 %v3530_v49  ;;  %v3566_v25 = vld [vmem:[%s4622_s10 + $0x120] ss:$16 sps:$4 sm:$0xff]   ;;  %v3604_v46 = vld [vmem:[%s4622_s10 + $0x1e4] ss:$16 sps:$4 sm:$0xff]  }
 0x88f   : > { %v1804_v30 = vadd.f32 %v1800_v10, %v1787_v24  ;;  %2336 = vmatpush1.bf16.msra.mxu0 %v3533_v50  ;;  %2296 = vmatprep.subr.bf16.mxu1 %v3538_v51  ;;  %v3571_v24 = vld [vmem:[%s4622_s10 + $0x12c] ss:$16 sps:$4 sm:$0xff]   ;;  %v3574_v27 = vld [vmem:[%s4622_s10 + $0x144] ss:$16 sps:$4 sm:$0xff]   ;;  %v3602_v49 = vld [vmem:[%s4622_s10 + $0x1e0] ss:$16 sps:$4 sm:$0xff]  }
 0x890   : > { %2337 = vmatprep.subr.bf16.mxu0 %v3541_v47  ;;  %v3607_v48 = vld [vmem:[%s4622_s10 + $0x1ec] ss:$16 sps:$4 sm:$0xff]   ;;  %v3605_v50 = vld [vmem:[%s4622_s10 + $0x1e8] ss:$16 sps:$4 sm:$0xff]  }
 0x891   : > { %v1807_v20 = vcombine.low %v1803_v26, %v1804_v30  ;;  %v3569_v26 = vld [vmem:[%s4622_s10 + $0x128] ss:$16 sps:$4 sm:$0xff]   ;;  %v3577_v30 = vld [vmem:[%s4622_s10 + $0x14c] ss:$16 sps:$4 sm:$0xff]  }
 0x892   : > { %2297 = vmatpush1.bf16.msra.mxu1 %v3536_v52  ;;  %v3610_v51 = vld [vmem:[#allocation4 + $0x4] ss:$8 sps:$4 sm:$0xff]  }
 0x893   : > { %v4361_v31 = vadd.f32 %v3724_v23, %v1807_v20  ;;  %2338 = vmatpush1.bf16.msra.mxu0 %v3539_v53  ;;  %2298 = vmatprep.subr.bf16.mxu1 %v3544_v54  ;;  %v3572_v20 = vld [vmem:[%s4622_s10 + $0x140] ss:$16 sps:$4 sm:$0xff]   ;;  %v3575_v23 = vld [vmem:[%s4622_s10 + $0x148] ss:$16 sps:$4 sm:$0xff]  }
 0x894   : > { %2339 = vmatprep.subr.bf16.mxu0 %v3547_v55  ;;  %v1810_v54 = vld [vmem:[%s4620_s8] sm:$0x3] }
 0x895   : > { %v1813_v32 = vcombine.high %v4361_v31, %v4361_v31  ;;  %v1815_v33 = vsel %vm538_vm0, %v4361_v31, 0.0  ;;  %v1811_v55 = vld [vmem:[%s4621_s9] sm:$0x3] }
 0x896   : > { %2299 = vmatpush1.bf16.msra.mxu1 %v3542_v58  ;;  %v1857_v58 = vrot.slane %v1810_v54, %v4085_v56 }
 0x897   : > { %v1816_v34 = vsel %vm538_vm0, %v1813_v32, 0.0  ;;  %2340 = vmatpush1.bf16.msra.mxu0 %v3545_v59  ;;  %2300 = vmatprep.subr.bf16.mxu1 %v3550_v60  ;;  %v3580_v32 = vld [vmem:[%s4622_s10 + $0x164] ss:$16 sps:$4 sm:$0xff]   ;;  %v1861_v59 = vrot.slane %v1810_v54, %v4088_v57  ;;  %v1869_v60 = vrot.slane %v1811_v55, %v4085_v56 }
 0x898   : > { %v1817_v35 = vadd.f32 %v1816_v34, %v1815_v33  ;;  %2341 = vmatprep.subr.bf16.mxu0 %v3553_v61  ;;  %v3583_v33 = vld [vmem:[%s4622_s10 + $0x16c] ss:$16 sps:$4 sm:$0xff]   ;;  %v3578_v34 = vld [vmem:[%s4622_s10 + $0x160] ss:$16 sps:$4 sm:$0xff]   ;;  %v1873_v61 = vrot.slane %v1811_v55, %v4088_v57 }
 0x89a   : > { %1818 = vadd.xlane.f32.xlu0 %v1817_v35  ;;  %2301 = vmatpush1.bf16.msra.mxu1 %v3548_v62  ;;  %v3581_v35 = vld [vmem:[%s4622_s10 + $0x168] ss:$16 sps:$4 sm:$0xff]  }
 0x89b   : > { %2342 = vmatpush1.bf16.msra.mxu0 %v3551_v63  ;;  %2302 = vmatprep.subr.bf16.mxu1 %v3556_v0  ;;  %v1862_v0 = vcombine.low %v1857_v58, %v1861_v59 }
 0x89c   : > { %2343 = vmatprep.subr.bf16.mxu0 %v3559_v1 }
 0x89e   : > { %2303 = vmatpush1.bf16.msra.mxu1 %v3554_v2  ;;  %v1874_v2 = vcombine.low %v1869_v60, %v1873_v61 }
 0x89f   : > { %2344 = vmatpush1.bf16.msra.mxu0 %v3557_v3  ;;  %2304 = vmatprep.subr.bf16.mxu1 %v3562_v4 }
 0x8a0   : > { %2345 = vmatprep.subr.bf16.mxu0 %v3565_v5 }
 0x8a2   : > { %2305 = vmatpush1.bf16.msra.mxu1 %v3560_v6 }
 0x8a3   : > { %2346 = vmatpush1.bf16.msra.mxu0 %v3563_v7  ;;  %2306 = vmatprep.subr.bf16.mxu1 %v3568_v22  ;;  %v3608_v7 = vld [vmem:[#allocation4] ss:$8 sps:$4 sm:$0xff]   ;;  %v3623_v22 = vld [vmem:[#allocation4 + $0x50] ss:$8 sps:$4 sm:$0xff]  }
 0x8a4   : > { %2347 = vmatprep.subr.bf16.mxu0 %v3571_v24  ;;  %v3628_v24 = vld [vmem:[#allocation4 + $0x64] ss:$8 sps:$4 sm:$0xff]  }
 0x8a6   : > { %2307 = vmatpush1.bf16.msra.mxu1 %v3566_v25  ;;  %v3626_v25 = vld [vmem:[#allocation4 + $0x60] ss:$8 sps:$4 sm:$0xff]  }
 0x8a7   : > { %2348 = vmatpush1.bf16.msra.mxu0 %v3569_v26  ;;  %2308 = vmatprep.subr.bf16.mxu1 %v3574_v27  ;;  %v3631_v26 = vld [vmem:[#allocation4 + $0x74] ss:$8 sps:$4 sm:$0xff]   ;;  %v3629_v27 = vld [vmem:[#allocation4 + $0x70] ss:$8 sps:$4 sm:$0xff]  }
 0x8a8   : > { %2349 = vmatprep.subr.bf16.mxu0 %v3577_v30  ;;  %v3634_v30 = vld [vmem:[#allocation4 + $0x84] ss:$8 sps:$4 sm:$0xff]  }
 0x8aa   : > { %2309 = vmatpush1.bf16.msra.mxu1 %v3572_v20  ;;  %v3632_v20 = vld [vmem:[#allocation4 + $0x80] ss:$8 sps:$4 sm:$0xff]  }
 0x8ab   : > { %2350 = vmatpush1.bf16.msra.mxu0 %v3575_v23  ;;  %2310 = vmatprep.subr.bf16.mxu1 %v3580_v32  ;;  %v3637_v23 = vld [vmem:[#allocation4 + $0x94] ss:$8 sps:$4 sm:$0xff]   ;;  %v3635_v32 = vld [vmem:[#allocation4 + $0x90] ss:$8 sps:$4 sm:$0xff]  }
 0x8ac   : > { %2351 = vmatprep.subr.bf16.mxu0 %v3583_v33  ;;  %v3640_v33 = vld [vmem:[#allocation4 + $0xa4] ss:$8 sps:$4 sm:$0xff]  }
 0x8ae   : > { %2311 = vmatpush1.bf16.msra.mxu1 %v3578_v34  ;;  %v3638_v34 = vld [vmem:[#allocation4 + $0xa0] ss:$8 sps:$4 sm:$0xff]  }
 0x8af   : > { %2352 = vmatpush1.bf16.msra.mxu0 %v3581_v35  ;;  %2312 = vmatprep.subr.bf16.mxu1 %v3586_v36  ;;  %v3641_v35 = vld [vmem:[#allocation4 + $0xb0] ss:$8 sps:$4 sm:$0xff]   ;;  %v3643_v36 = vld [vmem:[#allocation4 + $0xb4] ss:$8 sps:$4 sm:$0xff]  }
 0x8b0   : > { %2353 = vmatprep.subr.bf16.mxu0 %v3589_v16  ;;  %v3646_v16 = vld [vmem:[#allocation4 + $0xc4] ss:$8 sps:$4 sm:$0xff]  }
 0x8b2   : > { %2313 = vmatpush1.bf16.msra.mxu1 %v3584_v37  ;;  %v3644_v37 = vld [vmem:[#allocation4 + $0xc0] ss:$8 sps:$4 sm:$0xff]  }
 0x8b3   : > { %2354 = vmatpush1.bf16.msra.mxu0 %v3587_v38  ;;  %2314 = vmatprep.subr.bf16.mxu1 %v3592_v40  ;;  %v3649_v38 = vld [vmem:[#allocation4 + $0xd4] ss:$8 sps:$4 sm:$0xff]   ;;  %v3652_v40 = vld [vmem:[#allocation4 + $0xe4] ss:$8 sps:$4 sm:$0xff]  }
 0x8b4   : > { %2355 = vmatprep.subr.bf16.mxu0 %v3595_v14  ;;  %v3655_v14 = vld [vmem:[#allocation4 + $0xf4] ss:$8 sps:$4 sm:$0xff]  }
 0x8b6   : > { %2315 = vmatpush1.bf16.msra.mxu1 %v3590_v39  ;;  %v3647_v39 = vld [vmem:[#allocation4 + $0xd0] ss:$8 sps:$4 sm:$0xff]  }
 0x8b7   : > { %2356 = vmatpush1.bf16.msra.mxu0 %v3593_v41  ;;  %2316 = vmatprep.subr.bf16.mxu1 %v3598_v42  ;;  %v3650_v41 = vld [vmem:[#allocation4 + $0xe0] ss:$8 sps:$4 sm:$0xff]   ;;  %v3653_v42 = vld [vmem:[#allocation4 + $0xf0] ss:$8 sps:$4 sm:$0xff]  }
 0x8b8   : > { %2357 = vmatprep.subr.bf16.mxu0 %v3601_v43  ;;  %v3658_v43 = vld [vmem:[#allocation4 + $0x104] ss:$8 sps:$4 sm:$0xff]  }
 0x8ba   : > { %2317 = vmatpush1.bf16.msra.mxu1 %v3596_v44  ;;  %v4583_v44 = vld [vmem:[%s4623_s11] sm:$0xf] }
 0x8bb   : > { %2358 = vmatpush1.bf16.msra.mxu0 %v3599_v45  ;;  %2318 = vmatprep.subr.bf16.mxu1 %v3604_v46  ;;  %v1951_v45 = vrot.slane %v4583_v44, %v4085_v56  ;;  %v1955_v46 = vrot.slane %v4583_v44, %v4088_v57 }
 0x8bc   : > { %2359 = vmatprep.subr.bf16.mxu0 %v3607_v48  ;;  %v1963_v48 = vrot.slane %v4583_v44, %v719_v17 }
 0x8be   : > { %2319 = vmatpush1.bf16.msra.mxu1 %v3602_v49 }
 0x8bf   : > { %2360 = vmatpush1.bf16.msra.mxu0 %v3605_v50  ;;  %2806 = vmatprep.subr.bf16.mxu1 %v3610_v51 }
 0x927   : > { %v1819_v8 = vpop.xlane.xlu0 %1818 }
 0x928   : > { %v1820_v9 = vmul.f32 0.00390625, %v1819_v8 }
 0x92a   : > { %v1828_v11 = vrot.slane %v1820_v9, %v4037_v29  ;;  %v3613_v9 = vld [vmem:[#allocation4 + $0x14] ss:$8 sps:$4 sm:$0xff]  }
 0x92c   : > { %v4478_v12 = vsub.f32 %v4361_v31, %v1828_v11  ;;  %v3611_v11 = vld [vmem:[#allocation4 + $0x10] ss:$8 sps:$4 sm:$0xff]  }
 0x92e   : > { %v1831_v13 = vmul.f32 %v4478_v12, %v4478_v12 }
 0x930   : > { %v1833_v15 = vcombine.high %v1831_v13, %v1831_v13  ;;  %v1835_v18 = vsel %vm538_vm0, %v1831_v13, 0.0  ;;  %v3616_v13 = vld [vmem:[#allocation4 + $0x24] ss:$8 sps:$4 sm:$0xff]  }
 0x932   : > { %v1836_v10 = vsel %vm538_vm0, %v1833_v15, 0.0  ;;  %v3617_v15 = vld [vmem:[#allocation4 + $0x30] ss:$8 sps:$4 sm:$0xff]  }
 0x933   : > { %v1837_v21 = vadd.f32 %v1836_v10, %v1835_v18  ;;  %v3622_v18 = vld [vmem:[#allocation4 + $0x44] ss:$8 sps:$4 sm:$0xff]   ;;  %v3620_v10 = vld [vmem:[#allocation4 + $0x40] ss:$8 sps:$4 sm:$0xff]  }
 0x935   : > { %1838 = vadd.xlane.f32.xlu1 %v1837_v21  ;;  %v3625_v21 = vld [vmem:[#allocation4 + $0x54] ss:$8 sps:$4 sm:$0xff]  }
 0x9c2   : > { %v1839_v47 = vpop.xlane.xlu1 %1838 }
 0x9c3   : > { %v1840_v52 = vmul.f32 0.00390625, %v1839_v47 }
 0x9c5   : > { %v1841_v53 = vadd.f32 1e-05, %v1840_v52 }
 0x9c7   : > { %3714 = vrsqrt.f32 %v1841_v53 }
 0x9d1   : > { %v3715_v62 = vpop.eup %3714 }
 0x9d2   : > { %v1850_v63 = vrot.slane %v3715_v62, %v4037_v29  ;;  %v3614_v29 = vld [vmem:[#allocation4 + $0x20] ss:$8 sps:$4 sm:$0xff]  }
 0x9d4   : > { %v1852_v1 = vmul.f32 %v1850_v63, %v4478_v12  ;;  %v3619_v12 = vld [vmem:[#allocation4 + $0x34] ss:$8 sps:$4 sm:$0xff]  }
 0x9d6   : > { %v1864_v3 = vmul.f32 %v1862_v0, %v1852_v1 }
 0x9d8   : > { %v1876_v4 = vadd.f32 %v1874_v2, %v1864_v3 }
 0x9da   : > { %v1878_v5 = vcombine.high %v1876_v4, %v1876_v4  ;;  %v1880_v8 = vpack.c.bf16 %v1876_v4, %v1876_v4 }
 0x9dc   : > { %v1881_v6 = vpack.c.bf16 %v1878_v5, %v1878_v5 }
 0x9de   : > { %2320 = vmatprep.mubr.bf16.mxu1 %v1881_v6  ;;  %2361 = vmatprep.mubr.bf16.mxu0 %v1881_v6 }
 0x9df   : > { %2321 = vmatmul.mubr.bf16.vlgmr.msra.gmra.mrb[20].mxu1 %v1880_v8  ;;  %2362 = vmatmul.mubr.bf16.vlgmr.msra.gmra.mrb[16].mxu0 %v1880_v8 }
 0x9e0   : > { %2807 = vmatpush1.bf16.msra.mxu1 %v3608_v7 }
 0x9e1   : > { %2808 = vmatprep.subr.bf16.mxu1 %v3613_v9 }
 0x9e4   : > { %2809 = vmatpush1.bf16.msra.mxu1 %v3611_v11 }
 0x9e5   : > { %2810 = vmatprep.subr.bf16.mxu1 %v3616_v13 }
 0x9e8   : > { %2811 = vmatpush1.bf16.msra.mxu1 %v3614_v29 }
 0x9e9   : > { %2812 = vmatprep.subr.bf16.mxu1 %v3619_v12 }
 0x9ec   : > { %2813 = vmatpush1.bf16.msra.mxu1 %v3617_v15 }
 0x9ed   : > { %2814 = vmatprep.subr.bf16.mxu1 %v3622_v18 }
 0x9f0   : > { %2815 = vmatpush1.bf16.msra.mxu1 %v3620_v10 }
 0x9f1   : > { %2816 = vmatprep.subr.bf16.mxu1 %v3625_v21 }
 0x9f4   : > { %2817 = vmatpush1.bf16.msra.mxu1 %v3623_v22 }
 0x9f5   : > { %2818 = vmatprep.subr.bf16.mxu1 %v3628_v24 }
 0x9f8   : > { %2819 = vmatpush1.bf16.msra.mxu1 %v3626_v25 }
 0x9f9   : > { %2820 = vmatprep.subr.bf16.mxu1 %v3631_v26 }
 0x9fc   : > { %2821 = vmatpush1.bf16.msra.mxu1 %v3629_v27 }
 0x9fd   : > { %2822 = vmatprep.subr.bf16.mxu1 %v3634_v30 }
 0xa00   : > { %2823 = vmatpush1.bf16.msra.mxu1 %v3632_v20  ;;  %v3656_v20 = vld [vmem:[#allocation4 + $0x100] ss:$8 sps:$4 sm:$0xff]  }
 0xa01   : > { %2824 = vmatprep.subr.bf16.mxu1 %v3637_v23 }
 0xa04   : > { %2825 = vmatpush1.bf16.msra.mxu1 %v3635_v32  ;;  %v3661_v32 = vld [vmem:[#allocation4 + $0x114] ss:$8 sps:$4 sm:$0xff]  }
 0xa05   : > { %2826 = vmatprep.subr.bf16.mxu1 %v3640_v33 }
 0xa08   : > { %2827 = vmatpush1.bf16.msra.mxu1 %v3638_v34  ;;  %v3659_v34 = vld [vmem:[#allocation4 + $0x110] ss:$8 sps:$4 sm:$0xff]  }
 0xa09   : > { %2828 = vmatprep.subr.bf16.mxu1 %v3643_v36  ;;  %v3662_v36 = vld [vmem:[#allocation4 + $0x120] ss:$8 sps:$4 sm:$0xff]  }
 0xa0c   : > { %2829 = vmatpush1.bf16.msra.mxu1 %v3641_v35  ;;  %v3664_v35 = vld [vmem:[#allocation4 + $0x124] ss:$8 sps:$4 sm:$0xff]  }
 0xa0d   : > { %2830 = vmatprep.subr.bf16.mxu1 %v3646_v16  ;;  %v3667_v16 = vld [vmem:[#allocation4 + $0x134] ss:$8 sps:$4 sm:$0xff]  }
 0xa10   : > { %2831 = vmatpush1.bf16.msra.mxu1 %v3644_v37  ;;  %v3665_v37 = vld [vmem:[#allocation4 + $0x130] ss:$8 sps:$4 sm:$0xff]  }
 0xa11   : > { %2832 = vmatprep.subr.bf16.mxu1 %v3649_v38  ;;  %v3670_v38 = vld [vmem:[#allocation4 + $0x144] ss:$8 sps:$4 sm:$0xff]  }
 0xa14   : > { %2833 = vmatpush1.bf16.msra.mxu1 %v3647_v39  ;;  %v1959_v39 = vrot.slane %v4583_v44, %v715_v19  ;;  %v3682_v19 = vld [vmem:[#allocation4 + $0x184] ss:$8 sps:$4 sm:$0xff]  }
 0xa15   : > { %2834 = vmatprep.subr.bf16.mxu1 %v3652_v40  ;;  %v3668_v40 = vld [vmem:[#allocation4 + $0x140] ss:$8 sps:$4 sm:$0xff]  }
 0xa18   : > { %2835 = vmatpush1.bf16.msra.mxu1 %v3650_v41  ;;  %v3673_v41 = vld [vmem:[#allocation4 + $0x154] ss:$8 sps:$4 sm:$0xff]  }
 0xa19   : > { %2836 = vmatprep.subr.bf16.mxu1 %v3655_v14 }
 0xa1c   : > { %2837 = vmatpush1.bf16.msra.mxu1 %v3653_v42  ;;  %v3671_v42 = vld [vmem:[#allocation4 + $0x150] ss:$8 sps:$4 sm:$0xff]  }
 0xa1d   : > { %2847 = vmatprep.subr.bf16.mxu1 %v3658_v43  ;;  %v3676_v43 = vld [vmem:[#allocation4 + $0x164] ss:$8 sps:$4 sm:$0xff]  }
 0xab2   : > { %v2322_v49 = vpop.f32.mrb[20].mxu1  ;;  %v4592_v50 = vpop.f32.mrb[16].mxu0 }
 0xab3   : > { %v2323_v51 = vadd.f32 %v2322_v49, %v1951_v45  ;;  %v2324_v47 = vpop.f32.mrb[21].mxu1  ;;  %v2365_v52 = vpop.f32.mrb[17].mxu0  ;;  %v2364_v14 = vadd.f32 %v4592_v50, %v1959_v39 }
 0xab4   : > { %v2325_v53 = vadd.f32 %v2324_v47, %v1955_v46  ;;  %v2366_v54 = vadd.f32 %v2365_v52, %v1963_v48  ;;  %v2326_v55 = vpop.f32.mrb[22].mxu1  ;;  %v2367_v58 = vpop.f32.mrb[18].mxu0  ;;  %v3674_v46 = vld [vmem:[#allocation4 + $0x160] ss:$8 sps:$4 sm:$0xff]   ;;  %v3679_v48 = vld [vmem:[#allocation4 + $0x174] ss:$8 sps:$4 sm:$0xff]  }
 0xab5   : > { %v2374_v59 = vmul.f32 0.044715, %v2323_v51  ;;  %v2327_v60 = vpop.f32.mrb[23].mxu1  ;;  %v2368_v61 = vpop.f32.mrb[19].mxu0  ;;  %v2370_v12 = vmul.f32 0.5, %v2323_v51 }
 0xab6   : > { %v2375_v62 = vmul.f32 0.044715, %v2325_v53  ;;  %v2377_v63 = vmul.f32 0.044715, %v2366_v54  ;;  %v2371_v10 = vmul.f32 0.5, %v2325_v53  ;;  %v2373_v24 = vmul.f32 0.5, %v2366_v54 }
 0xab7   : > { %v2378_v0 = vmul.f32 %v2374_v59, %v2323_v51  ;;  %v2376_v45 = vmul.f32 0.044715, %v2364_v14  ;;  %v3685_v47 = vld [vmem:[#allocation4 + $0x194] ss:$8 sps:$4 sm:$0xff]   ;;  %v3683_v52 = vld [vmem:[#allocation4 + $0x190] ss:$8 sps:$4 sm:$0xff]  }
 0xab8   : > { %v2379_v1 = vmul.f32 %v2375_v62, %v2325_v53  ;;  %v2381_v2 = vmul.f32 %v2377_v63, %v2366_v54  ;;  %v3691_v58 = vld [vmem:[#allocation4 + $0x1b4] ss:$8 sps:$4 sm:$0xff]   ;;  %v3689_v59 = vld [vmem:[#allocation4 + $0x1b0] ss:$8 sps:$4 sm:$0xff]   ;;  %v3694_v60 = vld [vmem:[#allocation4 + $0x1c4] ss:$8 sps:$4 sm:$0xff]  }
 0xab9   : > { %v2382_v3 = vmul.f32 %v2378_v0, %v2323_v51  ;;  %v2380_v49 = vmul.f32 %v2376_v45, %v2364_v14  ;;  %v3692_v61 = vld [vmem:[#allocation4 + $0x1c0] ss:$8 sps:$4 sm:$0xff]   ;;  %v3697_v62 = vld [vmem:[#allocation4 + $0x1d4] ss:$8 sps:$4 sm:$0xff]   ;;  %v3695_v63 = vld [vmem:[#allocation4 + $0x1d0] ss:$8 sps:$4 sm:$0xff]  }
 0xaba   : > { %v2383_v17 = vmul.f32 %v2379_v1, %v2325_v53  ;;  %v2385_v4 = vmul.f32 %v2381_v2, %v2366_v54  ;;  %v3700_v0 = vld [vmem:[#allocation4 + $0x1e4] ss:$8 sps:$4 sm:$0xff]   ;;  %v3698_v2 = vld [vmem:[#allocation4 + $0x1e0] ss:$8 sps:$4 sm:$0xff]  }
 0xabb   : > { %v2386_v5 = vadd.f32 %v2382_v3, %v2323_v51  ;;  %v2384_v44 = vmul.f32 %v2380_v49, %v2364_v14  ;;  %v3680_v51 = vld [vmem:[#allocation4 + $0x180] ss:$8 sps:$4 sm:$0xff]   ;;  %v3703_v3 = vld [vmem:[#allocation4 + $0x1f4] ss:$8 sps:$4 sm:$0xff]  }
 0xabc   : > { %v2387_v6 = vadd.f32 %v2383_v17, %v2325_v53  ;;  %v2389_v7 = vadd.f32 %v2385_v4, %v2366_v54  ;;  %v3688_v53 = vld [vmem:[#allocation4 + $0x1a4] ss:$8 sps:$4 sm:$0xff]   ;;  %v3686_v54 = vld [vmem:[#allocation4 + $0x1a0] ss:$8 sps:$4 sm:$0xff]   ;;  %v2372_v4 = vmul.f32 0.5, %v2364_v14 }
 0xabd   : > { %v2390_v8 = vmul.f32 0.7978846, %v2386_v5  ;;  %v2388_v50 = vadd.f32 %v2384_v44, %v2364_v14  ;;  %v3701_v5 = vld [vmem:[#allocation4 + $0x1f0] ss:$8 sps:$4 sm:$0xff]  }
 0xabe   : > { %v2391_v9 = vmul.f32 0.7978846, %v2387_v6  ;;  %v2393_v11 = vmul.f32 0.7978846, %v2389_v7 }
 0xabf   : > { %3716 = vtanh.f32 %v2390_v8  ;;  %v2392_v55 = vmul.f32 0.7978846, %v2388_v50  ;;  %v2474_v8 = vld [vmem:[%s4625_s13] sm:$0x3] }
 0xac0   : > { %3718 = vtanh.f32 %v2391_v9  ;;  %v2479_v9 = vrot.slane %v2474_v8, %v4085_v56 }
 0xac1   : > { %3720 = vtanh.f32 %v2393_v11  ;;  %v2483_v11 = vrot.slane %v2474_v8, %v4088_v57 }
 0xac2   : > { %3722 = vtanh.f32 %v2392_v55 }
 0xac9   : > { %v3717_v13 = vpop.eup %3716 }
 0xaca   : > { %v3719_v29 = vpop.eup %3718  ;;  %v2398_v15 = vadd.f32 1.0, %v3717_v13 }
 0xacb   : > { %v3721_v18 = vpop.eup %3720  ;;  %v2399_v21 = vadd.f32 1.0, %v3719_v29 }
 0xacc   : > { %v2402_v22 = vmul.f32 %v2398_v15, %v2370_v12  ;;  %v2401_v25 = vadd.f32 1.0, %v3721_v18  ;;  %v3723_v1 = vpop.eup %3722 }
 0xacd   : > { %v2403_v26 = vmul.f32 %v2399_v21, %v2371_v10  ;;  %v2400_v17 = vadd.f32 1.0, %v3723_v1 }
 0xace   : > { %v2405_v27 = vmul.f32 %v2401_v25, %v2373_v24  ;;  %v2406_v23 = vpack.c.bf16 %v2402_v22, %v2402_v22 }
 0xacf   : > { %v2407_v30 = vpack.c.bf16 %v2403_v26, %v2403_v26  ;;  %v2404_v6 = vmul.f32 %v2400_v17, %v2372_v4 }
 0xad0   : > { %v2409_v33 = vpack.c.bf16 %v2405_v27, %v2405_v27 }
 0xad1   : > { %2838 = vmatprep.mubr.bf16.mxu1 %v2407_v30  ;;  %v2408_v7 = vpack.c.bf16 %v2404_v6, %v2404_v6 }
 0xad2   : > { %2839 = vmatmul.mubr.bf16.vlgmr.msra.gmra.mrb[24].mxu1 %v2406_v23 }
 0xad3   : > { %2848 = vmatpush1.bf16.msra.mxu1 %v3656_v20  ;;  %2879 = vmatprep.mubr.bf16.mxu1 %v2409_v33 }
 0xad4   : > { %2849 = vmatprep.subr.bf16.mxu1 %v3661_v32 }
 0xad7   : > { %2850 = vmatpush1.bf16.msra.mxu1 %v3659_v34 }
 0xad8   : > { %2851 = vmatprep.subr.bf16.mxu1 %v3664_v35 }
 0xadb   : > { %2852 = vmatpush1.bf16.msra.mxu1 %v3662_v36 }
 0xadc   : > { %2853 = vmatprep.subr.bf16.mxu1 %v3667_v16 }
 0xadf   : > { %2854 = vmatpush1.bf16.msra.mxu1 %v3665_v37 }
 0xae0   : > { %2855 = vmatprep.subr.bf16.mxu1 %v3670_v38 }
 0xae3   : > { %2856 = vmatpush1.bf16.msra.mxu1 %v3668_v40 }
 0xae4   : > { %2857 = vmatprep.subr.bf16.mxu1 %v3673_v41 }
 0xae7   : > { %2858 = vmatpush1.bf16.msra.mxu1 %v3671_v42 }
 0xae8   : > { %2859 = vmatprep.subr.bf16.mxu1 %v3676_v43 }
 0xaeb   : > { %2860 = vmatpush1.bf16.msra.mxu1 %v3674_v46 }
 0xaec   : > { %2861 = vmatprep.subr.bf16.mxu1 %v3679_v48 }
 0xaef   : > { %2862 = vmatpush1.bf16.msra.mxu1 %v3677_v28 }
 0xaf0   : > { %2863 = vmatprep.subr.bf16.mxu1 %v3682_v19 }
 0xaf3   : > { %2864 = vmatpush1.bf16.msra.mxu1 %v3680_v51 }
 0xaf4   : > { %2865 = vmatprep.subr.bf16.mxu1 %v3685_v47 }
 0xaf7   : > { %2866 = vmatpush1.bf16.msra.mxu1 %v3683_v52 }
 0xaf8   : > { %2867 = vmatprep.subr.bf16.mxu1 %v3688_v53 }
 0xafb   : > { %2868 = vmatpush1.bf16.msra.mxu1 %v3686_v54 }
 0xafc   : > { %2869 = vmatprep.subr.bf16.mxu1 %v3691_v58 }
 0xaff   : > { %2870 = vmatpush1.bf16.msra.mxu1 %v3689_v59 }
 0xb00   : > { %2871 = vmatprep.subr.bf16.mxu1 %v3694_v60 }
 0xb03   : > { %2872 = vmatpush1.bf16.msra.mxu1 %v3692_v61 }
 0xb04   : > { %2873 = vmatprep.subr.bf16.mxu1 %v3697_v62 }
 0xb07   : > { %2874 = vmatpush1.bf16.msra.mxu1 %v3695_v63 }
 0xb08   : > { %2875 = vmatprep.subr.bf16.mxu1 %v3700_v0 }
 0xb0b   : > { %2876 = vmatpush1.bf16.msra.mxu1 %v3698_v2 }
 0xb0c   : > { %2877 = vmatprep.subr.bf16.mxu1 %v3703_v3 }
 0xb0f   : > { %2878 = vmatpush1.bf16.msra.mxu1 %v3701_v5 }
 0xb12   : > { %2880 = vmatmul.mubr.bf16.vlgmr.msra.gmra.mrb[24].mxu1 %v2408_v7 }
 0xbe5   : > { %v2881_v13 = vpop.f32.mrb[24].mxu1 }
 0xbe6   : > { %v3278_v29 = vadd.f32 %v2881_v13, %v2479_v9  ;;  %v2883_v12 = vpop.f32.mrb[25].mxu1 }
 0xbe7   : > { %v3279_v15 = vadd.f32 %v2883_v12, %v2483_v11  ;;  %v2885_v18 = vpop.f32.mrb[26].mxu1 }
 0xbe8   : > { %v2886_v10 = vpop.f32.mrb[27].mxu1 }
 0xbe9   : > { %v2890_v21 = vcombine.low %v3278_v29, %v3279_v15 }
 0xbeb   : > { %v2892_v22 = vadd.f32 %v2890_v21, %v4361_v31 }
 0xbed   : > { %2893 = vst [vmem:[%s497_s26] sm:$0xff] %v2892_v22 }
 0xbee PF: > { %s4638_s27 = sld [smem:[#allocation8_spill]] }
 0xbf4   : > { %s26_s29 = sadd.s32 1, %s4638_s27  }
 0xbf5   : > { %p23_p5 = scmp.ge.s32.totalorder %s26_s29, 4  }
 0xbf7   :  { %25 = sbr.rel (!%p23_p5) target bundleno = 2 (0x2), region = 115 }
 0xbfe   :  { %2915 = vsyncpa [#allocation3], 1 }
 0xbff   :  { %2917 = vsyncpa [#allocation3 + $0x1], 1 }
 0xc00   :  { %2918 = vsyncpa [#allocation5], 1 }

</bundles_post_ra>
